<compile_context>
chip_gen: v7x
topology: tpu7x:2x2x1
jax: 0.10.0
libtpu: 0.0.40
codegen_flags: <defaults>
</compile_context>

<pallas_src>
import math

import jax
import jax.numpy as jnp
from jax.experimental import pallas as pl
from jax.experimental.pallas import tpu as pltpu


def _vmem_budget_and_target_rows():
    """Generation-aware scoped-VMEM limit and MXU-row target for the batch tile."""
    cap = None
    try:
        info = pltpu.get_tpu_info()
        cap = int(getattr(info, "vmem_capacity_bytes", 0)) or None
    except Exception:
        cap = None
    if cap is None:                            # unknown generation -> conservative
        return 64 * 1024 * 1024, 256
    if cap <= 64 * 1024 * 1024:                # v7x-class: 64 MiB per TensorCore
        return (cap * 3) // 4, 256             # ~48 MiB, leave compiler headroom
    # v5e / v6e class (128 MiB VMEM): bigger blocks amortize per-step overhead
    return min(int(cap * 0.85), 112 * 1024 * 1024), 512


def _pick_batch_tile(B, S, target_rows):
    """Largest divisor of B with TB*S ~ target_rows, keeping >= 2 grid steps
    when B allows it (v7x shares the 'parallel' grid axis across 2 TCs)."""
    tb = max(1, min(B, max(1, target_rows // max(S, 1))))
    while B % tb:
        tb -= 1
    if B >= 2 and B // tb < 2:
        tb = max(1, B // 2)
        while B % tb:
            tb -= 1
    return tb


def encoder_layer_pallas(x, mask, params, *, num_heads, batch_tile=None):
    """One Transformer encoder layer; one Pallas grid step per TB batch rows."""
    B, S, D = x.shape
    H = num_heads
    d_k = D // H
    assert H * d_k == D, "num_heads must divide the model size"
    eps = 1e-6

    vmem_limit, target_rows = _vmem_budget_and_target_rows()
    TB = batch_tile or _pick_batch_tile(B, S, target_rows)
    assert B % TB == 0, "batch tile must divide batch size"
    M = TB * S
    inv_sqrt_dk = 1.0 / math.sqrt(d_k)

    # Additive key-mask bias, precomputed once in the wrapper: 0 where valid,
    # -1e9 where padded.  Replaces the in-kernel H-way mask concat + cmp/select
    # with a single broadcasted add (and avoids exact f32 ==0.0 compares).
    neg_bias = ((mask.astype(jnp.float32) - 1.0) * 1e9).reshape(B, 1, S)

    # bf16 weights: halves HBM->VMEM bytes and hits the bf16 MXU path.
    # TODO(synk): on v7x the six big matrices could be fp8 (accuracy-gated);
    # not drop-in, so kept bf16 here.
    wdt = jnp.bfloat16
    weights = dict(params)
    for name in ("wq", "wk", "wv", "wo", "w1", "w2"):
        weights[name] = params[name].astype(wdt)

    def kernel(x_ref, neg_ref,
               a1_ref, b1_ref,
               wq_ref, bq_ref, wk_ref, bk_ref, wv_ref, bv_ref, wo_ref, bo_ref,
               a2_ref, b2_ref,
               w1_ref, fb1_ref, w2_ref, fb2_ref,
               o_ref):
        xb = x_ref[...].astype(jnp.float32).reshape(M, D)     # folded (TB*S, D)
        neg = neg_ref[...]                                     # (TB, 1, S) bias

        def layer_norm(v, a, b):
            mean = jnp.mean(v, axis=-1, keepdims=True)
            # torch.std is unbiased (divides by D-1); eps is added to std.
            var = jnp.sum((v - mean) ** 2, axis=-1, keepdims=True) / (D - 1)
            inv = pl.reciprocal(jnp.sqrt(var) + eps, approx=True)   # EUP slot
            return a * (v - mean) * inv + b

        # ---- sublayer 0: pre-norm -> self-attention -> residual ----
        ln1 = layer_norm(xb, a1_ref[...], b1_ref[...]).astype(wdt)
        # QKV on the folded M rows; f32 accumulation, one bf16 cast per tensor.
        q = (jnp.dot(ln1, wq_ref[...], preferred_element_type=jnp.float32)
             + bq_ref[...]).astype(wdt)
        k = (jnp.dot(ln1, wk_ref[...], preferred_element_type=jnp.float32)
             + bk_ref[...]).astype(wdt)
        v = (jnp.dot(ln1, wv_ref[...], preferred_element_type=jnp.float32)
             + bv_ref[...]).astype(wdt)

        # TODO(synk): replace the slice+concat head relayout below with a single
        # pltpu.einshape("bshd->bhsd") / two-batch-dim einsum once that relayout
        # is confirmed to lower on all target generations; slice+concat is the
        # known-good lowering path.
        def split_heads(t):
            # (M, D) lanes head-major -> (H*TB, S, d_k) head-major batch.
            return jnp.concatenate(
                [t[:, h * d_k:(h + 1) * d_k].reshape(TB, S, d_k) for h in range(H)],
                axis=0)

        qh, kh, vh = split_heads(q), split_heads(k), split_heads(v)

        # Batched over all (head, batch-row) pairs in one 3-D einsum each.
        scores = jnp.einsum("bqd,bkd->bqk", qh, kh,
                            preferred_element_type=jnp.float32) * inv_sqrt_dk
        # Additive padding bias, broadcast over heads and query rows.
        scores = (scores.reshape(H, TB, S, S) + neg).reshape(H * TB, S, S)
        m = jnp.max(scores, axis=-1, keepdims=True)
        p = jnp.exp(scores - m)
        p = (p * pl.reciprocal(jnp.sum(p, axis=-1, keepdims=True),
                               approx=True)).astype(wdt)
        ctx = jnp.einsum("bqk,bkd->bqd", p, vh,
                         preferred_element_type=jnp.float32)   # (H*TB, S, d_k)

        # Reassemble heads into lanes; single full-K (M, D) @ (D, D) projection.
        ctx2 = jnp.concatenate(
            [ctx[h * TB:(h + 1) * TB].reshape(M, d_k) for h in range(H)], axis=-1)
        attn = jnp.dot(ctx2.astype(wdt), wo_ref[...],
                       preferred_element_type=jnp.float32) + bo_ref[...]
        x1 = xb + attn                                          # dropout = identity

        # ---- sublayer 1: pre-norm -> feed-forward -> residual ----
        ln2 = layer_norm(x1, a2_ref[...], b2_ref[...]).astype(wdt)
        hid = jnp.maximum(
            jnp.dot(ln2, w1_ref[...], preferred_element_type=jnp.float32)
            + fb1_ref[...], 0.0)
        ffn = jnp.dot(hid.astype(wdt), w2_ref[...],
                      preferred_element_type=jnp.float32) + fb2_ref[...]
        out = x1 + ffn                                          # dropout = identity

        # TODO(synk): for D not a multiple of 128 a lane-dense (TB, S*D) out
        # block would avoid masked partial stores; requires the (M,D)<->(TB,S*D)
        # in-kernel reshape to be verified, so the natural (TB,S,D) block is kept.
        o_ref[...] = out.reshape(TB, S, D).astype(o_ref.dtype)

    param_order = ["a1", "b1", "wq", "bq", "wk", "bk", "wv", "bv", "wo", "bo",
                   "a2", "b2", "w1", "fb1", "w2", "fb2"]
    param_list = [weights[n] for n in param_order]

    def weight_spec(shape, single_buffer):
        index_map = lambda i: (0,) * len(shape)      # grid-invariant -> DMA'd once
        if single_buffer:
            # Grid-invariant blocks don't need double buffering; halves weight VMEM.
            return pl.BlockSpec(shape, index_map, pipeline_mode=pl.Buffered(1))
        return pl.BlockSpec(shape, index_map)

    def build(single_buffer_weights):
        param_specs = [weight_spec(weights[n].shape, single_buffer_weights)
                       for n in param_order]
        return pl.pallas_call(
            kernel,
            out_shape=jax.ShapeDtypeStruct((B, S, D), x.dtype),
            grid_spec=pltpu.PrefetchScalarGridSpec(
                num_scalar_prefetch=0,
                grid=(B // TB,),
                in_specs=[pl.BlockSpec((TB, S, D), lambda i: (i, 0, 0)),
                          pl.BlockSpec((TB, 1, S), lambda i: (i, 0, 0))] + param_specs,
                out_specs=pl.BlockSpec((TB, S, D), lambda i: (i, 0, 0)),
            ),
            compiler_params=pltpu.CompilerParams(
                dimension_semantics=("parallel",),
                vmem_limit_bytes=vmem_limit),
        )

    try:
        return build(True)(x, neg_bias, *param_list)
    except Exception:
        # pl.Buffered(1) single-buffering unsupported on this jax/libtpu build:
        # fall back to default double-buffered weight specs.
        return build(False)(x, neg_bias, *param_list)


def encoder_layer_ref(x, mask, params, *, num_heads):
    """Pure-JAX (f32) reference reproducing the PyTorch forward semantics."""
    B, S, D = x.shape
    H = num_heads
    d_k = D // H
    eps = 1e-6

    def layer_norm(v, a, b):
        mean = jnp.mean(v, axis=-1, keepdims=True)
        var = jnp.sum((v - mean) ** 2, axis=-1, keepdims=True) / (D - 1)
        std = jnp.sqrt(var)
        return a * (v - mean) / (std + eps) + b

    ln1 = layer_norm(x, params["a1"], params["b1"])
    q = ln1 @ params["wq"] + params["bq"]
    k = ln1 @ params["wk"] + params["bk"]
    v = ln1 @ params["wv"] + params["bv"]
    q = q.reshape(B, S, H, d_k).transpose(0, 2, 1, 3)
    k = k.reshape(B, S, H, d_k).transpose(0, 2, 1, 3)
    v = v.reshape(B, S, H, d_k).transpose(0, 2, 1, 3)
    scores = jnp.einsum("bhqd,bhkd->bhqk", q, k) / math.sqrt(d_k)
    scores = jnp.where(mask[:, None, None, :] == 0.0, -1e9, scores)
    p = jax.nn.softmax(scores, axis=-1)
    ctx = jnp.einsum("bhqk,bhkd->bhqd", p, v).transpose(0, 2, 1, 3).reshape(B, S, D)
    attn = ctx @ params["wo"] + params["bo"]
    x1 = x + attn
    ln2 = layer_norm(x1, params["a2"], params["b2"])
    ffn = jnp.maximum(ln2 @ params["w1"] + params["fb1"], 0.0) @ params["w2"] + params["fb2"]
    return x1 + ffn


def make_params(key, D, d_ff):
    ks = jax.random.split(key, 8)
    scale = 0.05
    return {
        "a1": jnp.ones((1, D), jnp.float32),
        "b1": jnp.zeros((1, D), jnp.float32),
        "wq": scale * jax.random.normal(ks[0], (D, D), jnp.float32),
        "bq": jnp.zeros((1, D), jnp.float32),
        "wk": scale * jax.random.normal(ks[1], (D, D), jnp.float32),
        "bk": jnp.zeros((1, D), jnp.float32),
        "wv": scale * jax.random.normal(ks[2], (D, D), jnp.float32),
        "bv": jnp.zeros((1, D), jnp.float32),
        "wo": scale * jax.random.normal(ks[3], (D, D), jnp.float32),
        "bo": jnp.zeros((1, D), jnp.float32),
        "a2": jnp.ones((1, D), jnp.float32),
        "b2": jnp.zeros((1, D), jnp.float32),
        "w1": scale * jax.random.normal(ks[4], (D, d_ff), jnp.float32),
        "fb1": jnp.zeros((1, d_ff), jnp.float32),
        "w2": scale * jax.random.normal(ks[5], (d_ff, D), jnp.float32),
        "fb2": jnp.zeros((1, D), jnp.float32),
    }


if __name__ == "__main__":
    B, S, D, H, d_ff = 2, 8, 32, 4, 64
    key = jax.random.PRNGKey(0)
    kx, kp = jax.random.split(key)
    x = jax.random.normal(kx, (B, S, D), jnp.float32)
    # padding mask: batch 0 fully valid, batch 1 has the last 2 positions padded
    mask = jnp.array([[1.0] * S,
                      [1.0] * (S - 2) + [0.0] * 2], jnp.float32)
    params = make_params(kp, D, d_ff)

    out = encoder_layer_pallas(x, mask, params, num_heads=H)
    out = jax.block_until_ready(out)

    ref = encoder_layer_ref(x, mask, params, num_heads=H)
    assert out.shape == (B, S, D)
    # bf16 matmuls + approx reciprocals -> loosened tolerance vs. f32 reference.
    assert jnp.allclose(out, ref, atol=2e-2, rtol=2e-2), "Pallas output != JAX reference"

    print("KERNEL_OK")
</pallas_src>

<mosaic_0001>
module attributes {stable_mosaic.version = 11 : i64} {
  func.func @kernel(%arg0: i32, %arg1: memref<1x8x32xf32, #tpu.memory_space<vmem>>, %arg2: memref<1x1x8xf32, #tpu.memory_space<vmem>>, %arg3: memref<1x32xf32, #tpu.memory_space<vmem>>, %arg4: memref<1x32xf32, #tpu.memory_space<vmem>>, %arg5: memref<32x32xbf16, #tpu.memory_space<vmem>>, %arg6: memref<1x32xf32, #tpu.memory_space<vmem>>, %arg7: memref<32x32xbf16, #tpu.memory_space<vmem>>, %arg8: memref<1x32xf32, #tpu.memory_space<vmem>>, %arg9: memref<32x32xbf16, #tpu.memory_space<vmem>>, %arg10: memref<1x32xf32, #tpu.memory_space<vmem>>, %arg11: memref<32x32xbf16, #tpu.memory_space<vmem>>, %arg12: memref<1x32xf32, #tpu.memory_space<vmem>>, %arg13: memref<1x32xf32, #tpu.memory_space<vmem>>, %arg14: memref<1x32xf32, #tpu.memory_space<vmem>>, %arg15: memref<32x64xbf16, #tpu.memory_space<vmem>>, %arg16: memref<1x64xf32, #tpu.memory_space<vmem>>, %arg17: memref<64x32xbf16, #tpu.memory_space<vmem>>, %arg18: memref<1x32xf32, #tpu.memory_space<vmem>>, %arg19: memref<1x8x32xf32, #tpu.memory_space<vmem>>) attributes {dimension_semantics = [#tpu.dimension_semantics<parallel>], iteration_bounds = array<i64: 2>, scalar_prefetch = 0 : i64, scratch_operands = 0 : i64, tpu.core_type = #tpu.core_type<tc>, window_params = [{transform_indices = @transform_0, window_bounds = array<i64: 1, 8, 32>}, {transform_indices = @transform_1, window_bounds = array<i64: 1, 1, 8>}, {pipeline_mode = #tpu.pipeline_mode<synchronous>, transform_indices = @transform_2, window_bounds = array<i64: 1, 32>}, {pipeline_mode = #tpu.pipeline_mode<synchronous>, transform_indices = @transform_3, window_bounds = array<i64: 1, 32>}, {pipeline_mode = #tpu.pipeline_mode<synchronous>, transform_indices = @transform_4, window_bounds = array<i64: 32, 32>}, {pipeline_mode = #tpu.pipeline_mode<synchronous>, transform_indices = @transform_5, window_bounds = array<i64: 1, 32>}, {pipeline_mode = #tpu.pipeline_mode<synchronous>, transform_indices = @transform_6, window_bounds = array<i64: 32, 32>}, {pipeline_mode = #tpu.pipeline_mode<synchronous>, transform_indices = @transform_7, window_bounds = array<i64: 1, 32>}, {pipeline_mode = #tpu.pipeline_mode<synchronous>, transform_indices = @transform_8, window_bounds = array<i64: 32, 32>}, {pipeline_mode = #tpu.pipeline_mode<synchronous>, transform_indices = @transform_9, window_bounds = array<i64: 1, 32>}, {pipeline_mode = #tpu.pipeline_mode<synchronous>, transform_indices = @transform_10, window_bounds = array<i64: 32, 32>}, {pipeline_mode = #tpu.pipeline_mode<synchronous>, transform_indices = @transform_11, window_bounds = array<i64: 1, 32>}, {pipeline_mode = #tpu.pipeline_mode<synchronous>, transform_indices = @transform_12, window_bounds = array<i64: 1, 32>}, {pipeline_mode = #tpu.pipeline_mode<synchronous>, transform_indices = @transform_13, window_bounds = array<i64: 1, 32>}, {pipeline_mode = #tpu.pipeline_mode<synchronous>, transform_indices = @transform_14, window_bounds = array<i64: 32, 64>}, {pipeline_mode = #tpu.pipeline_mode<synchronous>, transform_indices = @transform_15, window_bounds = array<i64: 1, 64>}, {pipeline_mode = #tpu.pipeline_mode<synchronous>, transform_indices = @transform_16, window_bounds = array<i64: 64, 32>}, {pipeline_mode = #tpu.pipeline_mode<synchronous>, transform_indices = @transform_17, window_bounds = array<i64: 1, 32>}, {transform_indices = @transform_18, window_bounds = array<i64: 1, 8, 32>}]} {
    %c0 = arith.constant 0 : index
    %c0_0 = arith.constant 0 : index
    %c0_1 = arith.constant 0 : index
    %0 = vector.load %arg1[%c0, %c0_0, %c0_1] : memref<1x8x32xf32, #tpu.memory_space<vmem>>, vector<1x8x32xf32>
    %1 = vector.shape_cast %0 : vector<1x8x32xf32> to vector<8x32xf32>
    %c0_2 = arith.constant 0 : index
    %c0_3 = arith.constant 0 : index
    %c0_4 = arith.constant 0 : index
    %2 = vector.load %arg2[%c0_2, %c0_3, %c0_4] : memref<1x1x8xf32, #tpu.memory_space<vmem>>, vector<1x1x8xf32>
    %c0_5 = arith.constant 0 : index
    %c0_6 = arith.constant 0 : index
    %3 = vector.load %arg3[%c0_5, %c0_6] : memref<1x32xf32, #tpu.memory_space<vmem>>, vector<1x32xf32>
    %c0_7 = arith.constant 0 : index
    %c0_8 = arith.constant 0 : index
    %4 = vector.load %arg4[%c0_7, %c0_8] : memref<1x32xf32, #tpu.memory_space<vmem>>, vector<1x32xf32>
    %cst = arith.constant dense<0.000000e+00> : vector<8xf32>
    %5 = vector.multi_reduction <add>, %1, %cst [1] : vector<8x32xf32> to vector<8xf32>
    %6 = vector.shape_cast %5 : vector<8xf32> to vector<8x1xf32>
    %cst_9 = arith.constant 3.200000e+01 : f32
    %7 = vector.broadcast %cst_9 : f32 to vector<8x1xf32>
    %8 = arith.divf %6, %7 : vector<8x1xf32>
    %9 = vector.broadcast %8 : vector<8x1xf32> to vector<8x32xf32>
    %10 = arith.subf %1, %9 : vector<8x32xf32>
    %11 = arith.mulf %10, %10 : vector<8x32xf32>
    %cst_10 = arith.constant dense<0.000000e+00> : vector<8xf32>
    %12 = vector.multi_reduction <add>, %11, %cst_10 [1] : vector<8x32xf32> to vector<8xf32>
    %13 = vector.shape_cast %12 : vector<8xf32> to vector<8x1xf32>
    %cst_11 = arith.constant 3.100000e+01 : f32
    %14 = vector.broadcast %cst_11 : f32 to vector<8x1xf32>
    %15 = arith.divf %13, %14 : vector<8x1xf32>
    %16 = math.sqrt %15 : vector<8x1xf32>
    %cst_12 = arith.constant 9.99999997E-7 : f32
    %17 = vector.broadcast %cst_12 : f32 to vector<8x1xf32>
    %18 = arith.addf %16, %17 : vector<8x1xf32>
    %19 = tpu.reciprocal %18 {approx = true} : vector<8x1xf32> -> vector<8x1xf32>
    %20 = vector.broadcast %8 : vector<8x1xf32> to vector<8x32xf32>
    %21 = arith.subf %1, %20 : vector<8x32xf32>
    %22 = vector.broadcast %3 : vector<1x32xf32> to vector<8x32xf32>
    %23 = arith.mulf %22, %21 : vector<8x32xf32>
    %24 = vector.broadcast %19 : vector<8x1xf32> to vector<8x32xf32>
    %25 = arith.mulf %23, %24 : vector<8x32xf32>
    %26 = vector.broadcast %4 : vector<1x32xf32> to vector<8x32xf32>
    %27 = arith.addf %25, %26 : vector<8x32xf32>
    %28 = arith.truncf %27 : vector<8x32xf32> to vector<8x32xbf16>
    %c0_13 = arith.constant 0 : index
    %c0_14 = arith.constant 0 : index
    %29 = vector.load %arg5[%c0_13, %c0_14] : memref<32x32xbf16, #tpu.memory_space<vmem>>, vector<32x32xbf16>
    %cst_15 = arith.constant dense<0.000000e+00> : vector<8x32xf32>
    %30 = tpu.matmul %28, %29, %cst_15 {dimension_numbers = #tpu.dot_dimension_numbers<[1], [0], [0], [1], [0, 0, 1, 1], [], []>} : vector<8x32xbf16>, vector<32x32xbf16>, vector<8x32xf32> -> vector<8x32xf32>
    %c0_16 = arith.constant 0 : index
    %c0_17 = arith.constant 0 : index
    %31 = vector.load %arg6[%c0_16, %c0_17] : memref<1x32xf32, #tpu.memory_space<vmem>>, vector<1x32xf32>
    %32 = vector.broadcast %31 : vector<1x32xf32> to vector<8x32xf32>
    %33 = arith.addf %30, %32 : vector<8x32xf32>
    %34 = arith.truncf %33 : vector<8x32xf32> to vector<8x32xbf16>
    %c0_18 = arith.constant 0 : index
    %c0_19 = arith.constant 0 : index
    %35 = vector.load %arg7[%c0_18, %c0_19] : memref<32x32xbf16, #tpu.memory_space<vmem>>, vector<32x32xbf16>
    %cst_20 = arith.constant dense<0.000000e+00> : vector<8x32xf32>
    %36 = tpu.matmul %28, %35, %cst_20 {dimension_numbers = #tpu.dot_dimension_numbers<[1], [0], [0], [1], [0, 0, 1, 1], [], []>} : vector<8x32xbf16>, vector<32x32xbf16>, vector<8x32xf32> -> vector<8x32xf32>
    %c0_21 = arith.constant 0 : index
    %c0_22 = arith.constant 0 : index
    %37 = vector.load %arg8[%c0_21, %c0_22] : memref<1x32xf32, #tpu.memory_space<vmem>>, vector<1x32xf32>
    %38 = vector.broadcast %37 : vector<1x32xf32> to vector<8x32xf32>
    %39 = arith.addf %36, %38 : vector<8x32xf32>
    %40 = arith.truncf %39 : vector<8x32xf32> to vector<8x32xbf16>
    %c0_23 = arith.constant 0 : index
    %c0_24 = arith.constant 0 : index
    %41 = vector.load %arg9[%c0_23, %c0_24] : memref<32x32xbf16, #tpu.memory_space<vmem>>, vector<32x32xbf16>
    %cst_25 = arith.constant dense<0.000000e+00> : vector<8x32xf32>
    %42 = tpu.matmul %28, %41, %cst_25 {dimension_numbers = #tpu.dot_dimension_numbers<[1], [0], [0], [1], [0, 0, 1, 1], [], []>} : vector<8x32xbf16>, vector<32x32xbf16>, vector<8x32xf32> -> vector<8x32xf32>
    %c0_26 = arith.constant 0 : index
    %c0_27 = arith.constant 0 : index
    %43 = vector.load %arg10[%c0_26, %c0_27] : memref<1x32xf32, #tpu.memory_space<vmem>>, vector<1x32xf32>
    %44 = vector.broadcast %43 : vector<1x32xf32> to vector<8x32xf32>
    %45 = arith.addf %42, %44 : vector<8x32xf32>
    %46 = arith.truncf %45 : vector<8x32xf32> to vector<8x32xbf16>
    %47 = vector.extract_strided_slice %34 {offsets = [0, 0], sizes = [8, 8], strides = [1, 1]} : vector<8x32xbf16> to vector<8x8xbf16>
    %48 = vector.shape_cast %47 : vector<8x8xbf16> to vector<1x8x8xbf16>
    %49 = vector.extract_strided_slice %34 {offsets = [0, 8], sizes = [8, 8], strides = [1, 1]} : vector<8x32xbf16> to vector<8x8xbf16>
    %50 = vector.shape_cast %49 : vector<8x8xbf16> to vector<1x8x8xbf16>
    %51 = vector.extract_strided_slice %34 {offsets = [0, 16], sizes = [8, 8], strides = [1, 1]} : vector<8x32xbf16> to vector<8x8xbf16>
    %52 = vector.shape_cast %51 : vector<8x8xbf16> to vector<1x8x8xbf16>
    %53 = vector.extract_strided_slice %34 {offsets = [0, 24], sizes = [8, 8], strides = [1, 1]} : vector<8x32xbf16> to vector<8x8xbf16>
    %54 = vector.shape_cast %53 : vector<8x8xbf16> to vector<1x8x8xbf16>
    %55 = tpu.concatenate %48, %50, %52, %54 in 0 : vector<1x8x8xbf16>, vector<1x8x8xbf16>, vector<1x8x8xbf16>, vector<1x8x8xbf16> -> vector<4x8x8xbf16>
    %56 = vector.extract_strided_slice %40 {offsets = [0, 0], sizes = [8, 8], strides = [1, 1]} : vector<8x32xbf16> to vector<8x8xbf16>
    %57 = vector.shape_cast %56 : vector<8x8xbf16> to vector<1x8x8xbf16>
    %58 = vector.extract_strided_slice %40 {offsets = [0, 8], sizes = [8, 8], strides = [1, 1]} : vector<8x32xbf16> to vector<8x8xbf16>
    %59 = vector.shape_cast %58 : vector<8x8xbf16> to vector<1x8x8xbf16>
    %60 = vector.extract_strided_slice %40 {offsets = [0, 16], sizes = [8, 8], strides = [1, 1]} : vector<8x32xbf16> to vector<8x8xbf16>
    %61 = vector.shape_cast %60 : vector<8x8xbf16> to vector<1x8x8xbf16>
    %62 = vector.extract_strided_slice %40 {offsets = [0, 24], sizes = [8, 8], strides = [1, 1]} : vector<8x32xbf16> to vector<8x8xbf16>
    %63 = vector.shape_cast %62 : vector<8x8xbf16> to vector<1x8x8xbf16>
    %64 = tpu.concatenate %57, %59, %61, %63 in 0 : vector<1x8x8xbf16>, vector<1x8x8xbf16>, vector<1x8x8xbf16>, vector<1x8x8xbf16> -> vector<4x8x8xbf16>
    %65 = vector.extract_strided_slice %46 {offsets = [0, 0], sizes = [8, 8], strides = [1, 1]} : vector<8x32xbf16> to vector<8x8xbf16>
    %66 = vector.shape_cast %65 : vector<8x8xbf16> to vector<1x8x8xbf16>
    %67 = vector.extract_strided_slice %46 {offsets = [0, 8], sizes = [8, 8], strides = [1, 1]} : vector<8x32xbf16> to vector<8x8xbf16>
    %68 = vector.shape_cast %67 : vector<8x8xbf16> to vector<1x8x8xbf16>
    %69 = vector.extract_strided_slice %46 {offsets = [0, 16], sizes = [8, 8], strides = [1, 1]} : vector<8x32xbf16> to vector<8x8xbf16>
    %70 = vector.shape_cast %69 : vector<8x8xbf16> to vector<1x8x8xbf16>
    %71 = vector.extract_strided_slice %46 {offsets = [0, 24], sizes = [8, 8], strides = [1, 1]} : vector<8x32xbf16> to vector<8x8xbf16>
    %72 = vector.shape_cast %71 : vector<8x8xbf16> to vector<1x8x8xbf16>
    %73 = tpu.concatenate %66, %68, %70, %72 in 0 : vector<1x8x8xbf16>, vector<1x8x8xbf16>, vector<1x8x8xbf16>, vector<1x8x8xbf16> -> vector<4x8x8xbf16>
    "tpu.trace_start"() <{level = 10 : i32, message = "bqd,bkd->bqk"}> : () -> ()
    %cst_28 = arith.constant dense<0.000000e+00> : vector<4x8x8xf32>
    %74 = tpu.matmul %55, %64, %cst_28 {dimension_numbers = #tpu.dot_dimension_numbers<[2], [2], [1], [1], [0, 0, 0, 1, 1, 1], [0], [0]>} : vector<4x8x8xbf16>, vector<4x8x8xbf16>, vector<4x8x8xf32> -> vector<4x8x8xf32>
    "tpu.trace_stop"() : () -> ()
    %cst_29 = arith.constant 0.353553385 : f32
    %75 = vector.broadcast %cst_29 : f32 to vector<4x8x8xf32>
    %76 = arith.mulf %74, %75 : vector<4x8x8xf32>
    %77 = vector.shape_cast %76 : vector<4x8x8xf32> to vector<4x1x8x8xf32>
    %78 = vector.shape_cast %2 : vector<1x1x8xf32> to vector<1x1x1x8xf32>
    %79 = vector.broadcast %78 : vector<1x1x1x8xf32> to vector<4x1x8x8xf32>
    %80 = arith.addf %77, %79 : vector<4x1x8x8xf32>
    %81 = vector.shape_cast %80 : vector<4x1x8x8xf32> to vector<4x8x8xf32>
    %cst_30 = arith.constant dense<0xFF800000> : vector<4x8xf32>
    %82 = vector.multi_reduction <maximumf>, %81, %cst_30 [2] : vector<4x8x8xf32> to vector<4x8xf32>
    %83 = vector.shape_cast %82 : vector<4x8xf32> to vector<4x8x1xf32>
    %84 = vector.broadcast %83 : vector<4x8x1xf32> to vector<4x8x8xf32>
    %85 = arith.subf %81, %84 : vector<4x8x8xf32>
    %86 = math.exp %85 : vector<4x8x8xf32>
    %cst_31 = arith.constant dense<0.000000e+00> : vector<4x8xf32>
    %87 = vector.multi_reduction <add>, %86, %cst_31 [2] : vector<4x8x8xf32> to vector<4x8xf32>
    %88 = vector.shape_cast %87 : vector<4x8xf32> to vector<4x8x1xf32>
    %89 = tpu.reciprocal %88 {approx = true} : vector<4x8x1xf32> -> vector<4x8x1xf32>
    %90 = vector.broadcast %89 : vector<4x8x1xf32> to vector<4x8x8xf32>
    %91 = arith.mulf %86, %90 : vector<4x8x8xf32>
    %92 = arith.truncf %91 : vector<4x8x8xf32> to vector<4x8x8xbf16>
    "tpu.trace_start"() <{level = 10 : i32, message = "bqk,bkd->bqd"}> : () -> ()
    %cst_32 = arith.constant dense<0.000000e+00> : vector<4x8x8xf32>
    %93 = tpu.matmul %92, %73, %cst_32 {dimension_numbers = #tpu.dot_dimension_numbers<[2], [1], [1], [2], [0, 0, 0, 1, 1, 2], [0], [0]>} : vector<4x8x8xbf16>, vector<4x8x8xbf16>, vector<4x8x8xf32> -> vector<4x8x8xf32>
    "tpu.trace_stop"() : () -> ()
    %94 = vector.extract_strided_slice %93 {offsets = [0, 0, 0], sizes = [1, 8, 8], strides = [1, 1, 1]} : vector<4x8x8xf32> to vector<1x8x8xf32>
    %95 = vector.shape_cast %94 : vector<1x8x8xf32> to vector<8x8xf32>
    %96 = vector.extract_strided_slice %93 {offsets = [1, 0, 0], sizes = [1, 8, 8], strides = [1, 1, 1]} : vector<4x8x8xf32> to vector<1x8x8xf32>
    %97 = vector.shape_cast %96 : vector<1x8x8xf32> to vector<8x8xf32>
    %98 = vector.extract_strided_slice %93 {offsets = [2, 0, 0], sizes = [1, 8, 8], strides = [1, 1, 1]} : vector<4x8x8xf32> to vector<1x8x8xf32>
    %99 = vector.shape_cast %98 : vector<1x8x8xf32> to vector<8x8xf32>
    %100 = vector.extract_strided_slice %93 {offsets = [3, 0, 0], sizes = [1, 8, 8], strides = [1, 1, 1]} : vector<4x8x8xf32> to vector<1x8x8xf32>
    %101 = vector.shape_cast %100 : vector<1x8x8xf32> to vector<8x8xf32>
    %102 = tpu.concatenate %95, %97, %99, %101 in 1 : vector<8x8xf32>, vector<8x8xf32>, vector<8x8xf32>, vector<8x8xf32> -> vector<8x32xf32>
    %103 = arith.truncf %102 : vector<8x32xf32> to vector<8x32xbf16>
    %c0_33 = arith.constant 0 : index
    %c0_34 = arith.constant 0 : index
    %104 = vector.load %arg11[%c0_33, %c0_34] : memref<32x32xbf16, #tpu.memory_space<vmem>>, vector<32x32xbf16>
    %cst_35 = arith.constant dense<0.000000e+00> : vector<8x32xf32>
    %105 = tpu.matmul %103, %104, %cst_35 {dimension_numbers = #tpu.dot_dimension_numbers<[1], [0], [0], [1], [0, 0, 1, 1], [], []>} : vector<8x32xbf16>, vector<32x32xbf16>, vector<8x32xf32> -> vector<8x32xf32>
    %c0_36 = arith.constant 0 : index
    %c0_37 = arith.constant 0 : index
    %106 = vector.load %arg12[%c0_36, %c0_37] : memref<1x32xf32, #tpu.memory_space<vmem>>, vector<1x32xf32>
    %107 = vector.broadcast %106 : vector<1x32xf32> to vector<8x32xf32>
    %108 = arith.addf %105, %107 : vector<8x32xf32>
    %109 = arith.addf %1, %108 : vector<8x32xf32>
    %c0_38 = arith.constant 0 : index
    %c0_39 = arith.constant 0 : index
    %110 = vector.load %arg13[%c0_38, %c0_39] : memref<1x32xf32, #tpu.memory_space<vmem>>, vector<1x32xf32>
    %c0_40 = arith.constant 0 : index
    %c0_41 = arith.constant 0 : index
    %111 = vector.load %arg14[%c0_40, %c0_41] : memref<1x32xf32, #tpu.memory_space<vmem>>, vector<1x32xf32>
    %cst_42 = arith.constant dense<0.000000e+00> : vector<8xf32>
    %112 = vector.multi_reduction <add>, %109, %cst_42 [1] : vector<8x32xf32> to vector<8xf32>
    %113 = vector.shape_cast %112 : vector<8xf32> to vector<8x1xf32>
    %cst_43 = arith.constant 3.200000e+01 : f32
    %114 = vector.broadcast %cst_43 : f32 to vector<8x1xf32>
    %115 = arith.divf %113, %114 : vector<8x1xf32>
    %116 = vector.broadcast %115 : vector<8x1xf32> to vector<8x32xf32>
    %117 = arith.subf %109, %116 : vector<8x32xf32>
    %118 = arith.mulf %117, %117 : vector<8x32xf32>
    %cst_44 = arith.constant dense<0.000000e+00> : vector<8xf32>
    %119 = vector.multi_reduction <add>, %118, %cst_44 [1] : vector<8x32xf32> to vector<8xf32>
    %120 = vector.shape_cast %119 : vector<8xf32> to vector<8x1xf32>
    %cst_45 = arith.constant 3.100000e+01 : f32
    %121 = vector.broadcast %cst_45 : f32 to vector<8x1xf32>
    %122 = arith.divf %120, %121 : vector<8x1xf32>
    %123 = math.sqrt %122 : vector<8x1xf32>
    %cst_46 = arith.constant 9.99999997E-7 : f32
    %124 = vector.broadcast %cst_46 : f32 to vector<8x1xf32>
    %125 = arith.addf %123, %124 : vector<8x1xf32>
    %126 = tpu.reciprocal %125 {approx = true} : vector<8x1xf32> -> vector<8x1xf32>
    %127 = vector.broadcast %115 : vector<8x1xf32> to vector<8x32xf32>
    %128 = arith.subf %109, %127 : vector<8x32xf32>
    %129 = vector.broadcast %110 : vector<1x32xf32> to vector<8x32xf32>
    %130 = arith.mulf %129, %128 : vector<8x32xf32>
    %131 = vector.broadcast %126 : vector<8x1xf32> to vector<8x32xf32>
    %132 = arith.mulf %130, %131 : vector<8x32xf32>
    %133 = vector.broadcast %111 : vector<1x32xf32> to vector<8x32xf32>
    %134 = arith.addf %132, %133 : vector<8x32xf32>
    %135 = arith.truncf %134 : vector<8x32xf32> to vector<8x32xbf16>
    %c0_47 = arith.constant 0 : index
    %c0_48 = arith.constant 0 : index
    %136 = vector.load %arg15[%c0_47, %c0_48] : memref<32x64xbf16, #tpu.memory_space<vmem>>, vector<32x64xbf16>
    %cst_49 = arith.constant dense<0.000000e+00> : vector<8x64xf32>
    %137 = tpu.matmul %135, %136, %cst_49 {dimension_numbers = #tpu.dot_dimension_numbers<[1], [0], [0], [1], [0, 0, 1, 1], [], []>} : vector<8x32xbf16>, vector<32x64xbf16>, vector<8x64xf32> -> vector<8x64xf32>
    %c0_50 = arith.constant 0 : index
    %c0_51 = arith.constant 0 : index
    %138 = vector.load %arg16[%c0_50, %c0_51] : memref<1x64xf32, #tpu.memory_space<vmem>>, vector<1x64xf32>
    %139 = vector.broadcast %138 : vector<1x64xf32> to vector<8x64xf32>
    %140 = arith.addf %137, %139 : vector<8x64xf32>
    %cst_52 = arith.constant 0.000000e+00 : f32
    %141 = vector.broadcast %cst_52 : f32 to vector<8x64xf32>
    %142 = arith.maximumf %140, %141 : vector<8x64xf32>
    %143 = arith.truncf %142 : vector<8x64xf32> to vector<8x64xbf16>
    %c0_53 = arith.constant 0 : index
    %c0_54 = arith.constant 0 : index
    %144 = vector.load %arg17[%c0_53, %c0_54] : memref<64x32xbf16, #tpu.memory_space<vmem>>, vector<64x32xbf16>
    %cst_55 = arith.constant dense<0.000000e+00> : vector<8x32xf32>
    %145 = tpu.matmul %143, %144, %cst_55 {dimension_numbers = #tpu.dot_dimension_numbers<[1], [0], [0], [1], [0, 0, 1, 1], [], []>} : vector<8x64xbf16>, vector<64x32xbf16>, vector<8x32xf32> -> vector<8x32xf32>
    %c0_56 = arith.constant 0 : index
    %c0_57 = arith.constant 0 : index
    %146 = vector.load %arg18[%c0_56, %c0_57] : memref<1x32xf32, #tpu.memory_space<vmem>>, vector<1x32xf32>
    %147 = vector.broadcast %146 : vector<1x32xf32> to vector<8x32xf32>
    %148 = arith.addf %145, %147 : vector<8x32xf32>
    %149 = arith.addf %109, %148 : vector<8x32xf32>
    %150 = vector.shape_cast %149 : vector<8x32xf32> to vector<1x8x32xf32>
    %c0_58 = arith.constant 0 : index
    %c0_59 = arith.constant 0 : index
    %c0_60 = arith.constant 0 : index
    %151 = vector.load %arg19[%c0_58, %c0_59, %c0_60] : memref<1x8x32xf32, #tpu.memory_space<vmem>>, vector<1x8x32xf32>
    tpu.vector_store %arg19[%c0_58, %c0_59, %c0_60], %150 {strides = array<i32>} : memref<1x8x32xf32, #tpu.memory_space<vmem>>, vector<1x8x32xf32>,
    return
  }
  func.func @transform_0(%arg0: i32) -> (i32, i32, i32) {
    %c0_i32 = arith.constant 0 : i32
    %c0_i32_0 = arith.constant 0 : i32
    %c0_i32_1 = arith.constant 0 : i32
    return %arg0, %c0_i32, %c0_i32_0 : i32, i32, i32
  }
  func.func @transform_1(%arg0: i32) -> (i32, i32, i32) {
    %c0_i32 = arith.constant 0 : i32
    %c0_i32_0 = arith.constant 0 : i32
    %c0_i32_1 = arith.constant 0 : i32
    return %arg0, %c0_i32, %c0_i32_0 : i32, i32, i32
  }
  func.func @transform_2(%arg0: i32) -> (i32, i32) {
    %c0_i32 = arith.constant 0 : i32
    %c0_i32_0 = arith.constant 0 : i32
    %c0_i32_1 = arith.constant 0 : i32
    return %c0_i32, %c0_i32_0 : i32, i32
  }
  func.func @transform_3(%arg0: i32) -> (i32, i32) {
    %c0_i32 = arith.constant 0 : i32
    %c0_i32_0 = arith.constant 0 : i32
    %c0_i32_1 = arith.constant 0 : i32
    return %c0_i32, %c0_i32_0 : i32, i32
  }
  func.func @transform_4(%arg0: i32) -> (i32, i32) {
    %c0_i32 = arith.constant 0 : i32
    %c0_i32_0 = arith.constant 0 : i32
    %c0_i32_1 = arith.constant 0 : i32
    return %c0_i32, %c0_i32_0 : i32, i32
  }
  func.func @transform_5(%arg0: i32) -> (i32, i32) {
    %c0_i32 = arith.constant 0 : i32
    %c0_i32_0 = arith.constant 0 : i32
    %c0_i32_1 = arith.constant 0 : i32
    return %c0_i32, %c0_i32_0 : i32, i32
  }
  func.func @transform_6(%arg0: i32) -> (i32, i32) {
    %c0_i32 = arith.constant 0 : i32
    %c0_i32_0 = arith.constant 0 : i32
    %c0_i32_1 = arith.constant 0 : i32
    return %c0_i32, %c0_i32_0 : i32, i32
  }
  func.func @transform_7(%arg0: i32) -> (i32, i32) {
    %c0_i32 = arith.constant 0 : i32
    %c0_i32_0 = arith.constant 0 : i32
    %c0_i32_1 = arith.constant 0 : i32
    return %c0_i32, %c0_i32_0 : i32, i32
  }
  func.func @transform_8(%arg0: i32) -> (i32, i32) {
    %c0_i32 = arith.constant 0 : i32
    %c0_i32_0 = arith.constant 0 : i32
    %c0_i32_1 = arith.constant 0 : i32
    return %c0_i32, %c0_i32_0 : i32, i32
  }
  func.func @transform_9(%arg0: i32) -> (i32, i32) {
    %c0_i32 = arith.constant 0 : i32
    %c0_i32_0 = arith.constant 0 : i32
    %c0_i32_1 = arith.constant 0 : i32
    return %c0_i32, %c0_i32_0 : i32, i32
  }
  func.func @transform_10(%arg0: i32) -> (i32, i32) {
    %c0_i32 = arith.constant 0 : i32
    %c0_i32_0 = arith.constant 0 : i32
    %c0_i32_1 = arith.constant 0 : i32
    return %c0_i32, %c0_i32_0 : i32, i32
  }
  func.func @transform_11(%arg0: i32) -> (i32, i32) {
    %c0_i32 = arith.constant 0 : i32
    %c0_i32_0 = arith.constant 0 : i32
    %c0_i32_1 = arith.constant 0 : i32
    return %c0_i32, %c0_i32_0 : i32, i32
  }
  func.func @transform_12(%arg0: i32) -> (i32, i32) {
    %c0_i32 = arith.constant 0 : i32
    %c0_i32_0 = arith.constant 0 : i32
    %c0_i32_1 = arith.constant 0 : i32
    return %c0_i32, %c0_i32_0 : i32, i32
  }
  func.func @transform_13(%arg0: i32) -> (i32, i32) {
    %c0_i32 = arith.constant 0 : i32
    %c0_i32_0 = arith.constant 0 : i32
    %c0_i32_1 = arith.constant 0 : i32
    return %c0_i32, %c0_i32_0 : i32, i32
  }
  func.func @transform_14(%arg0: i32) -> (i32, i32) {
    %c0_i32 = arith.constant 0 : i32
    %c0_i32_0 = arith.constant 0 : i32
    %c0_i32_1 = arith.constant 0 : i32
    return %c0_i32, %c0_i32_0 : i32, i32
  }
  func.func @transform_15(%arg0: i32) -> (i32, i32) {
    %c0_i32 = arith.constant 0 : i32
    %c0_i32_0 = arith.constant 0 : i32
    %c0_i32_1 = arith.constant 0 : i32
    return %c0_i32, %c0_i32_0 : i32, i32
  }
  func.func @transform_16(%arg0: i32) -> (i32, i32) {
    %c0_i32 = arith.constant 0 : i32
    %c0_i32_0 = arith.constant 0 : i32
    %c0_i32_1 = arith.constant 0 : i32
    return %c0_i32, %c0_i32_0 : i32, i32
  }
  func.func @transform_17(%arg0: i32) -> (i32, i32) {
    %c0_i32 = arith.constant 0 : i32
    %c0_i32_0 = arith.constant 0 : i32
    %c0_i32_1 = arith.constant 0 : i32
    return %c0_i32, %c0_i32_0 : i32, i32
  }
  func.func @transform_18(%arg0: i32) -> (i32, i32, i32) {
    %c0_i32 = arith.constant 0 : i32
    %c0_i32_0 = arith.constant 0 : i32
    %c0_i32_1 = arith.constant 0 : i32
    return %arg0, %c0_i32, %c0_i32_0 : i32, i32, i32
  }
}

module attributes {stable_mosaic.version = 11 : i64} {
  func.func @kernel(%arg0: i32, %arg1: memref<1x8x32xf32, #tpu.memory_space<vmem>>, %arg2: memref<1x1x8xf32, #tpu.memory_space<vmem>>, %arg3: memref<1x32xf32, #tpu.memory_space<vmem>>, %arg4: memref<1x32xf32, #tpu.memory_space<vmem>>, %arg5: memref<32x32xbf16, #tpu.memory_space<vmem>>, %arg6: memref<1x32xf32, #tpu.memory_space<vmem>>, %arg7: memref<32x32xbf16, #tpu.memory_space<vmem>>, %arg8: memref<1x32xf32, #tpu.memory_space<vmem>>, %arg9: memref<32x32xbf16, #tpu.memory_space<vmem>>, %arg10: memref<1x32xf32, #tpu.memory_space<vmem>>, %arg11: memref<32x32xbf16, #tpu.memory_space<vmem>>, %arg12: memref<1x32xf32, #tpu.memory_space<vmem>>, %arg13: memref<1x32xf32, #tpu.memory_space<vmem>>, %arg14: memref<1x32xf32, #tpu.memory_space<vmem>>, %arg15: memref<32x64xbf16, #tpu.memory_space<vmem>>, %arg16: memref<1x64xf32, #tpu.memory_space<vmem>>, %arg17: memref<64x32xbf16, #tpu.memory_space<vmem>>, %arg18: memref<1x32xf32, #tpu.memory_space<vmem>>, %arg19: memref<1x8x32xf32, #tpu.memory_space<vmem>>) attributes {dimension_semantics = [#tpu.dimension_semantics<parallel>], iteration_bounds = array<i64: 2>, scalar_prefetch = 0 : i64, scratch_operands = 0 : i64, tpu.core_type = #tpu.core_type<tc>, window_params = [{transform_indices = @transform_0, window_bounds = array<i64: 1, 8, 32>}, {transform_indices = @transform_1, window_bounds = array<i64: 1, 1, 8>}, {pipeline_mode = #tpu.pipeline_mode<synchronous>, transform_indices = @transform_2, window_bounds = array<i64: 1, 32>}, {pipeline_mode = #tpu.pipeline_mode<synchronous>, transform_indices = @transform_3, window_bounds = array<i64: 1, 32>}, {pipeline_mode = #tpu.pipeline_mode<synchronous>, transform_indices = @transform_4, window_bounds = array<i64: 32, 32>}, {pipeline_mode = #tpu.pipeline_mode<synchronous>, transform_indices = @transform_5, window_bounds = array<i64: 1, 32>}, {pipeline_mode = #tpu.pipeline_mode<synchronous>, transform_indices = @transform_6, window_bounds = array<i64: 32, 32>}, {pipeline_mode = #tpu.pipeline_mode<synchronous>, transform_indices = @transform_7, window_bounds = array<i64: 1, 32>}, {pipeline_mode = #tpu.pipeline_mode<synchronous>, transform_indices = @transform_8, window_bounds = array<i64: 32, 32>}, {pipeline_mode = #tpu.pipeline_mode<synchronous>, transform_indices = @transform_9, window_bounds = array<i64: 1, 32>}, {pipeline_mode = #tpu.pipeline_mode<synchronous>, transform_indices = @transform_10, window_bounds = array<i64: 32, 32>}, {pipeline_mode = #tpu.pipeline_mode<synchronous>, transform_indices = @transform_11, window_bounds = array<i64: 1, 32>}, {pipeline_mode = #tpu.pipeline_mode<synchronous>, transform_indices = @transform_12, window_bounds = array<i64: 1, 32>}, {pipeline_mode = #tpu.pipeline_mode<synchronous>, transform_indices = @transform_13, window_bounds = array<i64: 1, 32>}, {pipeline_mode = #tpu.pipeline_mode<synchronous>, transform_indices = @transform_14, window_bounds = array<i64: 32, 64>}, {pipeline_mode = #tpu.pipeline_mode<synchronous>, transform_indices = @transform_15, window_bounds = array<i64: 1, 64>}, {pipeline_mode = #tpu.pipeline_mode<synchronous>, transform_indices = @transform_16, window_bounds = array<i64: 64, 32>}, {pipeline_mode = #tpu.pipeline_mode<synchronous>, transform_indices = @transform_17, window_bounds = array<i64: 1, 32>}, {transform_indices = @transform_18, window_bounds = array<i64: 1, 8, 32>}]} {
    %c0 = arith.constant 0 : index
    %c0_0 = arith.constant 0 : index
    %c0_1 = arith.constant 0 : index
    %0 = vector.load %arg1[%c0, %c0_0, %c0_1] : memref<1x8x32xf32, #tpu.memory_space<vmem>>, vector<1x8x32xf32>
    %1 = vector.shape_cast %0 : vector<1x8x32xf32> to vector<8x32xf32>
    %c0_2 = arith.constant 0 : index
    %c0_3 = arith.constant 0 : index
    %c0_4 = arith.constant 0 : index
    %2 = vector.load %arg2[%c0_2, %c0_3, %c0_4] : memref<1x1x8xf32, #tpu.memory_space<vmem>>, vector<1x1x8xf32>
    %c0_5 = arith.constant 0 : index
    %c0_6 = arith.constant 0 : index
    %3 = vector.load %arg3[%c0_5, %c0_6] : memref<1x32xf32, #tpu.memory_space<vmem>>, vector<1x32xf32>
    %c0_7 = arith.constant 0 : index
    %c0_8 = arith.constant 0 : index
    %4 = vector.load %arg4[%c0_7, %c0_8] : memref<1x32xf32, #tpu.memory_space<vmem>>, vector<1x32xf32>
    %cst = arith.constant dense<0.000000e+00> : vector<8xf32>
    %5 = vector.multi_reduction <add>, %1, %cst [1] : vector<8x32xf32> to vector<8xf32>
    %6 = vector.shape_cast %5 : vector<8xf32> to vector<8x1xf32>
    %cst_9 = arith.constant 3.200000e+01 : f32
    %7 = vector.broadcast %cst_9 : f32 to vector<8x1xf32>
    %8 = arith.divf %6, %7 : vector<8x1xf32>
    %9 = vector.broadcast %8 : vector<8x1xf32> to vector<8x32xf32>
    %10 = arith.subf %1, %9 : vector<8x32xf32>
    %11 = arith.mulf %10, %10 : vector<8x32xf32>
    %cst_10 = arith.constant dense<0.000000e+00> : vector<8xf32>
    %12 = vector.multi_reduction <add>, %11, %cst_10 [1] : vector<8x32xf32> to vector<8xf32>
    %13 = vector.shape_cast %12 : vector<8xf32> to vector<8x1xf32>
    %cst_11 = arith.constant 3.100000e+01 : f32
    %14 = vector.broadcast %cst_11 : f32 to vector<8x1xf32>
    %15 = arith.divf %13, %14 : vector<8x1xf32>
    %16 = math.sqrt %15 : vector<8x1xf32>
    %cst_12 = arith.constant 9.99999997E-7 : f32
    %17 = vector.broadcast %cst_12 : f32 to vector<8x1xf32>
    %18 = arith.addf %16, %17 : vector<8x1xf32>
    %19 = tpu.reciprocal %18 {approx = true} : vector<8x1xf32> -> vector<8x1xf32>
    %20 = vector.broadcast %8 : vector<8x1xf32> to vector<8x32xf32>
    %21 = arith.subf %1, %20 : vector<8x32xf32>
    %22 = vector.broadcast %3 : vector<1x32xf32> to vector<8x32xf32>
    %23 = arith.mulf %22, %21 : vector<8x32xf32>
    %24 = vector.broadcast %19 : vector<8x1xf32> to vector<8x32xf32>
    %25 = arith.mulf %23, %24 : vector<8x32xf32>
    %26 = vector.broadcast %4 : vector<1x32xf32> to vector<8x32xf32>
    %27 = arith.addf %25, %26 : vector<8x32xf32>
    %28 = arith.truncf %27 : vector<8x32xf32> to vector<8x32xbf16>
    %c0_13 = arith.constant 0 : index
    %c0_14 = arith.constant 0 : index
    %29 = vector.load %arg5[%c0_13, %c0_14] : memref<32x32xbf16, #tpu.memory_space<vmem>>, vector<32x32xbf16>
    %cst_15 = arith.constant dense<0.000000e+00> : vector<8x32xf32>
    %30 = tpu.matmul %28, %29, %cst_15 {dimension_numbers = #tpu.dot_dimension_numbers<[1], [0], [0], [1], [0, 0, 1, 1], [], []>} : vector<8x32xbf16>, vector<32x32xbf16>, vector<8x32xf32> -> vector<8x32xf32>
    %c0_16 = arith.constant 0 : index
    %c0_17 = arith.constant 0 : index
    %31 = vector.load %arg6[%c0_16, %c0_17] : memref<1x32xf32, #tpu.memory_space<vmem>>, vector<1x32xf32>
    %32 = vector.broadcast %31 : vector<1x32xf32> to vector<8x32xf32>
    %33 = arith.addf %30, %32 : vector<8x32xf32>
    %34 = arith.truncf %33 : vector<8x32xf32> to vector<8x32xbf16>
    %c0_18 = arith.constant 0 : index
    %c0_19 = arith.constant 0 : index
    %35 = vector.load %arg7[%c0_18, %c0_19] : memref<32x32xbf16, #tpu.memory_space<vmem>>, vector<32x32xbf16>
    %cst_20 = arith.constant dense<0.000000e+00> : vector<8x32xf32>
    %36 = tpu.matmul %28, %35, %cst_20 {dimension_numbers = #tpu.dot_dimension_numbers<[1], [0], [0], [1], [0, 0, 1, 1], [], []>} : vector<8x32xbf16>, vector<32x32xbf16>, vector<8x32xf32> -> vector<8x32xf32>
    %c0_21 = arith.constant 0 : index
    %c0_22 = arith.constant 0 : index
    %37 = vector.load %arg8[%c0_21, %c0_22] : memref<1x32xf32, #tpu.memory_space<vmem>>, vector<1x32xf32>
    %38 = vector.broadcast %37 : vector<1x32xf32> to vector<8x32xf32>
    %39 = arith.addf %36, %38 : vector<8x32xf32>
    %40 = arith.truncf %39 : vector<8x32xf32> to vector<8x32xbf16>
    %c0_23 = arith.constant 0 : index
    %c0_24 = arith.constant 0 : index
    %41 = vector.load %arg9[%c0_23, %c0_24] : memref<32x32xbf16, #tpu.memory_space<vmem>>, vector<32x32xbf16>
    %cst_25 = arith.constant dense<0.000000e+00> : vector<8x32xf32>
    %42 = tpu.matmul %28, %41, %cst_25 {dimension_numbers = #tpu.dot_dimension_numbers<[1], [0], [0], [1], [0, 0, 1, 1], [], []>} : vector<8x32xbf16>, vector<32x32xbf16>, vector<8x32xf32> -> vector<8x32xf32>
    %c0_26 = arith.constant 0 : index
    %c0_27 = arith.constant 0 : index
    %43 = vector.load %arg10[%c0_26, %c0_27] : memref<1x32xf32, #tpu.memory_space<vmem>>, vector<1x32xf32>
    %44 = vector.broadcast %43 : vector<1x32xf32> to vector<8x32xf32>
    %45 = arith.addf %42, %44 : vector<8x32xf32>
    %46 = arith.truncf %45 : vector<8x32xf32> to vector<8x32xbf16>
    %47 = vector.extract_strided_slice %34 {offsets = [0, 0], sizes = [8, 8], strides = [1, 1]} : vector<8x32xbf16> to vector<8x8xbf16>
    %48 = vector.shape_cast %47 : vector<8x8xbf16> to vector<1x8x8xbf16>
    %49 = vector.extract_strided_slice %34 {offsets = [0, 8], sizes = [8, 8], strides = [1, 1]} : vector<8x32xbf16> to vector<8x8xbf16>
    %50 = vector.shape_cast %49 : vector<8x8xbf16> to vector<1x8x8xbf16>
    %51 = vector.extract_strided_slice %34 {offsets = [0, 16], sizes = [8, 8], strides = [1, 1]} : vector<8x32xbf16> to vector<8x8xbf16>
    %52 = vector.shape_cast %51 : vector<8x8xbf16> to vector<1x8x8xbf16>
    %53 = vector.extract_strided_slice %34 {offsets = [0, 24], sizes = [8, 8], strides = [1, 1]} : vector<8x32xbf16> to vector<8x8xbf16>
    %54 = vector.shape_cast %53 : vector<8x8xbf16> to vector<1x8x8xbf16>
    %55 = tpu.concatenate %48, %50, %52, %54 in 0 : vector<1x8x8xbf16>, vector<1x8x8xbf16>, vector<1x8x8xbf16>, vector<1x8x8xbf16> -> vector<4x8x8xbf16>
    %56 = vector.extract_strided_slice %40 {offsets = [0, 0], sizes = [8, 8], strides = [1, 1]} : vector<8x32xbf16> to vector<8x8xbf16>
    %57 = vector.shape_cast %56 : vector<8x8xbf16> to vector<1x8x8xbf16>
    %58 = vector.extract_strided_slice %40 {offsets = [0, 8], sizes = [8, 8], strides = [1, 1]} : vector<8x32xbf16> to vector<8x8xbf16>
    %59 = vector.shape_cast %58 : vector<8x8xbf16> to vector<1x8x8xbf16>
    %60 = vector.extract_strided_slice %40 {offsets = [0, 16], sizes = [8, 8], strides = [1, 1]} : vector<8x32xbf16> to vector<8x8xbf16>
    %61 = vector.shape_cast %60 : vector<8x8xbf16> to vector<1x8x8xbf16>
    %62 = vector.extract_strided_slice %40 {offsets = [0, 24], sizes = [8, 8], strides = [1, 1]} : vector<8x32xbf16> to vector<8x8xbf16>
    %63 = vector.shape_cast %62 : vector<8x8xbf16> to vector<1x8x8xbf16>
    %64 = tpu.concatenate %57, %59, %61, %63 in 0 : vector<1x8x8xbf16>, vector<1x8x8xbf16>, vector<1x8x8xbf16>, vector<1x8x8xbf16> -> vector<4x8x8xbf16>
    %65 = vector.extract_strided_slice %46 {offsets = [0, 0], sizes = [8, 8], strides = [1, 1]} : vector<8x32xbf16> to vector<8x8xbf16>
    %66 = vector.shape_cast %65 : vector<8x8xbf16> to vector<1x8x8xbf16>
    %67 = vector.extract_strided_slice %46 {offsets = [0, 8], sizes = [8, 8], strides = [1, 1]} : vector<8x32xbf16> to vector<8x8xbf16>
    %68 = vector.shape_cast %67 : vector<8x8xbf16> to vector<1x8x8xbf16>
    %69 = vector.extract_strided_slice %46 {offsets = [0, 16], sizes = [8, 8], strides = [1, 1]} : vector<8x32xbf16> to vector<8x8xbf16>
    %70 = vector.shape_cast %69 : vector<8x8xbf16> to vector<1x8x8xbf16>
    %71 = vector.extract_strided_slice %46 {offsets = [0, 24], sizes = [8, 8], strides = [1, 1]} : vector<8x32xbf16> to vector<8x8xbf16>
    %72 = vector.shape_cast %71 : vector<8x8xbf16> to vector<1x8x8xbf16>
    %73 = tpu.concatenate %66, %68, %70, %72 in 0 : vector<1x8x8xbf16>, vector<1x8x8xbf16>, vector<1x8x8xbf16>, vector<1x8x8xbf16> -> vector<4x8x8xbf16>
    "tpu.trace_start"() <{level = 10 : i32, message = "bqd,bkd->bqk"}> : () -> ()
    %cst_28 = arith.constant dense<0.000000e+00> : vector<4x8x8xf32>
    %74 = tpu.matmul %55, %64, %cst_28 {dimension_numbers = #tpu.dot_dimension_numbers<[2], [2], [1], [1], [0, 0, 0, 1, 1, 1], [0], [0]>} : vector<4x8x8xbf16>, vector<4x8x8xbf16>, vector<4x8x8xf32> -> vector<4x8x8xf32>
    "tpu.trace_stop"() : () -> ()
    %cst_29 = arith.constant 0.353553385 : f32
    %75 = vector.broadcast %cst_29 : f32 to vector<4x8x8xf32>
    %76 = arith.mulf %74, %75 : vector<4x8x8xf32>
    %77 = vector.shape_cast %76 : vector<4x8x8xf32> to vector<4x1x8x8xf32>
    %78 = vector.shape_cast %2 : vector<1x1x8xf32> to vector<1x1x1x8xf32>
    %79 = vector.broadcast %78 : vector<1x1x1x8xf32> to vector<4x1x8x8xf32>
    %80 = arith.addf %77, %79 : vector<4x1x8x8xf32>
    %81 = vector.shape_cast %80 : vector<4x1x8x8xf32> to vector<4x8x8xf32>
    %cst_30 = arith.constant dense<0xFF800000> : vector<4x8xf32>
    %82 = vector.multi_reduction <maximumf>, %81, %cst_30 [2] : vector<4x8x8xf32> to vector<4x8xf32>
    %83 = vector.shape_cast %82 : vector<4x8xf32> to vector<4x8x1xf32>
    %84 = vector.broadcast %83 : vector<4x8x1xf32> to vector<4x8x8xf32>
    %85 = arith.subf %81, %84 : vector<4x8x8xf32>
    %86 = math.exp %85 : vector<4x8x8xf32>
    %cst_31 = arith.constant dense<0.000000e+00> : vector<4x8xf32>
    %87 = vector.multi_reduction <add>, %86, %cst_31 [2] : vector<4x8x8xf32> to vector<4x8xf32>
    %88 = vector.shape_cast %87 : vector<4x8xf32> to vector<4x8x1xf32>
    %89 = tpu.reciprocal %88 {approx = true} : vector<4x8x1xf32> -> vector<4x8x1xf32>
    %90 = vector.broadcast %89 : vector<4x8x1xf32> to vector<4x8x8xf32>
    %91 = arith.mulf %86, %90 : vector<4x8x8xf32>
    %92 = arith.truncf %91 : vector<4x8x8xf32> to vector<4x8x8xbf16>
    "tpu.trace_start"() <{level = 10 : i32, message = "bqk,bkd->bqd"}> : () -> ()
    %cst_32 = arith.constant dense<0.000000e+00> : vector<4x8x8xf32>
    %93 = tpu.matmul %92, %73, %cst_32 {dimension_numbers = #tpu.dot_dimension_numbers<[2], [1], [1], [2], [0, 0, 0, 1, 1, 2], [0], [0]>} : vector<4x8x8xbf16>, vector<4x8x8xbf16>, vector<4x8x8xf32> -> vector<4x8x8xf32>
    "tpu.trace_stop"() : () -> ()
    %94 = vector.extract_strided_slice %93 {offsets = [0, 0, 0], sizes = [1, 8, 8], strides = [1, 1, 1]} : vector<4x8x8xf32> to vector<1x8x8xf32>
    %95 = vector.shape_cast %94 : vector<1x8x8xf32> to vector<8x8xf32>
    %96 = vector.extract_strided_slice %93 {offsets = [1, 0, 0], sizes = [1, 8, 8], strides = [1, 1, 1]} : vector<4x8x8xf32> to vector<1x8x8xf32>
    %97 = vector.shape_cast %96 : vector<1x8x8xf32> to vector<8x8xf32>
    %98 = vector.extract_strided_slice %93 {offsets = [2, 0, 0], sizes = [1, 8, 8], strides = [1, 1, 1]} : vector<4x8x8xf32> to vector<1x8x8xf32>
    %99 = vector.shape_cast %98 : vector<1x8x8xf32> to vector<8x8xf32>
    %100 = vector.extract_strided_slice %93 {offsets = [3, 0, 0], sizes = [1, 8, 8], strides = [1, 1, 1]} : vector<4x8x8xf32> to vector<1x8x8xf32>
    %101 = vector.shape_cast %100 : vector<1x8x8xf32> to vector<8x8xf32>
    %102 = tpu.concatenate %95, %97, %99, %101 in 1 : vector<8x8xf32>, vector<8x8xf32>, vector<8x8xf32>, vector<8x8xf32> -> vector<8x32xf32>
    %103 = arith.truncf %102 : vector<8x32xf32> to vector<8x32xbf16>
    %c0_33 = arith.constant 0 : index
    %c0_34 = arith.constant 0 : index
    %104 = vector.load %arg11[%c0_33, %c0_34] : memref<32x32xbf16, #tpu.memory_space<vmem>>, vector<32x32xbf16>
    %cst_35 = arith.constant dense<0.000000e+00> : vector<8x32xf32>
    %105 = tpu.matmul %103, %104, %cst_35 {dimension_numbers = #tpu.dot_dimension_numbers<[1], [0], [0], [1], [0, 0, 1, 1], [], []>} : vector<8x32xbf16>, vector<32x32xbf16>, vector<8x32xf32> -> vector<8x32xf32>
    %c0_36 = arith.constant 0 : index
    %c0_37 = arith.constant 0 : index
    %106 = vector.load %arg12[%c0_36, %c0_37] : memref<1x32xf32, #tpu.memory_space<vmem>>, vector<1x32xf32>
    %107 = vector.broadcast %106 : vector<1x32xf32> to vector<8x32xf32>
    %108 = arith.addf %105, %107 : vector<8x32xf32>
    %109 = arith.addf %1, %108 : vector<8x32xf32>
    %c0_38 = arith.constant 0 : index
    %c0_39 = arith.constant 0 : index
    %110 = vector.load %arg13[%c0_38, %c0_39] : memref<1x32xf32, #tpu.memory_space<vmem>>, vector<1x32xf32>
    %c0_40 = arith.constant 0 : index
    %c0_41 = arith.constant 0 : index
    %111 = vector.load %arg14[%c0_40, %c0_41] : memref<1x32xf32, #tpu.memory_space<vmem>>, vector<1x32xf32>
    %cst_42 = arith.constant dense<0.000000e+00> : vector<8xf32>
    %112 = vector.multi_reduction <add>, %109, %cst_42 [1] : vector<8x32xf32> to vector<8xf32>
    %113 = vector.shape_cast %112 : vector<8xf32> to vector<8x1xf32>
    %cst_43 = arith.constant 3.200000e+01 : f32
    %114 = vector.broadcast %cst_43 : f32 to vector<8x1xf32>
    %115 = arith.divf %113, %114 : vector<8x1xf32>
    %116 = vector.broadcast %115 : vector<8x1xf32> to vector<8x32xf32>
    %117 = arith.subf %109, %116 : vector<8x32xf32>
    %118 = arith.mulf %117, %117 : vector<8x32xf32>
    %cst_44 = arith.constant dense<0.000000e+00> : vector<8xf32>
    %119 = vector.multi_reduction <add>, %118, %cst_44 [1] : vector<8x32xf32> to vector<8xf32>
    %120 = vector.shape_cast %119 : vector<8xf32> to vector<8x1xf32>
    %cst_45 = arith.constant 3.100000e+01 : f32
    %121 = vector.broadcast %cst_45 : f32 to vector<8x1xf32>
    %122 = arith.divf %120, %121 : vector<8x1xf32>
    %123 = math.sqrt %122 : vector<8x1xf32>
    %cst_46 = arith.constant 9.99999997E-7 : f32
    %124 = vector.broadcast %cst_46 : f32 to vector<8x1xf32>
    %125 = arith.addf %123, %124 : vector<8x1xf32>
    %126 = tpu.reciprocal %125 {approx = true} : vector<8x1xf32> -> vector<8x1xf32>
    %127 = vector.broadcast %115 : vector<8x1xf32> to vector<8x32xf32>
    %128 = arith.subf %109, %127 : vector<8x32xf32>
    %129 = vector.broadcast %110 : vector<1x32xf32> to vector<8x32xf32>
    %130 = arith.mulf %129, %128 : vector<8x32xf32>
    %131 = vector.broadcast %126 : vector<8x1xf32> to vector<8x32xf32>
    %132 = arith.mulf %130, %131 : vector<8x32xf32>
    %133 = vector.broadcast %111 : vector<1x32xf32> to vector<8x32xf32>
    %134 = arith.addf %132, %133 : vector<8x32xf32>
    %135 = arith.truncf %134 : vector<8x32xf32> to vector<8x32xbf16>
    %c0_47 = arith.constant 0 : index
    %c0_48 = arith.constant 0 : index
    %136 = vector.load %arg15[%c0_47, %c0_48] : memref<32x64xbf16, #tpu.memory_space<vmem>>, vector<32x64xbf16>
    %cst_49 = arith.constant dense<0.000000e+00> : vector<8x64xf32>
    %137 = tpu.matmul %135, %136, %cst_49 {dimension_numbers = #tpu.dot_dimension_numbers<[1], [0], [0], [1], [0, 0, 1, 1], [], []>} : vector<8x32xbf16>, vector<32x64xbf16>, vector<8x64xf32> -> vector<8x64xf32>
    %c0_50 = arith.constant 0 : index
    %c0_51 = arith.constant 0 : index
    %138 = vector.load %arg16[%c0_50, %c0_51] : memref<1x64xf32, #tpu.memory_space<vmem>>, vector<1x64xf32>
    %139 = vector.broadcast %138 : vector<1x64xf32> to vector<8x64xf32>
    %140 = arith.addf %137, %139 : vector<8x64xf32>
    %cst_52 = arith.constant 0.000000e+00 : f32
    %141 = vector.broadcast %cst_52 : f32 to vector<8x64xf32>
    %142 = arith.maximumf %140, %141 : vector<8x64xf32>
    %143 = arith.truncf %142 : vector<8x64xf32> to vector<8x64xbf16>
    %c0_53 = arith.constant 0 : index
    %c0_54 = arith.constant 0 : index
    %144 = vector.load %arg17[%c0_53, %c0_54] : memref<64x32xbf16, #tpu.memory_space<vmem>>, vector<64x32xbf16>
    %cst_55 = arith.constant dense<0.000000e+00> : vector<8x32xf32>
    %145 = tpu.matmul %143, %144, %cst_55 {dimension_numbers = #tpu.dot_dimension_numbers<[1], [0], [0], [1], [0, 0, 1, 1], [], []>} : vector<8x64xbf16>, vector<64x32xbf16>, vector<8x32xf32> -> vector<8x32xf32>
    %c0_56 = arith.constant 0 : index
    %c0_57 = arith.constant 0 : index
    %146 = vector.load %arg18[%c0_56, %c0_57] : memref<1x32xf32, #tpu.memory_space<vmem>>, vector<1x32xf32>
    %147 = vector.broadcast %146 : vector<1x32xf32> to vector<8x32xf32>
    %148 = arith.addf %145, %147 : vector<8x32xf32>
    %149 = arith.addf %109, %148 : vector<8x32xf32>
    %150 = vector.shape_cast %149 : vector<8x32xf32> to vector<1x8x32xf32>
    %c0_58 = arith.constant 0 : index
    %c0_59 = arith.constant 0 : index
    %c0_60 = arith.constant 0 : index
    %151 = vector.load %arg19[%c0_58, %c0_59, %c0_60] : memref<1x8x32xf32, #tpu.memory_space<vmem>>, vector<1x8x32xf32>
    tpu.vector_store %arg19[%c0_58, %c0_59, %c0_60], %150 {strides = array<i32>} : memref<1x8x32xf32, #tpu.memory_space<vmem>>, vector<1x8x32xf32>,
    return
  }
  func.func @transform_0(%arg0: i32) -> (i32, i32, i32) {
    %c0_i32 = arith.constant 0 : i32
    %c0_i32_0 = arith.constant 0 : i32
    %c0_i32_1 = arith.constant 0 : i32
    return %arg0, %c0_i32, %c0_i32_0 : i32, i32, i32
  }
  func.func @transform_1(%arg0: i32) -> (i32, i32, i32) {
    %c0_i32 = arith.constant 0 : i32
    %c0_i32_0 = arith.constant 0 : i32
    %c0_i32_1 = arith.constant 0 : i32
    return %arg0, %c0_i32, %c0_i32_0 : i32, i32, i32
  }
  func.func @transform_2(%arg0: i32) -> (i32, i32) {
    %c0_i32 = arith.constant 0 : i32
    %c0_i32_0 = arith.constant 0 : i32
    %c0_i32_1 = arith.constant 0 : i32
    return %c0_i32, %c0_i32_0 : i32, i32
  }
  func.func @transform_3(%arg0: i32) -> (i32, i32) {
    %c0_i32 = arith.constant 0 : i32
    %c0_i32_0 = arith.constant 0 : i32
    %c0_i32_1 = arith.constant 0 : i32
    return %c0_i32, %c0_i32_0 : i32, i32
  }
  func.func @transform_4(%arg0: i32) -> (i32, i32) {
    %c0_i32 = arith.constant 0 : i32
    %c0_i32_0 = arith.constant 0 : i32
    %c0_i32_1 = arith.constant 0 : i32
    return %c0_i32, %c0_i32_0 : i32, i32
  }
  func.func @transform_5(%arg0: i32) -> (i32, i32) {
    %c0_i32 = arith.constant 0 : i32
    %c0_i32_0 = arith.constant 0 : i32
    %c0_i32_1 = arith.constant 0 : i32
    return %c0_i32, %c0_i32_0 : i32, i32
  }
  func.func @transform_6(%arg0: i32) -> (i32, i32) {
    %c0_i32 = arith.constant 0 : i32
    %c0_i32_0 = arith.constant 0 : i32
    %c0_i32_1 = arith.constant 0 : i32
    return %c0_i32, %c0_i32_0 : i32, i32
  }
  func.func @transform_7(%arg0: i32) -> (i32, i32) {
    %c0_i32 = arith.constant 0 : i32
    %c0_i32_0 = arith.constant 0 : i32
    %c0_i32_1 = arith.constant 0 : i32
    return %c0_i32, %c0_i32_0 : i32, i32
  }
  func.func @transform_8(%arg0: i32) -> (i32, i32) {
    %c0_i32 = arith.constant 0 : i32
    %c0_i32_0 = arith.constant 0 : i32
    %c0_i32_1 = arith.constant 0 : i32
    return %c0_i32, %c0_i32_0 : i32, i32
  }
  func.func @transform_9(%arg0: i32) -> (i32, i32) {
    %c0_i32 = arith.constant 0 : i32
    %c0_i32_0 = arith.constant 0 : i32
    %c0_i32_1 = arith.constant 0 : i32
    return %c0_i32, %c0_i32_0 : i32, i32
  }
  func.func @transform_10(%arg0: i32) -> (i32, i32) {
    %c0_i32 = arith.constant 0 : i32
    %c0_i32_0 = arith.constant 0 : i32
    %c0_i32_1 = arith.constant 0 : i32
    return %c0_i32, %c0_i32_0 : i32, i32
  }
  func.func @transform_11(%arg0: i32) -> (i32, i32) {
    %c0_i32 = arith.constant 0 : i32
    %c0_i32_0 = arith.constant 0 : i32
    %c0_i32_1 = arith.constant 0 : i32
    return %c0_i32, %c0_i32_0 : i32, i32
  }
  func.func @transform_12(%arg0: i32) -> (i32, i32) {
    %c0_i32 = arith.constant 0 : i32
    %c0_i32_0 = arith.constant 0 : i32
    %c0_i32_1 = arith.constant 0 : i32
    return %c0_i32, %c0_i32_0 : i32, i32
  }
  func.func @transform_13(%arg0: i32) -> (i32, i32) {
    %c0_i32 = arith.constant 0 : i32
    %c0_i32_0 = arith.constant 0 : i32
    %c0_i32_1 = arith.constant 0 : i32
    return %c0_i32, %c0_i32_0 : i32, i32
  }
  func.func @transform_14(%arg0: i32) -> (i32, i32) {
    %c0_i32 = arith.constant 0 : i32
    %c0_i32_0 = arith.constant 0 : i32
    %c0_i32_1 = arith.constant 0 : i32
    return %c0_i32, %c0_i32_0 : i32, i32
  }
  func.func @transform_15(%arg0: i32) -> (i32, i32) {
    %c0_i32 = arith.constant 0 : i32
    %c0_i32_0 = arith.constant 0 : i32
    %c0_i32_1 = arith.constant 0 : i32
    return %c0_i32, %c0_i32_0 : i32, i32
  }
  func.func @transform_16(%arg0: i32) -> (i32, i32) {
    %c0_i32 = arith.constant 0 : i32
    %c0_i32_0 = arith.constant 0 : i32
    %c0_i32_1 = arith.constant 0 : i32
    return %c0_i32, %c0_i32_0 : i32, i32
  }
  func.func @transform_17(%arg0: i32) -> (i32, i32) {
    %c0_i32 = arith.constant 0 : i32
    %c0_i32_0 = arith.constant 0 : i32
    %c0_i32_1 = arith.constant 0 : i32
    return %c0_i32, %c0_i32_0 : i32, i32
  }
  func.func @transform_18(%arg0: i32) -> (i32, i32, i32) {
    %c0_i32 = arith.constant 0 : i32
    %c0_i32_0 = arith.constant 0 : i32
    %c0_i32_1 = arith.constant 0 : i32
    return %arg0, %c0_i32, %c0_i32_0 : i32, i32, i32
  }
}

</mosaic_0001>

<bundles_post_ra>
// kernel: tpu_custom_call.1
= control target key start
LH: loop header
LB: loop body
LE: loop exit
PB: predicated region body
PF: predicated region fallthrough
CT: control target
= control target key end

     0   :  { %s3982_s0 = inlined_call_operand.hbm [shape: f32[2,8,32], index: 0, kind: input, shape index: {}]   ;;  %s3983_s1 = inlined_call_operand.hbm [shape: f32[2,1,8], index: 1, kind: input, shape index: {}]   ;;  %s3984_s2 = inlined_call_operand.hbm [shape: f32[1,32], index: 2, kind: input, shape index: {}]   ;;  %s3985_s3 = inlined_call_operand.hbm [shape: f32[1,32], index: 3, kind: input, shape index: {}]   ;;  %s3986_s4 = inlined_call_operand.hbm [shape: bf16[32,32], index: 4, kind: input, shape index: {}]   ;;  %s3987_s5 = inlined_call_operand.hbm [shape: f32[1,32], index: 5, kind: input, shape index: {}]   ;;  %s3988_s6 = inlined_call_operand.hbm [shape: bf16[32,32], index: 6, kind: input, shape index: {}]   ;;  %s3989_s7 = inlined_call_operand.hbm [shape: f32[1,32], index: 7, kind: input, shape index: {}]   ;;  %s3990_s8 = inlined_call_operand.hbm [shape: bf16[32,32], index: 8, kind: input, shape index: {}]   ;;  %s3991_s9 = inlined_call_operand.hbm [shape: f32[1,32], index: 9, kind: input, shape index: {}]   ;;  %s3992_s10 = inlined_call_operand.hbm [shape: bf16[32,32], index: 10, kind: input, shape index: {}]   ;;  %s3993_s11 = inlined_call_operand.hbm [shape: f32[1,32], index: 11, kind: input, shape index: {}]   ;;  %s3994_s12 = inlined_call_operand.hbm [shape: f32[1,32], index: 12, kind: input, shape index: {}]   ;;  %s3995_s13 = inlined_call_operand.hbm [shape: f32[1,32], index: 13, kind: input, shape index: {}]   ;;  %s3996_s14 = inlined_call_operand.hbm [shape: bf16[32,64], index: 14, kind: input, shape index: {}]   ;;  %s3997_s15 = inlined_call_operand.hbm [shape: f32[1,64], index: 15, kind: input, shape index: {}]   ;;  %s3998_s16 = inlined_call_operand.hbm [shape: bf16[64,32], index: 16, kind: input, shape index: {}]   ;;  %s3999_s17 = inlined_call_operand.hbm [shape: f32[1,32], index: 17, kind: input, shape index: {}]   ;;  %s4000_s18 = inlined_call_operand.hbm [shape: f32[2,8,32], index: 18, kind: output, shape index: {}]  }
   0x1   :  { %4018 = sst [smem:[#allocation50_spill]] %s3982_s0 }
   0x2   :  { %4019 = sst [smem:[#allocation51_spill]] %s3983_s1 }
   0x3   :  { %4020 = sst [smem:[#allocation52_spill]] %s3984_s2 }
   0x4   :  { %4021 = sst [smem:[#allocation53_spill]] %s3985_s3 }
   0x5   :  { %4022 = sst [smem:[#allocation54_spill]] %s3986_s4 }
   0x6   :  { %4023 = sst [smem:[#allocation55_spill]] %s3987_s5 }
   0x7   :  { %4024 = sst [smem:[#allocation56_spill]] %s3988_s6 }
   0x8   :  { %4025 = sst [smem:[#allocation57_spill]] %s3989_s7 }
   0x9   :  { %4026 = sst [smem:[#allocation58_spill]] %s3990_s8 }
   0xa   :  { %4027 = sst [smem:[#allocation59_spill]] %s4000_s18 }
   0xb   :  { %23 = vsyncpa [#allocation3], 0 }
   0xc   :  { %25 = vsyncpa [#allocation3 + $0x1], 0 }
   0xd   :  { %26 = vsyncpa [#allocation6], 0 }
   0xe   :  { %28 = vsyncpa [#allocation6 + $0x1], 0 }
   0xf   :  { %29 = vsyncpa [#allocation9], 0 }
  0x10   :  { %30 = vsyncpa [#allocation12], 0 }
  0x11   :  { %31 = vsyncpa [#allocation15], 0 }
  0x12   :  { %32 = vsyncpa [#allocation18], 0 }
  0x13   :  { %33 = vsyncpa [#allocation21], 0 }
  0x14   :  { %34 = vsyncpa [#allocation24], 0 }
  0x15   :  { %35 = vsyncpa [#allocation27], 0 }
  0x16   :  { %36 = vsyncpa [#allocation30], 0 }
  0x17   :  { %37 = vsyncpa [#allocation4], 0 }
  0x18   :  { %39 = vsyncpa [#allocation4 + $0x1], 0  ;;  %s3279_s27 = smov 0   ;;  %s3281_s28 = smov 0  }
  0x19   :  { %s3283_s29 = smov 0   ;;  %s3285_s30 = smov 0  }
  0x1a LB: > { %4028 = sst [smem:[#allocation44_spill]] %s3141_s27  ;;  %s3155_s0 = smov [#allocation7]   ;;  %s3153_s30 = sphi %s3285_s30, %s4090_s30   ;;  %s3149_s29 = sphi %s3283_s29, %s4089_s29   ;;  %s3145_s28 = sphi %s3281_s28, %s4088_s28   ;;  %s3141_s27 = sphi %s3279_s27, %s4087_s27  }
  0x1b   : > { %4029 = sst [smem:[#allocation45_spill]] %s3145_s28  ;;  %s477_s19 = sshll.u32 %s3155_s0, 4  ;;  %s3305_s19 = int_to_ptr.vmem [resolvable:$true] %s477_s19 }
  0x1c   : > { %4030 = sst [smem:[#allocation46_spill]] %s3149_s29  ;;  %s3300_s1 = sadd.s32 4294967295, %s3153_s30  }
  0x1d   : > { %4031 = sst [smem:[#allocation47_spill]] %s3153_s30  ;;  %p2060_p0 = scmp.ge.s32.totalorder %s3153_s30, 1 }
  0x1e   : > { %4032 = sst [smem:[#allocation48_spill]] %s3300_s1  ;;  %p4013_p1 = scmp.eq.s32.totalorder %s3300_s1, 0 }
  0x1f   : > { %p464_p2 = scmp.lt.s32.totalorder %s3153_s30, 3  ;;  %s3156_s21 = smov [#allocation8]  }
  0x20   : > { %s488_s22 = sshll.u32 %s3156_s21, 4  ;;  %s3157_s2 = smov [#allocation11]   ;;  %s3314_s22 = int_to_ptr.vmem [resolvable:$true] %s488_s22 }
  0x21   : > { %p3307_p3 = pnand %p2060_p0, %p464_p2  ;;  %s512_s23 = sshll.u32 %s3157_s2, 4  ;;  %s3322_s23 = int_to_ptr.vmem [resolvable:$true] %s512_s23 }
  0x22   : > { %s3158_s25 = smov [#allocation14]  }
  0x23   : > { %s4033_s20 = scalar_select %p3307_p3, 1, 0 }
  0x24   : > { %p2349_p5 = pneg %p3307_p3  ;;  %s3324_s26 = sshll.u32 %s3158_s25, 4  ;;  %s537_s26 = int_to_ptr.vmem [resolvable:$true] %s3324_s26 }
  0x25   : > { %4034 = sst [smem:[#allocation49_spill]] %s4033_s20  ;;  %s4036_s20 = sld [smem:[#allocation52_spill]] }
  0x26   : > { %p3318_p6 = pnand %p2349_p5, %p4013_p1 }
  0x28   : > { %p3334_p8 = pneg %p3318_p6 }
  0x2b   : > { %s2539_s27 = scalar_lea.hbm %s4036_s20, 16 }
  0x2c   : > { %p2540_p7 = scmp.ne.s32.totalorder %s4036_s20, %s2539_s27  ;;  %p2546_p11 = scmp.lt.u32.totalorder %s2539_s27, %s4036_s20 }
  0x2e   : > { %p2542_p9 = pnand %p3334_p8, %p2540_p7 }
  0x30   : > { %p2543_p10 = pneg %p2542_p9 }
  0x32   : > { %p2548_p12 = pnand %p2546_p11, %p2543_p10 }
  0x34   : > { %2551 = shalt.err (!%p2548_p12)
}
  0x35   : > { %s2552_s18 = scalar_lea.vmem %s3305_s19, 16  ;;  %s2559_s28 = scalar_lea.vmem %s3305_s19, 32 }
  0x36   : > { %p2553_p13 = scmp.ne.s32.totalorder %s3305_s19, %s2552_s18  ;;  %p2560_p5 = scmp.lt.s32.totalorder %s3305_s19, %s3305_s19 }
  0x37   : > { %p2561_p7 = scmp.lt.s32.totalorder %s2559_s28, %s2552_s18 }
  0x38   : > { %p2555_p0 = pnand %p2553_p13, %p3334_p8 }
  0x39   : > { %p2562_p9 = por %p2561_p7, %p2560_p5 }
  0x3a   : > { %p2556_p2 = pneg %p2555_p0 }
  0x3c   : > { %p2563_p4 = pnand %p2562_p9, %p2556_p2 }
  0x3e   : > { %2566 = shalt.err (!%p2563_p4)
}
  0x3f   : > { %2352 = dma.hbm_to_vmem [thread:$0]  (!%p3318_p6), %s4036_s20, 16, %s3305_s19, [#allocation6]  }
  0x40   : > { %s4038_s3 = sld [smem:[#allocation53_spill]] }
  0x46   : > { %s2567_s25 = scalar_lea.hbm %s4038_s3, 16 }
  0x47   : > { %p2568_p10 = scmp.ne.s32.totalorder %s4038_s3, %s2567_s25  ;;  %p2574_p4 = scmp.lt.u32.totalorder %s2567_s25, %s4038_s3 }
  0x49   : > { %p2570_p11 = pnand %p2568_p10, %p3334_p8 }
  0x4b   : > { %p2571_p12 = pneg %p2570_p11 }
  0x4d   : > { %p2576_p13 = pnand %p2574_p4, %p2571_p12 }
  0x4f   : > { %2579 = shalt.err (!%p2576_p13)
}
  0x50   : > { %s2580_s19 = scalar_lea.vmem %s3314_s22, 16  ;;  %s2587_s29 = scalar_lea.vmem %s3314_s22, 32 }
  0x51   : > { %p2581_p0 = scmp.ne.s32.totalorder %s3314_s22, %s2580_s19  ;;  %p2588_p7 = scmp.lt.s32.totalorder %s3314_s22, %s3314_s22 }
  0x52   : > { %p2589_p9 = scmp.lt.s32.totalorder %s2587_s29, %s2580_s19 }
  0x53   : > { %p2583_p2 = pnand %p2581_p0, %p3334_p8 }
  0x54   : > { %p2590_p10 = por %p2589_p9, %p2588_p7 }
  0x55   : > { %p2584_p5 = pneg %p2583_p2 }
  0x57   : > { %p2591_p11 = pnand %p2590_p10, %p2584_p5 }
  0x59   : > { %2594 = shalt.err (!%p2591_p11)
}
  0x5a   : > { %2355 = dma.hbm_to_vmem [thread:$0]  (!%p3318_p6), %s4038_s3, 16, %s3314_s22, [#allocation9]  }
  0x5b   : > { %s4039_s5 = sld [smem:[#allocation55_spill]] }
  0x61   : > { %s2595_s21 = scalar_lea.hbm %s4039_s5, 16 }
  0x62   : > { %p2596_p12 = scmp.ne.s32.totalorder %s4039_s5, %s2595_s21  ;;  %p2602_p0 = scmp.lt.u32.totalorder %s2595_s21, %s4039_s5 }
  0x64   : > { %p2598_p4 = pnand %p2596_p12, %p3334_p8 }
  0x66   : > { %p2599_p13 = pneg %p2598_p4 }
  0x68   : > { %p2604_p2 = pnand %p2602_p0, %p2599_p13 }
  0x6a   : > { %2607 = shalt.err (!%p2604_p2)
}
  0x6b   : > { %s2608_s22 = scalar_lea.vmem %s3322_s23, 16  ;;  %s2615_s29 = scalar_lea.vmem %s3322_s23, 32 }
  0x6c   : > { %p2609_p5 = scmp.ne.s32.totalorder %s3322_s23, %s2608_s22  ;;  %p2616_p10 = scmp.lt.s32.totalorder %s3322_s23, %s3322_s23 }
  0x6d   : > { %p2617_p11 = scmp.lt.s32.totalorder %s2615_s29, %s2608_s22 }
  0x6e   : > { %p2611_p7 = pnand %p2609_p5, %p3334_p8 }
  0x6f   : > { %p2618_p12 = por %p2617_p11, %p2616_p10 }
  0x70   : > { %p2612_p9 = pneg %p2611_p7 }
  0x72   : > { %p2619_p4 = pnand %p2618_p12, %p2612_p9 }
  0x74   : > { %2622 = shalt.err (!%p2619_p4)
}
  0x75   : > { %2361 = dma.hbm_to_vmem [thread:$0]  (!%p3318_p6), %s4039_s5, 16, %s3322_s23, [#allocation12]  }
  0x76   : > { %s3159_s1 = smov [#allocation17]   ;;  %s4040_s7 = sld [smem:[#allocation57_spill]] }
  0x77   : > { %s560_s0 = sshll.u32 %s3159_s1, 4  ;;  %s561_s0 = int_to_ptr.vmem [resolvable:$true] %s560_s0 }
  0x7c   : > { %s2623_s18 = scalar_lea.hbm %s4040_s7, 16 }
  0x7d   : > { %p2624_p13 = scmp.ne.s32.totalorder %s4040_s7, %s2623_s18  ;;  %p2630_p5 = scmp.lt.u32.totalorder %s2623_s18, %s4040_s7 }
  0x7f   : > { %p2626_p0 = pnand %p2624_p13, %p3334_p8 }
  0x81   : > { %p2627_p2 = pneg %p2626_p0 }
  0x83   : > { %p2632_p7 = pnand %p2630_p5, %p2627_p2 }
  0x85   : > { %2635 = shalt.err (!%p2632_p7)
}
  0x86   : > { %s2636_s23 = scalar_lea.vmem %s537_s26, 16  ;;  %s2643_s30 = scalar_lea.vmem %s537_s26, 32 }
  0x87   : > { %p2637_p9 = scmp.ne.s32.totalorder %s537_s26, %s2636_s23  ;;  %p2644_p12 = scmp.lt.s32.totalorder %s537_s26, %s537_s26 }
  0x88   : > { %p2645_p4 = scmp.lt.s32.totalorder %s2643_s30, %s2636_s23 }
  0x89   : > { %p2639_p10 = pnand %p2637_p9, %p3334_p8 }
  0x8a   : > { %p2646_p1 = por %p2645_p4, %p2644_p12 }
  0x8b   : > { %p2640_p11 = pneg %p2639_p10 }
  0x8d   : > { %p2647_p3 = pnand %p2646_p1, %p2640_p11 }
  0x8f   : > { %2650 = shalt.err (!%p2647_p3)
}
  0x90   : > { %2367 = dma.hbm_to_vmem [thread:$0]  (!%p3318_p6), %s4040_s7, 16, %s537_s26, [#allocation15]  }
  0x91   : > { %s2651_s18 = scalar_lea.hbm %s3991_s9, 16 }
  0x92   : > { %p2652_p13 = scmp.ne.s32.totalorder %s3991_s9, %s2651_s18  ;;  %p2658_p3 = scmp.lt.u32.totalorder %s2651_s18, %s3991_s9 }
  0x94   : > { %p2654_p0 = pnand %p2652_p13, %p3334_p8 }
  0x96   : > { %p2655_p1 = pneg %p2654_p0 }
  0x98   : > { %p2660_p2 = pnand %p2658_p3, %p2655_p1 }
  0x9a   : > { %2663 = shalt.err (!%p2660_p2)
}
  0x9b   : > { %s2664_s23 = scalar_lea.vmem %s561_s0, 16  ;;  %s2671_s26 = scalar_lea.vmem %s561_s0, 32 }
  0x9c   : > { %p2665_p5 = scmp.ne.s32.totalorder %s561_s0, %s2664_s23  ;;  %p2672_p10 = scmp.lt.s32.totalorder %s561_s0, %s561_s0 }
  0x9d   : > { %p2673_p11 = scmp.lt.s32.totalorder %s2671_s26, %s2664_s23 }
  0x9e   : > { %p2667_p7 = pnand %p2665_p5, %p3334_p8 }
  0x9f   : > { %p2674_p12 = por %p2673_p11, %p2672_p10 }
  0xa0   : > { %p2668_p9 = pneg %p2667_p7 }
  0xa2   : > { %p2675_p4 = pnand %p2674_p12, %p2668_p9 }
  0xa4   : > { %2678 = shalt.err (!%p2675_p4)
}
  0xa5   : > { %2373 = dma.hbm_to_vmem [thread:$0]  (!%p3318_p6), %s3991_s9, 16, %s561_s0, [#allocation18]  }
  0xa6   : > { %s3160_s1 = smov [#allocation20]   ;;  %s3161_s25 = smov [#allocation23]  }
  0xa7   : > { %s584_s21 = sshll.u32 %s3160_s1, 4  ;;  %s606_s18 = sshll.u32 %s3161_s25, 4  ;;  %s585_s21 = int_to_ptr.vmem [resolvable:$true] %s584_s21  ;;  %s607_s18 = int_to_ptr.vmem [resolvable:$true] %s606_s18 }
  0xa8   : > { %s2679_s22 = scalar_lea.hbm %s3993_s11, 16 }
  0xa9   : > { %p2680_p13 = scmp.ne.s32.totalorder %s3993_s11, %s2679_s22  ;;  %p2686_p3 = scmp.lt.u32.totalorder %s2679_s22, %s3993_s11 }
  0xab   : > { %p2682_p0 = pnand %p2680_p13, %p3334_p8 }
  0xad   : > { %p2683_p1 = pneg %p2682_p0 }
  0xaf   : > { %p2688_p2 = pnand %p2686_p3, %p2683_p1 }
  0xb1   : > { %2691 = shalt.err (!%p2688_p2)
}
  0xb2   : > { %s2692_s0 = scalar_lea.vmem %s585_s21, 16  ;;  %s2699_s27 = scalar_lea.vmem %s585_s21, 32 }
  0xb3   : > { %p2693_p5 = scmp.ne.s32.totalorder %s585_s21, %s2692_s0  ;;  %p2700_p10 = scmp.lt.s32.totalorder %s585_s21, %s585_s21 }
  0xb4   : > { %p2701_p11 = scmp.lt.s32.totalorder %s2699_s27, %s2692_s0 }
  0xb5   : > { %p2695_p7 = pnand %p2693_p5, %p3334_p8 }
  0xb6   : > { %p2702_p12 = por %p2701_p11, %p2700_p10 }
  0xb7   : > { %p2696_p9 = pneg %p2695_p7 }
  0xb9   : > { %p2703_p4 = pnand %p2702_p12, %p2696_p9 }
  0xbb   : > { %2706 = shalt.err (!%p2703_p4)
}
  0xbc   : > { %2379 = dma.hbm_to_vmem [thread:$0]  (!%p3318_p6), %s3993_s11, 16, %s585_s21, [#allocation21]  }
  0xbd   : > { %s2707_s22 = scalar_lea.hbm %s3995_s13, 16 }
  0xbe   : > { %p2708_p13 = scmp.ne.s32.totalorder %s3995_s13, %s2707_s22  ;;  %p2714_p3 = scmp.lt.u32.totalorder %s2707_s22, %s3995_s13 }
  0xc0   : > { %p2710_p0 = pnand %p2708_p13, %p3334_p8 }
  0xc2   : > { %p2711_p1 = pneg %p2710_p0 }
  0xc4   : > { %p2716_p2 = pnand %p2714_p3, %p2711_p1 }
  0xc6   : > { %2719 = shalt.err (!%p2716_p2)
}
  0xc7   : > { %s2720_s0 = scalar_lea.vmem %s607_s18, 16  ;;  %s2727_s21 = scalar_lea.vmem %s607_s18, 32 }
  0xc8   : > { %p2721_p5 = scmp.ne.s32.totalorder %s607_s18, %s2720_s0  ;;  %p2728_p10 = scmp.lt.s32.totalorder %s607_s18, %s607_s18 }
  0xc9   : > { %p2729_p11 = scmp.lt.s32.totalorder %s2727_s21, %s2720_s0 }
  0xca   : > { %p2723_p7 = pnand %p2721_p5, %p3334_p8 }
  0xcb   : > { %p2730_p12 = por %p2729_p11, %p2728_p10 }
  0xcc   : > { %p2724_p9 = pneg %p2723_p7 }
  0xce   : > { %p2731_p4 = pnand %p2730_p12, %p2724_p9 }
  0xd0   : > { %2734 = shalt.err (!%p2731_p4)
}
  0xd1   : > { %2385 = dma.hbm_to_vmem [thread:$0]  (!%p3318_p6), %s3995_s13, 16, %s607_s18, [#allocation24]  }
  0xd2   : > { %s3162_s25 = smov [#allocation26]   ;;  %s3163_s19 = smov [#allocation10]  }
  0xd3   : > { %s630_s28 = sshll.u32 %s3162_s25, 4  ;;  %s498_s22 = sshll.u32 %s3163_s19, 4  ;;  %s631_s28 = int_to_ptr.vmem [resolvable:$true] %s630_s28  ;;  %s499_s22 = int_to_ptr.vmem [resolvable:$true] %s498_s22 }
  0xd4   : > { %s2735_s26 = scalar_lea.hbm %s3997_s15, 16 }
  0xd5   : > { %p2736_p13 = scmp.ne.s32.totalorder %s3997_s15, %s2735_s26  ;;  %p2742_p3 = scmp.lt.u32.totalorder %s2735_s26, %s3997_s15 }
  0xd7   : > { %p2738_p0 = pnand %p2736_p13, %p3334_p8 }
  0xd9   : > { %p2739_p1 = pneg %p2738_p0 }
  0xdb   : > { %p2744_p2 = pnand %p2742_p3, %p2739_p1 }
  0xdd   : > { %2747 = shalt.err (!%p2744_p2)
}
  0xde   : > { %s2748_s18 = scalar_lea.vmem %s631_s28, 16  ;;  %s2755_s1 = scalar_lea.vmem %s631_s28, 32 }
  0xdf   : > { %p2749_p5 = scmp.ne.s32.totalorder %s631_s28, %s2748_s18  ;;  %p2756_p10 = scmp.lt.s32.totalorder %s631_s28, %s631_s28 }
  0xe0   : > { %p2757_p11 = scmp.lt.s32.totalorder %s2755_s1, %s2748_s18 }
  0xe1   : > { %p2751_p7 = pnand %p2749_p5, %p3334_p8 }
  0xe2   : > { %p2758_p12 = por %p2757_p11, %p2756_p10 }
  0xe3   : > { %p2752_p9 = pneg %p2751_p7 }
  0xe5   : > { %p2759_p4 = pnand %p2758_p12, %p2752_p9 }
  0xe7   : > { %2762 = shalt.err (!%p2759_p4)
}
  0xe8   : > { %2391 = dma.hbm_to_vmem [thread:$0]  (!%p3318_p6), %s3997_s15, 16, %s631_s28, [#allocation27]  }
  0xe9   : > { %s4041_s4 = sld [smem:[#allocation54_spill]] }
  0xef   : > { %s2763_s26 = scalar_lea.hbm %s4041_s4, 256 }
  0xf0   : > { %p2764_p13 = scmp.ne.s32.totalorder %s4041_s4, %s2763_s26  ;;  %p2770_p3 = scmp.lt.u32.totalorder %s2763_s26, %s4041_s4 }
  0xf2   : > { %p2766_p0 = pnand %p2764_p13, %p3334_p8 }
  0xf4   : > { %p2767_p1 = pneg %p2766_p0 }
  0xf6   : > { %p2772_p2 = pnand %p2770_p3, %p2767_p1 }
  0xf8   : > { %2775 = shalt.err (!%p2772_p2)
}
  0xf9   : > { %s2776_s18 = scalar_lea.vmem %s499_s22, 256  ;;  %p2784_p10 = scmp.lt.s32.totalorder %s499_s22, %s499_s22 }
  0xfa   : > { %p2777_p5 = scmp.ne.s32.totalorder %s499_s22, %s2776_s18  ;;  %p2785_p11 = scmp.lt.s32.totalorder %s2776_s18, %s2776_s18 }
  0xfc   : > { %p2779_p7 = pnand %p2777_p5, %p3334_p8  ;;  %p2786_p12 = por %p2785_p11, %p2784_p10 }
  0xfe   : > { %p2780_p9 = pneg %p2779_p7 }
 0x100   : > { %p2787_p4 = pnand %p2786_p12, %p2780_p9 }
 0x102   : > { %2790 = shalt.err (!%p2787_p4)
}
 0x103   : > { %s3164_s28 = smov 64   ;;  %s3165_s1 = smov 4  }
 0x104   : > { %2358 = dma.hbm_to_vmem [thread:$0]  (!%p3318_p6), %s4041_s4, 256, %s499_s22, [#allocation9], %s3164_s28, %s3164_s28, %s3165_s1  }
 0x105   : > { %s3166_s29 = smov [#allocation13]   ;;  %s3167_s26 = smov [#allocation16]  }
 0x106   : > { %s522_s23 = sshll.u32 %s3166_s29, 4  ;;  %s546_s30 = sshll.u32 %s3167_s26, 4  ;;  %s523_s23 = int_to_ptr.vmem [resolvable:$true] %s522_s23  ;;  %s547_s30 = int_to_ptr.vmem [resolvable:$true] %s546_s30 }
 0x107   : > { %s4042_s6 = sld [smem:[#allocation56_spill]] }
 0x10d   : > { %s2791_s27 = scalar_lea.hbm %s4042_s6, 256 }
 0x10e   : > { %p2792_p13 = scmp.ne.s32.totalorder %s4042_s6, %s2791_s27  ;;  %p2798_p3 = scmp.lt.u32.totalorder %s2791_s27, %s4042_s6 }
 0x110   : > { %p2794_p0 = pnand %p2792_p13, %p3334_p8 }
 0x112   : > { %p2795_p1 = pneg %p2794_p0 }
 0x114   : > { %p2800_p2 = pnand %p2798_p3, %p2795_p1 }
 0x116   : > { %2803 = shalt.err (!%p2800_p2)
}
 0x117   : > { %s2804_s22 = scalar_lea.vmem %s523_s23, 256  ;;  %p2812_p10 = scmp.lt.s32.totalorder %s523_s23, %s523_s23 }
 0x118   : > { %p2805_p5 = scmp.ne.s32.totalorder %s523_s23, %s2804_s22  ;;  %p2813_p11 = scmp.lt.s32.totalorder %s2804_s22, %s2804_s22 }
 0x11a   : > { %p2807_p7 = pnand %p2805_p5, %p3334_p8  ;;  %p2814_p12 = por %p2813_p11, %p2812_p10 }
 0x11c   : > { %p2808_p9 = pneg %p2807_p7 }
 0x11e   : > { %p2815_p4 = pnand %p2814_p12, %p2808_p9 }
 0x120   : > { %2818 = shalt.err (!%p2815_p4)
}
 0x121   : > { %2364 = dma.hbm_to_vmem [thread:$0]  (!%p3318_p6), %s4042_s6, 256, %s523_s23, [#allocation12], %s3164_s28, %s3164_s28, %s3165_s1  }
 0x122   : > { %s4043_s8 = sld [smem:[#allocation58_spill]] }
 0x128   : > { %s2819_s19 = scalar_lea.hbm %s4043_s8, 256 }
 0x129   : > { %p2820_p13 = scmp.ne.s32.totalorder %s4043_s8, %s2819_s19  ;;  %p2826_p3 = scmp.lt.u32.totalorder %s2819_s19, %s4043_s8 }
 0x12b   : > { %p2822_p0 = pnand %p2820_p13, %p3334_p8 }
 0x12d   : > { %p2823_p1 = pneg %p2822_p0 }
 0x12f   : > { %p2828_p2 = pnand %p2826_p3, %p2823_p1 }
 0x131   : > { %2831 = shalt.err (!%p2828_p2)
}
 0x132   : > { %s2832_s27 = scalar_lea.vmem %s547_s30, 256  ;;  %p2840_p10 = scmp.lt.s32.totalorder %s547_s30, %s547_s30 }
 0x133   : > { %p2833_p5 = scmp.ne.s32.totalorder %s547_s30, %s2832_s27  ;;  %p2841_p11 = scmp.lt.s32.totalorder %s2832_s27, %s2832_s27 }
 0x135   : > { %p2835_p7 = pnand %p2833_p5, %p3334_p8  ;;  %p2842_p12 = por %p2841_p11, %p2840_p10 }
 0x137   : > { %p2836_p9 = pneg %p2835_p7 }
 0x139   : > { %p2843_p4 = pnand %p2842_p12, %p2836_p9 }
 0x13b   : > { %2846 = shalt.err (!%p2843_p4)
}
 0x13c   : > { %2370 = dma.hbm_to_vmem [thread:$0]  (!%p3318_p6), %s4043_s8, 256, %s547_s30, [#allocation15], %s3164_s28, %s3164_s28, %s3165_s1  }
 0x13d   : > { %s3168_s22 = smov [#allocation19]   ;;  %s3169_s5 = smov [#allocation22]  }
 0x13e   : > { %s570_s3 = sshll.u32 %s3168_s22, 4  ;;  %s595_s7 = sshll.u32 %s3169_s5, 4  ;;  %s571_s3 = int_to_ptr.vmem [resolvable:$true] %s570_s3  ;;  %s596_s7 = int_to_ptr.vmem [resolvable:$true] %s595_s7 }
 0x13f   : > { %s2847_s29 = scalar_lea.hbm %s3992_s10, 256 }
 0x140   : > { %p2848_p13 = scmp.ne.s32.totalorder %s3992_s10, %s2847_s29  ;;  %p2854_p3 = scmp.lt.u32.totalorder %s2847_s29, %s3992_s10 }
 0x142   : > { %p2850_p0 = pnand %p2848_p13, %p3334_p8 }
 0x144   : > { %p2851_p1 = pneg %p2850_p0 }
 0x146   : > { %p2856_p2 = pnand %p2854_p3, %p2851_p1 }
 0x148   : > { %2859 = shalt.err (!%p2856_p2)
}
 0x149   : > { %s2860_s30 = scalar_lea.vmem %s571_s3, 256  ;;  %p2868_p10 = scmp.lt.s32.totalorder %s571_s3, %s571_s3 }
 0x14a   : > { %p2861_p5 = scmp.ne.s32.totalorder %s571_s3, %s2860_s30  ;;  %p2869_p11 = scmp.lt.s32.totalorder %s2860_s30, %s2860_s30 }
 0x14c   : > { %p2863_p7 = pnand %p2861_p5, %p3334_p8  ;;  %p2870_p12 = por %p2869_p11, %p2868_p10 }
 0x14e   : > { %p2864_p9 = pneg %p2863_p7 }
 0x150   : > { %p2871_p4 = pnand %p2870_p12, %p2864_p9 }
 0x152   : > { %2874 = shalt.err (!%p2871_p4)
}
 0x153   : > { %2376 = dma.hbm_to_vmem [thread:$0]  (!%p3318_p6), %s3992_s10, 256, %s571_s3, [#allocation18], %s3164_s28, %s3164_s28, %s3165_s1  }
 0x154   : > { %s2875_s25 = scalar_lea.hbm %s3994_s12, 16 }
 0x155   : > { %p2876_p13 = scmp.ne.s32.totalorder %s3994_s12, %s2875_s25  ;;  %p2882_p3 = scmp.lt.u32.totalorder %s2875_s25, %s3994_s12 }
 0x157   : > { %p2878_p0 = pnand %p2876_p13, %p3334_p8 }
 0x159   : > { %p2879_p1 = pneg %p2878_p0 }
 0x15b   : > { %p2884_p2 = pnand %p2882_p3, %p2879_p1 }
 0x15d   : > { %2887 = shalt.err (!%p2884_p2)
}
 0x15e   : > { %s2888_s21 = scalar_lea.vmem %s596_s7, 16  ;;  %s2895_s3 = scalar_lea.vmem %s596_s7, 32 }
 0x15f   : > { %p2889_p5 = scmp.ne.s32.totalorder %s596_s7, %s2888_s21  ;;  %p2896_p10 = scmp.lt.s32.totalorder %s596_s7, %s596_s7 }
 0x160   : > { %p2897_p11 = scmp.lt.s32.totalorder %s2895_s3, %s2888_s21 }
 0x161   : > { %p2891_p7 = pnand %p2889_p5, %p3334_p8 }
 0x162   : > { %p2898_p12 = por %p2897_p11, %p2896_p10 }
 0x163   : > { %p2892_p9 = pneg %p2891_p7 }
 0x165   : > { %p2899_p4 = pnand %p2898_p12, %p2892_p9 }
 0x167   : > { %2902 = shalt.err (!%p2899_p4)
}
 0x168   : > { %2382 = dma.hbm_to_vmem [thread:$0]  (!%p3318_p6), %s3994_s12, 16, %s596_s7, [#allocation21]  }
 0x169   : > { %s3170_s23 = smov [#allocation25]   ;;  %s3171_s22 = smov [#allocation28]  }
 0x16a   : > { %s616_s18 = sshll.u32 %s3170_s23, 4  ;;  %s640_s5 = sshll.u32 %s3171_s22, 4  ;;  %s617_s18 = int_to_ptr.vmem [resolvable:$true] %s616_s18  ;;  %s641_s5 = int_to_ptr.vmem [resolvable:$true] %s640_s5 }
 0x16b   : > { %s2903_s29 = scalar_lea.hbm %s3996_s14, 256 }
 0x16c   : > { %p2904_p13 = scmp.ne.s32.totalorder %s3996_s14, %s2903_s29  ;;  %p2910_p3 = scmp.lt.u32.totalorder %s2903_s29, %s3996_s14 }
 0x16e   : > { %p2906_p0 = pnand %p2904_p13, %p3334_p8 }
 0x170   : > { %p2907_p1 = pneg %p2906_p0 }
 0x172   : > { %p2912_p2 = pnand %p2910_p3, %p2907_p1 }
 0x174   : > { %2915 = shalt.err (!%p2912_p2)
}
 0x175   : > { %s2916_s7 = scalar_lea.vmem %s617_s18, 256  ;;  %p2924_p10 = scmp.lt.s32.totalorder %s617_s18, %s617_s18 }
 0x176   : > { %p2917_p5 = scmp.ne.s32.totalorder %s617_s18, %s2916_s7  ;;  %p2925_p11 = scmp.lt.s32.totalorder %s2916_s7, %s2916_s7 }
 0x178   : > { %p2919_p7 = pnand %p2917_p5, %p3334_p8  ;;  %p2926_p12 = por %p2925_p11, %p2924_p10 }
 0x17a   : > { %p2920_p9 = pneg %p2919_p7 }
 0x17c   : > { %p2927_p4 = pnand %p2926_p12, %p2920_p9 }
 0x17e   : > { %2930 = shalt.err (!%p2927_p4)
}
 0x17f   : > { %2388 = dma.hbm_to_vmem [thread:$0]  (!%p3318_p6), %s3996_s14, 256, %s617_s18, [#allocation24], %s3164_s28, %s3164_s28, %s3165_s1  }
 0x180   : > { %s2931_s25 = scalar_lea.hbm %s3998_s16, 512 }
 0x181   : > { %p2932_p13 = scmp.ne.s32.totalorder %s3998_s16, %s2931_s25  ;;  %p2938_p3 = scmp.lt.u32.totalorder %s2931_s25, %s3998_s16 }
 0x183   : > { %p2934_p0 = pnand %p2932_p13, %p3334_p8 }
 0x185   : > { %p2935_p1 = pneg %p2934_p0 }
 0x187   : > { %p2940_p2 = pnand %p2938_p3, %p2935_p1 }
 0x189   : > { %2943 = shalt.err (!%p2940_p2)
}
 0x18a   : > { %s2944_s21 = scalar_lea.vmem %s641_s5, 512  ;;  %p2952_p10 = scmp.lt.s32.totalorder %s641_s5, %s641_s5 }
 0x18b   : > { %p2945_p5 = scmp.ne.s32.totalorder %s641_s5, %s2944_s21  ;;  %p2953_p11 = scmp.lt.s32.totalorder %s2944_s21, %s2944_s21 }
 0x18d   : > { %p2947_p7 = pnand %p2945_p5, %p3334_p8  ;;  %p2954_p12 = por %p2953_p11, %p2952_p10 }
 0x18f   : > { %p2948_p9 = pneg %p2947_p7 }
 0x191   : > { %p2955_p4 = pnand %p2954_p12, %p2948_p9 }
 0x193   : > { %2958 = shalt.err (!%p2955_p4)
}
 0x194   : > { %2394 = dma.hbm_to_vmem [thread:$0]  (!%p3318_p6), %s3998_s16, 512, %s641_s5, [#allocation27], %s3164_s28, %s3164_s28, %s3165_s1  }
 0x195   : > { %s3172_s7 = smov [#allocation29]   ;;  %s2959_s22 = scalar_lea.hbm %s3999_s17, 16 }
 0x196   : > { %s654_s27 = sshll.u32 %s3172_s7, 4  ;;  %p2960_p13 = scmp.ne.s32.totalorder %s3999_s17, %s2959_s22  ;;  %s655_s27 = int_to_ptr.vmem [resolvable:$true] %s654_s27 }
 0x197   : > { %p2966_p3 = scmp.lt.u32.totalorder %s2959_s22, %s3999_s17 }
 0x198   : > { %p2962_p0 = pnand %p2960_p13, %p3334_p8 }
 0x19a   : > { %p2963_p1 = pneg %p2962_p0 }
 0x19c   : > { %p2968_p2 = pnand %p2966_p3, %p2963_p1 }
 0x19e   : > { %2971 = shalt.err (!%p2968_p2)
}
 0x19f   : > { %s2972_s28 = scalar_lea.vmem %s655_s27, 16  ;;  %s2979_s1 = scalar_lea.vmem %s655_s27, 32 }
 0x1a0   : > { %p2973_p5 = scmp.ne.s32.totalorder %s655_s27, %s2972_s28  ;;  %p2980_p10 = scmp.lt.s32.totalorder %s655_s27, %s655_s27 }
 0x1a1   : > { %p2981_p11 = scmp.lt.s32.totalorder %s2979_s1, %s2972_s28 }
 0x1a2   : > { %p2975_p7 = pnand %p2973_p5, %p3334_p8 }
 0x1a3   : > { %p2982_p12 = por %p2981_p11, %p2980_p10 }
 0x1a4   : > { %p2976_p9 = pneg %p2975_p7 }
 0x1a6   : > { %p2983_p4 = pnand %p2982_p12, %p2976_p9 }
 0x1a8   : > { %2986 = shalt.err (!%p2983_p4)
}
 0x1a9   : > { %s4044_s21 = sld [smem:[#allocation47_spill]]  ;;  %s4045_s18 = sld [smem:[#allocation46_spill]] }
 0x1aa   : > { %s4046_s3 = sld [smem:[#allocation45_spill]]  ;;  %s4047_s2 = sld [smem:[#allocation44_spill]] }
 0x1ab   : > { %s4048_s7 = sld [smem:[#allocation48_spill]] }
 0x1ac   : > { %2397 = dma.hbm_to_vmem [thread:$0]  (!%p3318_p6), %s3999_s17, 16, %s655_s27, [#allocation30]  }
 0x1af   : > { %s2059_s30 = sadd.s32 4294967294, %s4044_s21   ;;  %s3659_s24 = sadd.s32 1, %s4044_s21  }
 0x1b0   : > { %s49_s23 = ssub.s32 %s4044_s21, %s3659_s24  ;;  %s52_s22 = sadd.s32 1, %s4045_s18 }
 0x1b1   : > { %p50_p8 = scmp.eq.s32.totalorder %s49_s23, 0  ;;  %p59_p13 = scmp.ne.s32.totalorder %s4045_s18, %s4046_s3 }
 0x1b2   : > { %p60_p0 = scmp.eq.s32.totalorder %s4044_s21, 0  ;;  %p65_p1 = scmp.ne.s32.totalorder %s4046_s3, %s4047_s2 }
 0x1b3   : > { %s3670_s25 = scalar_select %p50_p8, %s4045_s18, %s52_s22  }
 0x1b4   : > { %p3672_p3 = por %p60_p0, %p59_p13  ;;  %p4050_p2 = scmp.eq.s32.totalorder %s4048_s7, 0 }
 0x1b5   : > { %p451_p5 = scmp.eq.s32.totalorder %s4048_s7, 1  ;;  %p457_p7 = scmp.eq.s32.totalorder %s2059_s30, 1 }
 0x1b6   : > { %p3678_p6 = por %p4050_p2, %p65_p1  ;;  %p2425_p9 = scmp.lt.s32.totalorder %s4044_s21, 2 }
 0x1b7   : > { %s3685_s29 = sand.u32 1, %s4045_s18   ;;  %p3687_p10 = por %p451_p5, %p59_p13 }
 0x1b8   : > { %s4051_s27 = scalar_select %p3678_p6, 1, 0 }
 0x1b9   : > { %s4052_s26 = scalar_select %p3687_p10, 1, 0 }
 0x1ba   : > { %p3691_p11 = por %p457_p7, %p65_p1  ;;  %s2078_s1 = sshll.u32 %s3685_s29, 3 }
 0x1bb   : > { %s2079_s5 = sshll.u32 %s4044_s21, 7  ;;  %s4054_s2 = sld [smem:[#allocation50_spill]] }
 0x1bc   : > { %s4053_s28 = scalar_select %p3691_p11, 1, 0 }
 0x1bd   : > { %s669_s18 = scalar_lea.vmem [#allocation2], %s2078_s1  ;;  %p3706_p12 = pnand %p2425_p9, %p3672_p3 }
 0x1be   : > { %s676_s30 = sshll.u32 %s669_s18, 4  ;;  %s666_s4 = scalar_lea.sflag [#allocation3], %s3685_s29  ;;  %s3702_s30 = int_to_ptr.vmem [resolvable:$true] %s676_s30 }
 0x1bf   : > { %p2989_p8 = pneg %p3706_p12 }
 0x1c1   : > { %s3700_s7 = scalar_lea.hbm %s4054_s2, %s2079_s5  ;;  %s2992_s19 = scalar_lea.hbm %s4054_s2, 256 }
 0x1c2   : > { %s2987_s0 = scalar_lea.hbm %s3700_s7, 128  ;;  %p2993_p1 = scmp.lt.u32.totalorder %s3700_s7, %s4054_s2 }
 0x1c3   : > { %p2988_p4 = scmp.ne.s32.totalorder %s3700_s7, %s2987_s0  ;;  %p2994_p3 = scmp.lt.u32.totalorder %s2992_s19, %s2987_s0 }
 0x1c4   : > { %p2996_p5 = scmp.lt.u32.totalorder %s2987_s0, %s3700_s7 }
 0x1c5   : > { %p2990_p13 = pnand %p2989_p8, %p2988_p4  ;;  %p2995_p2 = por %p2994_p3, %p2993_p1 }
 0x1c7   : > { %p2991_p0 = pneg %p2990_p13  ;;  %p2997_p7 = por %p2996_p5, %p2995_p2 }
 0x1c9   : > { %p2998_p9 = pnand %p2997_p7, %p2991_p0 }
 0x1cb   : > { %3001 = shalt.err (!%p2998_p9)
}
 0x1cc   : > { %s3002_s22 = scalar_lea.vmem %s3702_s30, 128  ;;  %s3173_s1 = smov [#allocation2]  }
 0x1cd   : > { %p3003_p4 = scmp.ne.s32.totalorder %s3702_s30, %s3002_s22  ;;  %s3007_s5 = sshll.u32 %s3173_s1, 4  ;;  %s3008_s5 = int_to_ptr.vmem [resolvable:$false] %s3007_s5 }
 0x1ce   : > { %s3009_s3 = scalar_lea.vmem %s3008_s5, 256  ;;  %p3010_p10 = scmp.lt.s32.totalorder %s3702_s30, %s3008_s5 }
 0x1cf   : > { %p3005_p13 = pnand %p3003_p4, %p2989_p8  ;;  %p3011_p1 = scmp.lt.s32.totalorder %s3009_s3, %s3002_s22 }
 0x1d1   : > { %p3006_p11 = pneg %p3005_p13  ;;  %p3012_p3 = por %p3011_p1, %p3010_p10 }
 0x1d3   : > { %p3013_p2 = pnand %p3012_p3, %p3006_p11 }
 0x1d5   : > { %3016 = shalt.err (!%p3013_p2)
}
 0x1d6   : > { %2401 = dma.hbm_to_vmem [thread:$0]  (!%p3706_p12), %s3700_s7, 128, %s3702_s30, %s666_s4  }
 0x1d7   : > { %s2080_s0 = sshll.u32 %s4044_s21, 4  ;;  %s686_s19 = scalar_lea.vmem [#allocation5], %s3685_s29 }
 0x1d8   : > { %s693_s18 = sshll.u32 %s686_s19, 4  ;;  %s4056_s6 = sld [smem:[#allocation51_spill]]  ;;  %s694_s18 = int_to_ptr.vmem [resolvable:$true] %s693_s18 }
 0x1d9   : > { %s4057_s22 = sand.u32 1, %s4044_s21  }
 0x1da   : > { %s684_s3 = scalar_lea.sflag [#allocation6], %s4057_s22 }
 0x1de   : > { %s3742_s5 = scalar_lea.hbm %s4056_s6, %s2080_s0  ;;  %s3022_s7 = scalar_lea.hbm %s4056_s6, 32 }
 0x1df   : > { %s3017_s8 = scalar_lea.hbm %s3742_s5, 16  ;;  %p3023_p5 = scmp.lt.u32.totalorder %s3742_s5, %s4056_s6 }
 0x1e0   : > { %p3018_p10 = scmp.ne.s32.totalorder %s3742_s5, %s3017_s8  ;;  %p3024_p7 = scmp.lt.u32.totalorder %s3022_s7, %s3017_s8 }
 0x1e1   : > { %p3026_p4 = scmp.lt.u32.totalorder %s3017_s8, %s3742_s5 }
 0x1e2   : > { %p3020_p11 = pnand %p3018_p10, %p2989_p8  ;;  %p3025_p9 = por %p3024_p7, %p3023_p5 }
 0x1e4   : > { %p3021_p0 = pneg %p3020_p11  ;;  %p3027_p13 = por %p3026_p4, %p3025_p9 }
 0x1e6   : > { %p3028_p1 = pnand %p3027_p13, %p3021_p0 }
 0x1e8   : > { %3031 = shalt.err (!%p3028_p1)
}
 0x1e9   : > { %s3032_s21 = scalar_lea.vmem %s694_s18, 16  ;;  %s3174_s0 = smov [#allocation5]  }
 0x1ea   : > { %p3033_p3 = scmp.ne.s32.totalorder %s694_s18, %s3032_s21  ;;  %s3037_s19 = sshll.u32 %s3174_s0, 4  ;;  %s3038_s19 = int_to_ptr.vmem [resolvable:$false] %s3037_s19 }
 0x1eb   : > { %s3039_s1 = scalar_lea.vmem %s3038_s19, 32  ;;  %p3040_p11 = scmp.lt.s32.totalorder %s694_s18, %s3038_s19 }
 0x1ec   : > { %p3035_p2 = pnand %p3033_p3, %p2989_p8  ;;  %p3041_p6 = scmp.lt.s32.totalorder %s3039_s1, %s3032_s21 }
 0x1ee   : > { %p3036_p10 = pneg %p3035_p2  ;;  %p3042_p5 = por %p3041_p6, %p3040_p11 }
 0x1f0   : > { %p3043_p7 = pnand %p3042_p5, %p3036_p10 }
 0x1f2   : > { %3046 = shalt.err (!%p3043_p7)
}
 0x1f3   : > { %2404 = dma.hbm_to_vmem [thread:$0]  (!%p3706_p12), %s3742_s5, 16, %s694_s18, %s684_s3  }
 0x1f4   : > { %s4058_s8 = sld [smem:[#allocation49_spill]] }
 0x1fa   : > { %p4059_p0 = scmp.ne.s32.totalorder %s4058_s8, 0 }
 0x1fb   : > { %s4060_s22 = sld [smem:[#allocation45_spill]] (!%p4059_p0)  ;;  %p4061_p6 = scmp.ne.s32.totalorder (!%p4059_p0), %s4051_s27, 0 }
 0x1fc   : > { %702 = sbr.rel (%p4059_p0) target bundleno = 3129 (0xc39), region = 92 }
 0x201   : > { %s3768_s4 = sand.u32 (!%p4059_p0), 1, %s4060_s22  }
 0x202   : > { %s2082_s29 = sshll.u32 (!%p4059_p0), %s3768_s4, 3  ;;  %s705_s7 = scalar_lea.sflag (!%p4059_p0), [#allocation3], %s3768_s4 }
 0x203   : > { %s708_s2 = scalar_lea.vmem [#allocation2], %s2082_s29 }
 0x204   : > { %3092 = dma.done.wait (%p4061_p6), %s705_s7, 128  }
 0x205   : > { %3094 = vsyncadd (%p4061_p6), %s705_s7, 4294967168  ;;  %s4062_s23 = sld [smem:[#allocation48_spill]]  ;;  %s716_s3 = scalar_lea.vmem [#allocation5], %s3768_s4 }
 0x20b   : > { %s713_s18 = sand.u32 1, %s4062_s23  }
 0x20c   : > { %s714_s5 = scalar_lea.sflag [#allocation6], %s713_s18 }
 0x20d   : > { %3096 = dma.done.wait (%p4061_p6), %s714_s5, 16  }
 0x20e   : > { %3098 = vsyncadd (%p4061_p6), %s714_s5, 4294967280  ;;  %p4063_p12 = scmp.eq.s32.totalorder %s4062_s23, 0 }
 0x210   : > { %3100 = dma.done.wait (%p4063_p12), [#allocation6], 16   ;;  %p4064_p8 = pmov %p4063_p12 }
 0x212   : > { %3102 = vsyncadd (%p4064_p8), [#allocation6], 4294967280  ;;  %p4065_p9 = pmov %p4064_p8 }
 0x213   : > { %p4066_p4 = pmov %p4064_p8 }
 0x214   : > { %3104 = dma.done.wait (%p4065_p9), [#allocation9], 272  }
 0x215   : > { %3106 = vsyncadd (%p4066_p4), [#allocation9], 4294967024  ;;  %p4067_p13 = pmov %p4066_p4 }
 0x216   : > { %p4068_p1 = pmov %p4066_p4 }
 0x217   : > { %3108 = dma.done.wait (%p4067_p13), [#allocation12], 272  }
 0x218   : > { %3110 = vsyncadd (%p4068_p1), [#allocation12], 4294967024  ;;  %p4069_p3 = pmov %p4068_p1 }
 0x219   : > { %p4070_p2 = pmov %p4068_p1 }
 0x21a   : > { %3112 = dma.done.wait (%p4069_p3), [#allocation15], 272  }
 0x21b   : > { %3114 = vsyncadd (%p4070_p2), [#allocation15], 4294967024  ;;  %p4071_p10 = pmov %p4068_p1 }
 0x21c   : > { %p4072_p11 = pmov %p4068_p1 }
 0x21d   : > { %3116 = dma.done.wait (%p4071_p10), [#allocation18], 272  }
 0x21e   : > { %3118 = vsyncadd (%p4072_p11), [#allocation18], 4294967024  ;;  %p4073_p5 = pmov %p4068_p1 }
 0x21f   : > { %p4074_p7 = pmov %p4068_p1 }
 0x220   : > { %3120 = dma.done.wait (%p4073_p5), [#allocation21], 32  }
 0x221   : > { %3122 = vsyncadd (%p4074_p7), [#allocation21], 4294967264  ;;  %p4075_p0 = pmov %p4068_p1 }
 0x223   : > { %3124 = dma.done.wait (%p4075_p0), [#allocation24], 272   ;;  %p4076_p6 = pmov %p4075_p0 }
 0x224   : > { %p4077_p12 = pmov %p4075_p0 }
 0x225   : > { %3126 = vsyncadd (%p4076_p6), [#allocation24], 4294967024 }
 0x226   : > { %3128 = dma.done.wait (%p4077_p12), [#allocation27], 528   ;;  %p4078_p8 = pmov %p4075_p0 }
 0x227   : > { %p4079_p9 = pmov %p4075_p0 }
 0x228   : > { %3130 = vsyncadd (%p4078_p8), [#allocation27], 4294966768 }
 0x229   : > { %3132 = dma.done.wait (%p4079_p9), [#allocation30], 16   ;;  %p4080_p4 = pmov %p4075_p0 }
 0x22a   : > { %vm842_vm0 = vcmask 261120   ;;  %v3820_v0 = vld [vmem:[%s708_s2] sm:$0xff]  ;;  %v2501_v7 = vld [vmem:[#allocation10] sm:$0xff]   ;;  %v3175_v9 = vmov 0.0   ;;  %vm3176_vm1 = vmmov 0   ;;  %vm1096_vm4 = vcmask 64512  }
 0x22b   : > { %3134 = vsyncadd (%p4080_p4), [#allocation30], 4294967280  ;;  %v843_v1 = vsel %vm842_vm0, %v3820_v0, 0.0  ;;  %v2502_v8 = vld [vmem:[#allocation13] sm:$0xff]   ;;  %2179 = vmatprep.subr.bf16.mxu0 %v3175_v9  ;;  %2187 = vmatprep.subr.bf16.mxu1 %v3175_v9  ;;  %v2503_v10 = vld [vmem:[#allocation10 + $0x8] sm:$0xff]   ;;  %s3177_s27 = smov 120  }
 0x22c   : > { %844 = vadd.xlane.f32.xlu0 %v843_v1  ;;  %2180 = vmatpush3.bf16.msra.mxu0 %v2501_v7  ;;  %v2504_v11 = vld [vmem:[#allocation13 + $0x8] sm:$0xff]   ;;  %v2505_v26 = vld [vmem:[#allocation16] sm:$0xff]   ;;  %v2506_v28 = vld [vmem:[#allocation16 + $0x8] sm:$0xff]   ;;  %s3178_s30 = smov 112   ;;  %s3179_s21 = smov 104   ;;  %vm1346_vm5 = vcmask 1043456  }
 0x22d   : > { %2188 = vmatpush3.bf16.msra.mxu1 %v2502_v8  ;;  %2181 = vmatprep.subr.bf16.mxu0 %v3175_v9  ;;  %v2100_v20 = vld [vmem:[#allocation7] ss:$0 sm:$0xff]  ;;  %v2101_v23 = vld [vmem:[#allocation8] ss:$0 sm:$0xff]  ;;  %v2102_v29 = vld [vmem:[#allocation11] ss:$0 sm:$0xff] }
 0x22e   : > { %2189 = vmatprep.subr.bf16.mxu1 %v3175_v9  ;;  %2183 = vmatprep.mubr.msk.bf16.mxu0 %vm3176_vm1, %v3175_v9  ;;  %v2106_v30 = vld [vmem:[#allocation14] ss:$0 sm:$0xff]  ;;  %v2110_v50 = vld [vmem:[#allocation17] ss:$0 sm:$0xff]  ;;  %v2118_v62 = vld [vmem:[%s716_s3] ss:$0 sm:$0xff] }
 0x22f   : > { %2191 = vmatprep.mubr.msk.bf16.mxu1 %vm3176_vm1, %v3175_v9  ;;  %s3180_s0 = smov 8   ;;  %s3181_s19 = smov 16   ;;  %vm1541_vm6 = vcmask 130048   ;;  %vm1543_vm7 = vcmask 195584   ;;  %vm1757_vm10 = vcmask 523264  }
 0x230   : > { %2182 = vmatpush3.bf16.msra.mxu0 %v2503_v10  ;;  %s3182_s1 = smov 24   ;;  %s2140_s8 = sshll.u32 %s4062_s23, 7 }
 0x231   : > { %2190 = vmatpush3.bf16.msra.mxu1 %v2504_v11  ;;  %2195 = vmatprep.subr.bf16.mxu0 %v3175_v9  ;;  %s836_s22 = scalar_lea.vmem [#allocation31], %s2082_s29  ;;  %s4081_s5 = sld [smem:[#allocation59_spill]] }
 0x232   : > { %2203 = vmatprep.subr.bf16.mxu1 %v3175_v9  ;;  %s1817_s7 = sshll.u32 %s836_s22, 4  ;;  %s1804_s29 = scalar_lea.sflag [#allocation4], %s3768_s4  ;;  %s3939_s7 = int_to_ptr.vmem [resolvable:$true] %s1817_s7 }
 0x233   : > { %s3047_s23 = scalar_lea.vmem %s3939_s7, 128  ;;  %p4082_p1 = scmp.ne.s32.totalorder %s4052_s26, 0 }
 0x234   : > { %p3048_p13 = scmp.ne.s32.totalorder %s3939_s7, %s3047_s23 }
 0x236   : > { %p3049_p3 = pnand %p3048_p13, %p4082_p1 }
 0x237   : > { %s3937_s3 = scalar_lea.hbm %s4081_s5, %s2140_s8 }
 0x238   : > { %p3050_p2 = pneg %p3049_p3 }
 0x2b9   : > { %v845_v2 = vpop.xlane.xlu0 %844 }
 0x2ba   : > { %v847_v3 = vmul.f32 0.03125, %v845_v2 }
 0x2bc   : > { %v848_v4 = vsub.f32 %v3820_v0, %v847_v3 }
 0x2be   : > { %v849_v5 = vmul.f32 %v848_v4, %v848_v4  ;;  %v870_v21 = vmul.f32 %v2100_v20, %v848_v4 }
 0x2c0   : > { %v850_v6 = vsel %vm842_vm0, %v849_v5, 0.0 }
 0x2c1   : > { %851 = vadd.xlane.f32.xlu0 %v850_v6 }
 0x34e   : > { %v852_v12 = vpop.xlane.xlu0 %851 }
 0x34f   : > { %v854_v13 = vmul.f32 0.032258064, %v852_v12 }
 0x351   : > { %2515 = vrsqrt.f32 %v854_v13  ;;  %vm857_vm2 = vcmp.eq.f32.partialorder %v854_v13, inf  ;;  %v860_v16 = vand.u32 2147483648, %v854_v13  ;;  %vm859_vm3 = vcmp.eq.f32.partialorder %v854_v13, 0.0 }
 0x35b   : > { %v2516_v14 = vpop.eup %2515 }
 0x35c   : > { %v856_v15 = vmul.f32 %v2516_v14, %v854_v13 }
 0x35e   : > { %v858_v17 = vsel %vm857_vm2, %v854_v13, %v856_v15 }
 0x35f   : > { %v861_v18 = vsel %vm859_vm3, %v860_v16, %v858_v17 }
 0x360   : > { %v862_v19 = vadd.f32 1e-06, %v861_v18 }
 0x362   : > { %2517 = vrcp.f32 %v862_v19 }
 0x36c   : > { %v2518_v22 = vpop.eup %2517 }
 0x36d   : > { %v871_v24 = vmul.f32 %v2518_v22, %v870_v21 }
 0x36f   : > { %v878_v25 = vadd.f32 %v2101_v23, %v871_v24 }
 0x371   : > { %v879_v27 = vpack.c.bf16 %v878_v25, %v878_v25 }
 0x373   : > { %2184 = vmatmul.mubr.msk.bf16.vlgmr.msra.gmra.mrb[0].mxu0 %vm842_vm0, %v879_v27  ;;  %2192 = vmatmul.mubr.msk.bf16.vlgmr.msra.gmra.mrb[0].mxu1 %vm842_vm0, %v879_v27 }
 0x374   : > { %2196 = vmatpush3.bf16.msra.mxu0 %v2505_v26  ;;  %2199 = vmatprep.mubr.msk.bf16.mxu0 %vm3176_vm1, %v3175_v9 }
 0x375   : > { %2197 = vmatprep.subr.bf16.mxu0 %v3175_v9  ;;  %2205 = vmatprep.mubr.msk.bf16.mxu1 %vm3176_vm1, %v3175_v9 }
 0x378   : > { %2198 = vmatpush3.bf16.msra.mxu0 %v2506_v28 }
 0x379   : > { %2209 = vmatprep.subr.bf16.mxu0 %v3175_v9 }
 0x37b   : > { %2200 = vmatmul.mubr.msk.bf16.vlgmr.msra.gmra.mrb[4].mxu0 %vm842_vm0, %v879_v27 }
 0x37c   : > { %2211 = vmatprep.mubr.msk.bf16.mxu0 %vm3176_vm1, %v3175_v9 }
 0x446   : > { %v940_v31 = vpop.f32.mrb[0].mxu0  ;;  %v1004_v32 = vpop.f32.mrb[0].mxu1 }
 0x447   : > { %v941_v33 = vadd.f32 %v2102_v29, %v940_v31  ;;  %v1005_v34 = vadd.f32 %v2106_v30, %v1004_v32  ;;  %v2185_v35 = vpop.f32.mrb[1].mxu0  ;;  %v2193_v36 = vpop.f32.mrb[1].mxu1 }
 0x448   : > { %v943_v37 = vpop.f32.mrb[2].mxu0  ;;  %v1007_v38 = vpop.f32.mrb[2].mxu1 }
 0x449   : > { %v946_v39 = vpack.c.bf16 %v941_v33, %v941_v33  ;;  %v1010_v40 = vpack.c.bf16 %v1005_v34, %v1005_v34  ;;  %v2186_v41 = vpop.f32.mrb[3].mxu0  ;;  %v2194_v42 = vpop.f32.mrb[3].mxu1 }
 0x44b   : > { %1083 = vrot.lane.b32.xlu1 %v1010_v40, %s3177_s27  ;;  %1076 = vrot.lane.b32.xlu0 %v946_v39, %s3177_s27  ;;  %v1101_v43 = vsel %vm1096_vm4, %v1010_v40, 0 }
 0x44c   : > { %2204 = vmatpush3.bf16.xpose.msra.mxu1 %v1101_v43 }
 0x44d   : > { %2215 = vmatprep.subr.bf16.mxu1 %v3175_v9 }
 0x44e   : > { %v1068_v44 = vpop.f32.mrb[4].mxu0 }
 0x44f   : > { %1085 = vrot.lane.b32.xlu1 %v1010_v40, %s3178_s30  ;;  %v2201_v45 = vpop.f32.mrb[5].mxu0  ;;  %v1069_v52 = vadd.f32 %v2110_v50, %v1068_v44 }
 0x450   : > { %v1071_v46 = vpop.f32.mrb[6].mxu0 }
 0x451   : > { %v2202_v47 = vpop.f32.mrb[7].mxu0  ;;  %v3862_v56 = vpack.c.bf16 %v1069_v52, %v1069_v52 }
 0x453   : > { %1087 = vrot.lane.b32.xlu1 %v1010_v40, %s3179_s21  ;;  %2206 = vmatmul.mubr.msk.bf16.vlgmr.msra.gmra.mrb[4].mxu1 %vm1096_vm4, %v946_v39  ;;  %v1348_v59 = vsel %vm1346_vm5, %v3862_v56, 0 }
 0x454   : > { %2217 = vmatprep.mubr.msk.bf16.mxu1 %vm3176_vm1, %v3175_v9 }
 0x457   : > { %1078 = vrot.lane.b32.xlu1 %v946_v39, %s3178_s30 }
 0x45b   : > { %1080 = vrot.lane.b32.xlu1 %v946_v39, %s3179_s21 }
 0x4bd   : > { %v1084_v48 = vpop.permute.xlu1 %1083  ;;  %v1077_v54 = vpop.permute.xlu0 %1076 }
 0x4be   : > { %v1147_v49 = vsel %vm1096_vm4, %v1084_v48, 0 }
 0x4bf   : > { %2210 = vmatpush3.bf16.xpose.msra.mxu0 %v1147_v49 }
 0x4c0   : > { %2221 = vmatprep.subr.bf16.mxu0 %v3175_v9 }
 0x4c1   : > { %v1086_v51 = vpop.permute.xlu1 %1085 }
 0x4c2   : > { %v1193_v53 = vsel %vm1096_vm4, %v1086_v51, 0 }
 0x4c3   : > { %2216 = vmatpush3.bf16.xpose.msra.mxu1 %v1193_v53 }
 0x4c4   : > { %2227 = vmatprep.subr.bf16.mxu1 %v3175_v9 }
 0x4c5   : > { %v1088_v55 = vpop.permute.xlu1 %1087 }
 0x4c6   : > { %v1239_v57 = vsel %vm1096_vm4, %v1088_v55, 0  ;;  %2212 = vmatmul.mubr.msk.bf16.vlgmr.msra.gmra.mrb[8].mxu0 %vm1096_vm4, %v1077_v54 }
 0x4c7   : > { %2222 = vmatpush3.bf16.xpose.msra.mxu0 %v1239_v57  ;;  %2223 = vmatprep.mubr.msk.bf16.mxu0 %vm3176_vm1, %v3175_v9 }
 0x4c8   : > { %2233 = vmatprep.subr.bf16.mxu0 %v3175_v9 }
 0x4c9   : > { %v1079_v58 = vpop.permute.xlu1 %1078 }
 0x4ca   : > { %2218 = vmatmul.mubr.msk.bf16.vlgmr.msra.gmra.mrb[8].mxu1 %vm1096_vm4, %v1079_v58 }
 0x4cb   : > { %2228 = vmatpush3.bf16.msra.mxu1 %v1348_v59  ;;  %2229 = vmatprep.mubr.msk.bf16.mxu1 %vm3176_vm1, %v3175_v9 }
 0x4cc   : > { %2239 = vmatprep.subr.bf16.mxu1 %v3175_v9 }
 0x4cd   : > { %v1081_v60 = vpop.permute.xlu1 %1080 }
 0x4ce   : > { %2224 = vmatmul.mubr.msk.bf16.vlgmr.msra.gmra.mrb[12].mxu0 %vm1096_vm4, %v1081_v60 }
 0x4cf   : > { %2235 = vmatprep.mubr.msk.bf16.mxu0 %vm3176_vm1, %v3175_v9 }
 0x526   : > { %v1137_v61 = vpop.f32.mrb[4].mxu1 }
 0x527   : > { %v1281_v63 = vmul.f32 0.35355338, %v1137_v61  ;;  %v2207_v1 = vpop.f32.mrb[5].mxu1 }
 0x528   : > { %v1140_v2 = vpop.f32.mrb[6].mxu1 }
 0x529   : > { %v2208_v3 = vpop.f32.mrb[7].mxu1  ;;  %v1291_v4 = vadd.f32 %v2118_v62, %v1281_v63 }
 0x52b   : > { %v1295_v5 = vsel %vm1096_vm4, %v1291_v4, -inf }
 0x52c   : > { %1296 = vmax.xlane.f32.xlu1 %v1295_v5 }
 0x599   : > { %v1183_v6 = vpop.f32.mrb[8].mxu0 }
 0x59a   : > { %v1282_v7 = vmul.f32 0.35355338, %v1183_v6  ;;  %v2213_v8 = vpop.f32.mrb[9].mxu0 }
 0x59b   : > { %v1186_v10 = vpop.f32.mrb[10].mxu0 }
 0x59c   : > { %v2214_v11 = vpop.f32.mrb[11].mxu0  ;;  %v1292_v12 = vadd.f32 %v2118_v62, %v1282_v7 }
 0x59d   : > { %v1229_v13 = vpop.f32.mrb[8].mxu1 }
 0x59e   : > { %v1283_v14 = vmul.f32 0.35355338, %v1229_v13  ;;  %v2219_v15 = vpop.f32.mrb[9].mxu1  ;;  %v1298_v16 = vsel %vm1096_vm4, %v1292_v12, -inf }
 0x59f   : > { %v1232_v17 = vpop.f32.mrb[10].mxu1  ;;  %1299 = vmax.xlane.f32.xlu0 %v1298_v16 }
 0x5a0   : > { %v2220_v18 = vpop.f32.mrb[11].mxu1  ;;  %v1293_v19 = vadd.f32 %v2118_v62, %v1283_v14 }
 0x5a1   : > { %v1275_v20 = vpop.f32.mrb[12].mxu0 }
 0x5a2   : > { %v1284_v21 = vmul.f32 0.35355338, %v1275_v20  ;;  %v2225_v22 = vpop.f32.mrb[13].mxu0  ;;  %v1301_v23 = vsel %vm1096_vm4, %v1293_v19, -inf }
 0x5a3   : > { %1302 = vmax.xlane.f32.xlu1 %v1301_v23  ;;  %v1278_v24 = vpop.f32.mrb[14].mxu0 }
 0x5a4   : > { %v2226_v25 = vpop.f32.mrb[15].mxu0  ;;  %v1294_v26 = vadd.f32 %v2118_v62, %v1284_v21  ;;  %v2508_v21 = vld [vmem:[#allocation19 + $0x8] sm:$0xff]  }
 0x5a6   : > { %v1304_v27 = vsel %vm1096_vm4, %v1294_v26, -inf }
 0x5a7   : > { %1305 = vmax.xlane.f32.xlu1 %v1304_v27 }
 0x5b9   : > { %v1297_v28 = vpop.xlane.xlu1 %1296 }
 0x5ba   : > { %v1307_v29 = vsub.f32 %v1291_v4, %v1297_v28 }
 0x5bc   : > { %v1311_v30 = vmul.f32 1.442695, %v1307_v29 }
 0x5be   : > { %2519 = vpow2.f32 %v1311_v30 }
 0x5c8   : > { %v2520_v31 = vpop.eup %2519 }
 0x5c9   : > { %v1319_v32 = vsel %vm1096_vm4, %v2520_v31, 0.0 }
 0x5ca   : > { %1320 = vadd.xlane.f32.xlu0 %v1319_v32 }
 0x62c   : > { %v1300_v33 = vpop.xlane.xlu0 %1299 }
 0x62d   : > { %v1308_v34 = vsub.f32 %v1292_v12, %v1300_v33  ;;  %v2507_v12 = vld [vmem:[#allocation19] sm:$0xff]   ;;  %v2123_v33 = vld [vmem:[#allocation20] ss:$0 sm:$0xff] }
 0x62f   : > { %v1313_v35 = vmul.f32 1.442695, %v1308_v34 }
 0x630   : > { %v1303_v36 = vpop.xlane.xlu1 %1302 }
 0x631   : > { %2521 = vpow2.f32 %v1313_v35  ;;  %v1309_v37 = vsub.f32 %v1293_v19, %v1303_v36 }
 0x633   : > { %v1315_v38 = vmul.f32 1.442695, %v1309_v37 }
 0x634   : > { %v1306_v44 = vpop.xlane.xlu1 %1305 }
 0x635   : > { %2523 = vpow2.f32 %v1315_v38  ;;  %v1310_v45 = vsub.f32 %v1294_v26, %v1306_v44 }
 0x637   : > { %v1317_v46 = vmul.f32 1.442695, %v1310_v45 }
 0x63b   : > { %v2522_v39 = vpop.eup %2521 }
 0x63c   : > { %v1322_v40 = vsel %vm1096_vm4, %v2522_v39, 0.0 }
 0x63d   : > { %1323 = vadd.xlane.f32.xlu1 %v1322_v40 }
 0x63f   : > { %v2524_v41 = vpop.eup %2523 }
 0x640   : > { %v1325_v42 = vsel %vm1096_vm4, %v2524_v41, 0.0 }
 0x641   : > { %1326 = vadd.xlane.f32.xlu0 %v1325_v42 }
 0x64e   : > { %1092 = vrot.lane.b32.xlu1 %v3862_v56, %s3178_s30 }
 0x657   : > { %1090 = vrot.lane.b32.xlu0 %v3862_v56, %s3177_s27  ;;  %v1321_v43 = vpop.xlane.xlu0 %1320  ;;  %s3183_s27 = smov [#allocation31]  }
 0x658   : > { %2525 = vrcp.f32 %v1321_v43  ;;  %s3051_s30 = sshll.u32 %s3183_s27, 4  ;;  %s3052_s30 = int_to_ptr.vmem [resolvable:$false] %s3051_s30 }
 0x659   : > { %2527 = vpow2.f32 %v1317_v46  ;;  %v2509_v46 = vld [vmem:[#allocation25] sm:$0xff]   ;;  %p3054_p10 = scmp.lt.s32.totalorder %s3939_s7, %s3052_s30 }
 0x662   : > { %v2526_v47 = vpop.eup %2525 }
 0x663   : > { %v1335_v48 = vmul.f32 %v2526_v47, %v2520_v31  ;;  %v2528_v50 = vpop.eup %2527  ;;  %v2510_v47 = vld [vmem:[#allocation25 + $0x8] sm:$0xff]  }
 0x664   : > { %v1328_v51 = vsel %vm1096_vm4, %v2528_v50, 0.0 }
 0x665   : > { %v1339_v49 = vpack.c.bf16 %v1335_v48, %v1335_v48  ;;  %v2512_v48 = vld [vmem:[#allocation28 + $0x8] sm:$0xff]  }
 0x667   : > { %2230 = vmatmul.mubr.msk.bf16.vlgmr.msra.gmra.mrb[12].mxu1 %vm1096_vm4, %v1339_v49 }
 0x668   : > { %2241 = vmatprep.mubr.msk.bf16.mxu1 %vm3176_vm1, %v3175_v9 }
 0x672   : > { %1329 = vadd.xlane.f32.xlu1 %v1328_v51 }
 0x683   : > { %1094 = vrot.lane.b32.xlu1 %v3862_v56, %s3179_s21  ;;  %s3053_s21 = scalar_lea.vmem %s3052_s30, 256 }
 0x684   : > { %p3055_p11 = scmp.lt.s32.totalorder %s3053_s21, %s3047_s23 }
 0x686   : > { %p3056_p5 = por %p3055_p11, %p3054_p10 }
 0x688   : > { %p3057_p7 = pnand %p3056_p5, %p3050_p2 }
 0x6ca   : > { %v1324_v52 = vpop.xlane.xlu1 %1323 }
 0x6cb   : > { %2529 = vrcp.f32 %v1324_v52 }
 0x6ce   : > { %v1327_v53 = vpop.xlane.xlu0 %1326  ;;  %v1093_v54 = vpop.permute.xlu1 %1092 }
 0x6cf   : > { %2531 = vrcp.f32 %v1327_v53  ;;  %v1440_v55 = vsel %vm1346_vm5, %v1093_v54, 0 }
 0x6d0   : > { %2240 = vmatpush3.bf16.msra.mxu1 %v1440_v55 }
 0x6d1   : > { %2251 = vmatprep.subr.bf16.mxu1 %v3175_v9 }
 0x6d2   : > { %v1091_v57 = vpop.permute.xlu0 %1090 }
 0x6d3   : > { %v1394_v58 = vsel %vm1346_vm5, %v1091_v57, 0 }
 0x6d4   : > { %2234 = vmatpush3.bf16.msra.mxu0 %v1394_v58  ;;  %v2127_v58 = vld [vmem:[#allocation22] ss:$0 sm:$0xff] }
 0x6d5   : > { %v2530_v59 = vpop.eup %2529  ;;  %2245 = vmatprep.subr.bf16.mxu0 %v3175_v9 }
 0x6d6   : > { %v1336_v60 = vmul.f32 %v2530_v59, %v2522_v39 }
 0x6d8   : > { %v1340_v61 = vpack.c.bf16 %v1336_v60, %v1336_v60 }
 0x6d9   : > { %v2532_v56 = vpop.eup %2531 }
 0x6da   : > { %v1337_v62 = vmul.f32 %v2532_v56, %v2524_v41  ;;  %2236 = vmatmul.mubr.msk.bf16.vlgmr.msra.gmra.mrb[16].mxu0 %vm1096_vm4, %v1340_v61  ;;  %v2128_v61 = vld [vmem:[#allocation23] ss:$0 sm:$0xff] }
 0x6db   : > { %2247 = vmatprep.mubr.msk.bf16.mxu0 %vm3176_vm1, %v3175_v9 }
 0x6dc   : > { %v1341_v63 = vpack.c.bf16 %v1337_v62, %v1337_v62 }
 0x6de   : > { %2242 = vmatmul.mubr.msk.bf16.vlgmr.msra.gmra.mrb[16].mxu1 %vm1096_vm4, %v1341_v63 }
 0x6df   : > { %2255 = vmatprep.mubr.msk.bf16.mxu1 %vm3176_vm1, %v3175_v9  ;;  %2252 = vmatpush3.bf16.msra.mxu1 %v2507_v12  ;;  %v2133_v12 = vld [vmem:[#allocation29] ss:$0 sm:$0xff] }
 0x6e0   : > { %2253 = vmatprep.subr.bf16.mxu1 %v3175_v9 }
 0x6e3   : > { %2254 = vmatpush3.bf16.msra.mxu1 %v2508_v21 }
 0x6e4   : > { %2267 = vmatprep.subr.bf16.mxu1 %v3175_v9 }
 0x6ff   : > { %v1330_v1 = vpop.xlane.xlu1 %1329 }
 0x700   : > { %2533 = vrcp.f32 %v1330_v1  ;;  %v2513_v1 = vld [vmem:[#allocation28 + $0x10] sm:$0xff]  }
 0x703   : > { %v1095_v2 = vpop.permute.xlu1 %1094 }
 0x704   : > { %v1486_v3 = vsel %vm1346_vm5, %v1095_v2, 0  ;;  %v2514_v2 = vld [vmem:[#allocation28 + $0x18] sm:$0xff]  }
 0x705   : > { %2246 = vmatpush3.bf16.msra.mxu0 %v1486_v3  ;;  %v2129_v3 = vld [vmem:[#allocation26] ss:$0 sm:$0xff] }
 0x706   : > { %2259 = vmatprep.subr.bf16.mxu0 %v3175_v9 }
 0x70a   : > { %v2534_v4 = vpop.eup %2533 }
 0x70b   : > { %v1338_v5 = vmul.f32 %v2534_v4, %v2528_v50 }
 0x70d   : > { %v1342_v6 = vpack.c.bf16 %v1338_v5, %v1338_v5 }
 0x70f   : > { %2248 = vmatmul.mubr.msk.bf16.vlgmr.msra.gmra.mrb[20].mxu0 %vm1096_vm4, %v1342_v6 }
 0x710   : > { %2263 = vmatprep.mubr.msk.bf16.mxu0 %vm3176_vm1, %v3175_v9  ;;  %2260 = vmatpush3.bf16.msra.mxu0 %v2509_v46 }
 0x711   : > { %2261 = vmatprep.subr.bf16.mxu0 %v3175_v9 }
 0x714   : > { %2262 = vmatpush3.bf16.msra.mxu0 %v2510_v47 }
 0x73a   : > { %v1384_v7 = vpop.f32.mrb[12].mxu1 }
 0x73b   : > { %v2231_v8 = vpop.f32.mrb[13].mxu1 }
 0x73c   : > { %v1387_v10 = vpop.f32.mrb[14].mxu1 }
 0x73d   : > { %v2232_v11 = vpop.f32.mrb[15].mxu1 }
 0x7ad   : > { %v1430_v13 = vpop.f32.mrb[16].mxu0 }
 0x7ae   : > { %1529 = vrot.lane.b32.xlu0 %v1430_v13, %s3180_s0  ;;  %v2237_v14 = vpop.f32.mrb[17].mxu0 }
 0x7af   : > { %v1433_v15 = vpop.f32.mrb[18].mxu0 }
 0x7b0   : > { %v2238_v16 = vpop.f32.mrb[19].mxu0 }
 0x7b1   : > { %v1476_v17 = vpop.f32.mrb[16].mxu1 }
 0x7b2   : > { %1533 = vrot.lane.b32.xlu1 %v1476_v17, %s3181_s19  ;;  %v2243_v18 = vpop.f32.mrb[17].mxu1 }
 0x7b3   : > { %v1479_v19 = vpop.f32.mrb[18].mxu1 }
 0x7b4   : > { %v2244_v20 = vpop.f32.mrb[19].mxu1 }
 0x7e2   : > { %v1522_v22 = vpop.f32.mrb[20].mxu0 }
 0x7e3   : > { %1537 = vrot.lane.b32.xlu0 %v1522_v22, %s3182_s1  ;;  %v2249_v23 = vpop.f32.mrb[21].mxu0 }
 0x7e4   : > { %v1525_v24 = vpop.f32.mrb[22].mxu0 }
 0x7e5   : > { %v2250_v25 = vpop.f32.mrb[23].mxu0 }
 0x820   : > { %v1530_v26 = vpop.permute.xlu0 %1529 }
 0x821   : > { %v1540_v28 = vsel %vm1096_vm4, %v1384_v7, %v1530_v26 }
 0x824   : > { %v1534_v27 = vpop.permute.xlu1 %1533 }
 0x825   : > { %v1542_v29 = vsel %vm1541_vm6, %v1540_v28, %v1534_v27 }
 0x855   : > { %v1538_v30 = vpop.permute.xlu0 %1537 }
 0x856   : > { %v1544_v31 = vsel %vm1543_vm7, %v1542_v29, %v1538_v30 }
 0x857   : > { %v1545_v32 = vpack.c.bf16 %v1544_v31, %v1544_v31 }
 0x859   : > { %2256 = vmatmul.mubr.msk.bf16.vlgmr.msra.gmra.mrb[20].mxu1 %vm842_vm0, %v1545_v32 }
 0x85a   : > { %2275 = vmatprep.mubr.msk.bf16.mxu1 %vm3176_vm1, %v3175_v9 }
 0x92c   : > { %v1606_v34 = vpop.f32.mrb[20].mxu1 }
 0x92d   : > { %v1607_v35 = vadd.f32 %v2123_v33, %v1606_v34  ;;  %v2257_v36 = vpop.f32.mrb[21].mxu1 }
 0x92e   : > { %v1609_v37 = vpop.f32.mrb[22].mxu1 }
 0x92f   : > { %v3919_v38 = vadd.f32 %v1607_v35, %v3820_v0  ;;  %v2258_v39 = vpop.f32.mrb[23].mxu1  ;;  %v2511_v0 = vld [vmem:[#allocation28] sm:$0xff]  }
 0x930   : > { %2268 = vmatpush3.bf16.msra.mxu1 %v2511_v0 }
 0x931   : > { %v1615_v40 = vsel %vm842_vm0, %v3919_v38, 0.0  ;;  %2269 = vmatprep.subr.bf16.mxu1 %v3175_v9 }
 0x932   : > { %1616 = vadd.xlane.f32.xlu1 %v1615_v40 }
 0x934   : > { %2270 = vmatpush3.bf16.msra.mxu1 %v2512_v48 }
 0x935   : > { %2271 = vmatprep.subr.bf16.mxu1 %v3175_v9 }
 0x938   : > { %2272 = vmatpush3.bf16.msra.mxu1 %v2513_v1 }
 0x939   : > { %2273 = vmatprep.subr.bf16.mxu1 %v3175_v9 }
 0x93c   : > { %2274 = vmatpush3.bf16.msra.mxu1 %v2514_v2 }
 0x9bf   : > { %v1617_v41 = vpop.xlane.xlu1 %1616 }
 0x9c0   : > { %v1618_v42 = vmul.f32 0.03125, %v1617_v41 }
 0x9c2   : > { %v1619_v43 = vsub.f32 %v3919_v38, %v1618_v42 }
 0x9c4   : > { %v1620_v44 = vmul.f32 %v1619_v43, %v1619_v43  ;;  %v1640_v59 = vmul.f32 %v2127_v58, %v1619_v43 }
 0x9c6   : > { %v1621_v45 = vsel %vm842_vm0, %v1620_v44, 0.0 }
 0x9c7   : > { %1622 = vadd.xlane.f32.xlu0 %v1621_v45 }
 0xa54   : > { %v1623_v49 = vpop.xlane.xlu0 %1622 }
 0xa55   : > { %v1624_v50 = vmul.f32 0.032258064, %v1623_v49 }
 0xa57   : > { %2535 = vrsqrt.f32 %v1624_v50  ;;  %vm1627_vm8 = vcmp.eq.f32.partialorder %v1624_v50, inf  ;;  %v1630_v53 = vand.u32 2147483648, %v1624_v50  ;;  %vm1629_vm9 = vcmp.eq.f32.partialorder %v1624_v50, 0.0 }
 0xa61   : > { %v2536_v51 = vpop.eup %2535 }
 0xa62   : > { %v1626_v52 = vmul.f32 %v2536_v51, %v1624_v50 }
 0xa64   : > { %v1628_v54 = vsel %vm1627_vm8, %v1624_v50, %v1626_v52 }
 0xa65   : > { %v1631_v55 = vsel %vm1629_vm9, %v1630_v53, %v1628_v54 }
 0xa66   : > { %v1632_v57 = vadd.f32 1e-06, %v1631_v55 }
 0xa68   : > { %2537 = vrcp.f32 %v1632_v57 }
 0xa72   : > { %v2538_v60 = vpop.eup %2537 }
 0xa73   : > { %v1641_v56 = vmul.f32 %v2538_v60, %v1640_v59 }
 0xa75   : > { %v1648_v62 = vadd.f32 %v2128_v61, %v1641_v56 }
 0xa77   : > { %v1649_v63 = vpack.c.bf16 %v1648_v62, %v1648_v62 }
 0xa79   : > { %2264 = vmatmul.mubr.msk.bf16.vlgmr.msra.gmra.mrb[24].mxu0 %vm842_vm0, %v1649_v63 }
 0xb4c   : > { %v1710_v4 = vpop.f32.mrb[24].mxu0 }
 0xb4d   : > { %v1711_v5 = vadd.f32 %v2129_v3, %v1710_v4  ;;  %v2265_v6 = vpop.f32.mrb[25].mxu0 }
 0xb4e   : > { %v1713_v7 = vpop.f32.mrb[26].mxu0 }
 0xb4f   : > { %v1716_v8 = vmax.f32 %v1711_v5, 0.0  ;;  %v2266_v10 = vpop.f32.mrb[27].mxu0 }
 0xb51   : > { %v1717_v11 = vpack.c.bf16 %v1716_v8, %v1716_v8 }
 0xb53   : > { %2276 = vmatmul.mubr.msk.bf16.vlgmr.msra.gmra.mrb[24].mxu1 %vm1757_vm10, %v1717_v11 }
 0xc26   : > { %v1795_v13 = vpop.f32.mrb[24].mxu1 }
 0xc27   : > { %v1796_v9 = vadd.f32 %v2133_v12, %v1795_v13  ;;  %v2277_v14 = vpop.f32.mrb[25].mxu1 }
 0xc28   : > { %v1798_v15 = vpop.f32.mrb[26].mxu1 }
 0xc29   : > { %v1801_v16 = vadd.f32 %v1796_v9, %v3919_v38  ;;  %v2278_v17 = vpop.f32.mrb[27].mxu1 }
 0xc2b   : > { %1802 = vst.msk [vmem:[%s836_s22] sm:$0xff] %vm842_vm0, %v1801_v16 }
 0xc2c   : > { %3060 = shalt.err (!%p3057_p7)
}
 0xc2d   : > { %s3061_s4 = scalar_lea.hbm %s3937_s3, 128  ;;  %s3065_s1 = scalar_lea.hbm %s4081_s5, 256 }
 0xc2e   : > { %p3062_p0 = scmp.ne.s32.totalorder %s3937_s3, %s3061_s4  ;;  %p3066_p8 = scmp.lt.u32.totalorder %s3937_s3, %s4081_s5 }
 0xc2f   : > { %p3067_p9 = scmp.lt.u32.totalorder %s3065_s1, %s3061_s4  ;;  %p3069_p13 = scmp.lt.u32.totalorder %s3061_s4, %s3937_s3 }
 0xc30   : > { %p3063_p6 = pnand %p3062_p0, %p4082_p1 }
 0xc31   : > { %p3068_p4 = por %p3067_p9, %p3066_p8 }
 0xc32   : > { %p3064_p12 = pneg %p3063_p6 }
 0xc33   : > { %p3070_p3 = por %p3069_p13, %p3068_p4 }
 0xc35   : > { %p3071_p2 = pnand %p3070_p3, %p3064_p12 }
 0xc37   : > { %3074 = shalt.err (!%p3071_p2)
}
 0xc38   : > { %2347 = dma.vmem_to_hbm [thread:$0]  (%p4082_p1), %s3939_s7, 128, %s3937_s3, %s1804_s29  }
 0xc39 PF: > { %s4083_s2 = sld [smem:[#allocation44_spill]]  ;;  %s4084_s18 = sld [smem:[#allocation47_spill]] }
 0xc3a   : > { %p4085_p10 = scmp.ne.s32.totalorder %s4053_s28, 0 }
 0xc3f   : > { %s1829_s23 = sand.u32 1, %s4083_s2   ;;  %p4086_p11 = scmp.ge.s32.totalorder %s4084_s18, 2 }
 0xc40   : > { %s1830_s27 = scalar_lea.sflag [#allocation4], %s1829_s23 }
 0xc41   : > { %p2406_p5 = pnand %p4086_p11, %p4085_p10 }
 0xc43   : > { %3136 = dma.done.wait (!%p2406_p5), %s1830_s27, 128  }
 0xc44   : > { %3138 = vsyncadd (!%p2406_p5), %s1830_s27, 4294967168  ;;  %s4087_s27 = sld [smem:[#allocation45_spill]]  ;;  %s4088_s28 = sld [smem:[#allocation46_spill]] }
 0xc45   : > { %p42_p7 = scmp.ge.s32.totalorder %s3659_s24, 4   ;;  %s4089_s29 = smov %s3670_s25 }
 0xc46   : > { %s4090_s30 = smov %s3659_s24 }
 0xc47   :  { %44 = sbr.rel (!%p42_p7) target bundleno = 26 (0x1a), region = 214 }
 0xc4e   :  { %1835 = vsyncpa [#allocation3], 1 }
 0xc4f   :  { %1837 = vsyncpa [#allocation3 + $0x1], 1 }
 0xc50   :  { %1838 = vsyncpa [#allocation6], 1 }
 0xc51   :  { %1840 = vsyncpa [#allocation6 + $0x1], 1 }
 0xc52   :  { %1841 = vsyncpa [#allocation9], 1 }
 0xc53   :  { %1842 = vsyncpa [#allocation12], 1 }
 0xc54   :  { %1843 = vsyncpa [#allocation15], 1 }
 0xc55   :  { %1844 = vsyncpa [#allocation18], 1 }
 0xc56   :  { %1845 = vsyncpa [#allocation21], 1 }
 0xc57   :  { %1846 = vsyncpa [#allocation24], 1 }
 0xc58   :  { %1847 = vsyncpa [#allocation27], 1 }
 0xc59   :  { %1848 = vsyncpa [#allocation30], 1 }
 0xc5a   :  { %1849 = vsyncpa [#allocation4], 1 }
 0xc5b   :  { %1851 = vsyncpa [#allocation4 + $0x1], 1 }

// kernel: tpu_custom_call.1
= control target key start
LH: loop header
LB: loop body
LE: loop exit
PB: predicated region body
PF: predicated region fallthrough
CT: control target
= control target key end

     0   :  { %s3982_s0 = inlined_call_operand.hbm [shape: f32[2,8,32], index: 0, kind: input, shape index: {}]   ;;  %s3983_s1 = inlined_call_operand.hbm [shape: f32[2,1,8], index: 1, kind: input, shape index: {}]   ;;  %s3984_s2 = inlined_call_operand.hbm [shape: f32[1,32], index: 2, kind: input, shape index: {}]   ;;  %s3985_s3 = inlined_call_operand.hbm [shape: f32[1,32], index: 3, kind: input, shape index: {}]   ;;  %s3986_s4 = inlined_call_operand.hbm [shape: bf16[32,32], index: 4, kind: input, shape index: {}]   ;;  %s3987_s5 = inlined_call_operand.hbm [shape: f32[1,32], index: 5, kind: input, shape index: {}]   ;;  %s3988_s6 = inlined_call_operand.hbm [shape: bf16[32,32], index: 6, kind: input, shape index: {}]   ;;  %s3989_s7 = inlined_call_operand.hbm [shape: f32[1,32], index: 7, kind: input, shape index: {}]   ;;  %s3990_s8 = inlined_call_operand.hbm [shape: bf16[32,32], index: 8, kind: input, shape index: {}]   ;;  %s3991_s9 = inlined_call_operand.hbm [shape: f32[1,32], index: 9, kind: input, shape index: {}]   ;;  %s3992_s10 = inlined_call_operand.hbm [shape: bf16[32,32], index: 10, kind: input, shape index: {}]   ;;  %s3993_s11 = inlined_call_operand.hbm [shape: f32[1,32], index: 11, kind: input, shape index: {}]   ;;  %s3994_s12 = inlined_call_operand.hbm [shape: f32[1,32], index: 12, kind: input, shape index: {}]   ;;  %s3995_s13 = inlined_call_operand.hbm [shape: f32[1,32], index: 13, kind: input, shape index: {}]   ;;  %s3996_s14 = inlined_call_operand.hbm [shape: bf16[32,64], index: 14, kind: input, shape index: {}]   ;;  %s3997_s15 = inlined_call_operand.hbm [shape: f32[1,64], index: 15, kind: input, shape index: {}]   ;;  %s3998_s16 = inlined_call_operand.hbm [shape: bf16[64,32], index: 16, kind: input, shape index: {}]   ;;  %s3999_s17 = inlined_call_operand.hbm [shape: f32[1,32], index: 17, kind: input, shape index: {}]   ;;  %s4000_s18 = inlined_call_operand.hbm [shape: f32[2,8,32], index: 18, kind: output, shape index: {}]  }
   0x1   :  { %4018 = sst [smem:[#allocation50_spill]] %s3982_s0 }
   0x2   :  { %4019 = sst [smem:[#allocation51_spill]] %s3983_s1 }
   0x3   :  { %4020 = sst [smem:[#allocation52_spill]] %s3984_s2 }
   0x4   :  { %4021 = sst [smem:[#allocation53_spill]] %s3985_s3 }
   0x5   :  { %4022 = sst [smem:[#allocation54_spill]] %s3986_s4 }
   0x6   :  { %4023 = sst [smem:[#allocation55_spill]] %s3987_s5 }
   0x7   :  { %4024 = sst [smem:[#allocation56_spill]] %s3988_s6 }
   0x8   :  { %4025 = sst [smem:[#allocation57_spill]] %s3989_s7 }
   0x9   :  { %4026 = sst [smem:[#allocation58_spill]] %s3990_s8 }
   0xa   :  { %4027 = sst [smem:[#allocation59_spill]] %s4000_s18 }
   0xb   :  { %23 = vsyncpa [#allocation3], 0 }
   0xc   :  { %25 = vsyncpa [#allocation3 + $0x1], 0 }
   0xd   :  { %26 = vsyncpa [#allocation6], 0 }
   0xe   :  { %28 = vsyncpa [#allocation6 + $0x1], 0 }
   0xf   :  { %29 = vsyncpa [#allocation9], 0 }
  0x10   :  { %30 = vsyncpa [#allocation12], 0 }
  0x11   :  { %31 = vsyncpa [#allocation15], 0 }
  0x12   :  { %32 = vsyncpa [#allocation18], 0 }
  0x13   :  { %33 = vsyncpa [#allocation21], 0 }
  0x14   :  { %34 = vsyncpa [#allocation24], 0 }
  0x15   :  { %35 = vsyncpa [#allocation27], 0 }
  0x16   :  { %36 = vsyncpa [#allocation30], 0 }
  0x17   :  { %37 = vsyncpa [#allocation4], 0 }
  0x18   :  { %39 = vsyncpa [#allocation4 + $0x1], 0  ;;  %s3279_s27 = smov 0   ;;  %s3281_s28 = smov 0  }
  0x19   :  { %s3283_s29 = smov 0   ;;  %s3285_s30 = smov 0  }
  0x1a LB: > { %4028 = sst [smem:[#allocation44_spill]] %s3141_s27  ;;  %s3155_s0 = smov [#allocation7]   ;;  %s3153_s30 = sphi %s3285_s30, %s4090_s30   ;;  %s3149_s29 = sphi %s3283_s29, %s4089_s29   ;;  %s3145_s28 = sphi %s3281_s28, %s4088_s28   ;;  %s3141_s27 = sphi %s3279_s27, %s4087_s27  }
  0x1b   : > { %4029 = sst [smem:[#allocation45_spill]] %s3145_s28  ;;  %s477_s19 = sshll.u32 %s3155_s0, 4  ;;  %s3305_s19 = int_to_ptr.vmem [resolvable:$true] %s477_s19 }
  0x1c   : > { %4030 = sst [smem:[#allocation46_spill]] %s3149_s29  ;;  %s3300_s1 = sadd.s32 4294967295, %s3153_s30  }
  0x1d   : > { %4031 = sst [smem:[#allocation47_spill]] %s3153_s30  ;;  %p2060_p0 = scmp.ge.s32.totalorder %s3153_s30, 1 }
  0x1e   : > { %4032 = sst [smem:[#allocation48_spill]] %s3300_s1  ;;  %p4013_p1 = scmp.eq.s32.totalorder %s3300_s1, 0 }
  0x1f   : > { %p464_p2 = scmp.lt.s32.totalorder %s3153_s30, 3  ;;  %s3156_s21 = smov [#allocation8]  }
  0x20   : > { %s488_s22 = sshll.u32 %s3156_s21, 4  ;;  %s3157_s2 = smov [#allocation11]   ;;  %s3314_s22 = int_to_ptr.vmem [resolvable:$true] %s488_s22 }
  0x21   : > { %p3307_p3 = pnand %p2060_p0, %p464_p2  ;;  %s512_s23 = sshll.u32 %s3157_s2, 4  ;;  %s3322_s23 = int_to_ptr.vmem [resolvable:$true] %s512_s23 }
  0x22   : > { %s3158_s25 = smov [#allocation14]  }
  0x23   : > { %s4033_s20 = scalar_select %p3307_p3, 1, 0 }
  0x24   : > { %p2349_p5 = pneg %p3307_p3  ;;  %s3324_s26 = sshll.u32 %s3158_s25, 4  ;;  %s537_s26 = int_to_ptr.vmem [resolvable:$true] %s3324_s26 }
  0x25   : > { %4034 = sst [smem:[#allocation49_spill]] %s4033_s20  ;;  %s4036_s20 = sld [smem:[#allocation52_spill]] }
  0x26   : > { %p3318_p6 = pnand %p2349_p5, %p4013_p1 }
  0x28   : > { %p3334_p8 = pneg %p3318_p6 }
  0x2b   : > { %s2539_s27 = scalar_lea.hbm %s4036_s20, 16 }
  0x2c   : > { %p2540_p7 = scmp.ne.s32.totalorder %s4036_s20, %s2539_s27  ;;  %p2546_p11 = scmp.lt.u32.totalorder %s2539_s27, %s4036_s20 }
  0x2e   : > { %p2542_p9 = pnand %p3334_p8, %p2540_p7 }
  0x30   : > { %p2543_p10 = pneg %p2542_p9 }
  0x32   : > { %p2548_p12 = pnand %p2546_p11, %p2543_p10 }
  0x34   : > { %2551 = shalt.err (!%p2548_p12)
}
  0x35   : > { %s2552_s18 = scalar_lea.vmem %s3305_s19, 16  ;;  %s2559_s28 = scalar_lea.vmem %s3305_s19, 32 }
  0x36   : > { %p2553_p13 = scmp.ne.s32.totalorder %s3305_s19, %s2552_s18  ;;  %p2560_p5 = scmp.lt.s32.totalorder %s3305_s19, %s3305_s19 }
  0x37   : > { %p2561_p7 = scmp.lt.s32.totalorder %s2559_s28, %s2552_s18 }
  0x38   : > { %p2555_p0 = pnand %p2553_p13, %p3334_p8 }
  0x39   : > { %p2562_p9 = por %p2561_p7, %p2560_p5 }
  0x3a   : > { %p2556_p2 = pneg %p2555_p0 }
  0x3c   : > { %p2563_p4 = pnand %p2562_p9, %p2556_p2 }
  0x3e   : > { %2566 = shalt.err (!%p2563_p4)
}
  0x3f   : > { %2352 = dma.hbm_to_vmem [thread:$0]  (!%p3318_p6), %s4036_s20, 16, %s3305_s19, [#allocation6]  }
  0x40   : > { %s4038_s3 = sld [smem:[#allocation53_spill]] }
  0x46   : > { %s2567_s25 = scalar_lea.hbm %s4038_s3, 16 }
  0x47   : > { %p2568_p10 = scmp.ne.s32.totalorder %s4038_s3, %s2567_s25  ;;  %p2574_p4 = scmp.lt.u32.totalorder %s2567_s25, %s4038_s3 }
  0x49   : > { %p2570_p11 = pnand %p2568_p10, %p3334_p8 }
  0x4b   : > { %p2571_p12 = pneg %p2570_p11 }
  0x4d   : > { %p2576_p13 = pnand %p2574_p4, %p2571_p12 }
  0x4f   : > { %2579 = shalt.err (!%p2576_p13)
}
  0x50   : > { %s2580_s19 = scalar_lea.vmem %s3314_s22, 16  ;;  %s2587_s29 = scalar_lea.vmem %s3314_s22, 32 }
  0x51   : > { %p2581_p0 = scmp.ne.s32.totalorder %s3314_s22, %s2580_s19  ;;  %p2588_p7 = scmp.lt.s32.totalorder %s3314_s22, %s3314_s22 }
  0x52   : > { %p2589_p9 = scmp.lt.s32.totalorder %s2587_s29, %s2580_s19 }
  0x53   : > { %p2583_p2 = pnand %p2581_p0, %p3334_p8 }
  0x54   : > { %p2590_p10 = por %p2589_p9, %p2588_p7 }
  0x55   : > { %p2584_p5 = pneg %p2583_p2 }
  0x57   : > { %p2591_p11 = pnand %p2590_p10, %p2584_p5 }
  0x59   : > { %2594 = shalt.err (!%p2591_p11)
}
  0x5a   : > { %2355 = dma.hbm_to_vmem [thread:$0]  (!%p3318_p6), %s4038_s3, 16, %s3314_s22, [#allocation9]  }
  0x5b   : > { %s4039_s5 = sld [smem:[#allocation55_spill]] }
  0x61   : > { %s2595_s21 = scalar_lea.hbm %s4039_s5, 16 }
  0x62   : > { %p2596_p12 = scmp.ne.s32.totalorder %s4039_s5, %s2595_s21  ;;  %p2602_p0 = scmp.lt.u32.totalorder %s2595_s21, %s4039_s5 }
  0x64   : > { %p2598_p4 = pnand %p2596_p12, %p3334_p8 }
  0x66   : > { %p2599_p13 = pneg %p2598_p4 }
  0x68   : > { %p2604_p2 = pnand %p2602_p0, %p2599_p13 }
  0x6a   : > { %2607 = shalt.err (!%p2604_p2)
}
  0x6b   : > { %s2608_s22 = scalar_lea.vmem %s3322_s23, 16  ;;  %s2615_s29 = scalar_lea.vmem %s3322_s23, 32 }
  0x6c   : > { %p2609_p5 = scmp.ne.s32.totalorder %s3322_s23, %s2608_s22  ;;  %p2616_p10 = scmp.lt.s32.totalorder %s3322_s23, %s3322_s23 }
  0x6d   : > { %p2617_p11 = scmp.lt.s32.totalorder %s2615_s29, %s2608_s22 }
  0x6e   : > { %p2611_p7 = pnand %p2609_p5, %p3334_p8 }
  0x6f   : > { %p2618_p12 = por %p2617_p11, %p2616_p10 }
  0x70   : > { %p2612_p9 = pneg %p2611_p7 }
  0x72   : > { %p2619_p4 = pnand %p2618_p12, %p2612_p9 }
  0x74   : > { %2622 = shalt.err (!%p2619_p4)
}
  0x75   : > { %2361 = dma.hbm_to_vmem [thread:$0]  (!%p3318_p6), %s4039_s5, 16, %s3322_s23, [#allocation12]  }
  0x76   : > { %s3159_s1 = smov [#allocation17]   ;;  %s4040_s7 = sld [smem:[#allocation57_spill]] }
  0x77   : > { %s560_s0 = sshll.u32 %s3159_s1, 4  ;;  %s561_s0 = int_to_ptr.vmem [resolvable:$true] %s560_s0 }
  0x7c   : > { %s2623_s18 = scalar_lea.hbm %s4040_s7, 16 }
  0x7d   : > { %p2624_p13 = scmp.ne.s32.totalorder %s4040_s7, %s2623_s18  ;;  %p2630_p5 = scmp.lt.u32.totalorder %s2623_s18, %s4040_s7 }
  0x7f   : > { %p2626_p0 = pnand %p2624_p13, %p3334_p8 }
  0x81   : > { %p2627_p2 = pneg %p2626_p0 }
  0x83   : > { %p2632_p7 = pnand %p2630_p5, %p2627_p2 }
  0x85   : > { %2635 = shalt.err (!%p2632_p7)
}
  0x86   : > { %s2636_s23 = scalar_lea.vmem %s537_s26, 16  ;;  %s2643_s30 = scalar_lea.vmem %s537_s26, 32 }
  0x87   : > { %p2637_p9 = scmp.ne.s32.totalorder %s537_s26, %s2636_s23  ;;  %p2644_p12 = scmp.lt.s32.totalorder %s537_s26, %s537_s26 }
  0x88   : > { %p2645_p4 = scmp.lt.s32.totalorder %s2643_s30, %s2636_s23 }
  0x89   : > { %p2639_p10 = pnand %p2637_p9, %p3334_p8 }
  0x8a   : > { %p2646_p1 = por %p2645_p4, %p2644_p12 }
  0x8b   : > { %p2640_p11 = pneg %p2639_p10 }
  0x8d   : > { %p2647_p3 = pnand %p2646_p1, %p2640_p11 }
  0x8f   : > { %2650 = shalt.err (!%p2647_p3)
}
  0x90   : > { %2367 = dma.hbm_to_vmem [thread:$0]  (!%p3318_p6), %s4040_s7, 16, %s537_s26, [#allocation15]  }
  0x91   : > { %s2651_s18 = scalar_lea.hbm %s3991_s9, 16 }
  0x92   : > { %p2652_p13 = scmp.ne.s32.totalorder %s3991_s9, %s2651_s18  ;;  %p2658_p3 = scmp.lt.u32.totalorder %s2651_s18, %s3991_s9 }
  0x94   : > { %p2654_p0 = pnand %p2652_p13, %p3334_p8 }
  0x96   : > { %p2655_p1 = pneg %p2654_p0 }
  0x98   : > { %p2660_p2 = pnand %p2658_p3, %p2655_p1 }
  0x9a   : > { %2663 = shalt.err (!%p2660_p2)
}
  0x9b   : > { %s2664_s23 = scalar_lea.vmem %s561_s0, 16  ;;  %s2671_s26 = scalar_lea.vmem %s561_s0, 32 }
  0x9c   : > { %p2665_p5 = scmp.ne.s32.totalorder %s561_s0, %s2664_s23  ;;  %p2672_p10 = scmp.lt.s32.totalorder %s561_s0, %s561_s0 }
  0x9d   : > { %p2673_p11 = scmp.lt.s32.totalorder %s2671_s26, %s2664_s23 }
  0x9e   : > { %p2667_p7 = pnand %p2665_p5, %p3334_p8 }
  0x9f   : > { %p2674_p12 = por %p2673_p11, %p2672_p10 }
  0xa0   : > { %p2668_p9 = pneg %p2667_p7 }
  0xa2   : > { %p2675_p4 = pnand %p2674_p12, %p2668_p9 }
  0xa4   : > { %2678 = shalt.err (!%p2675_p4)
}
  0xa5   : > { %2373 = dma.hbm_to_vmem [thread:$0]  (!%p3318_p6), %s3991_s9, 16, %s561_s0, [#allocation18]  }
  0xa6   : > { %s3160_s1 = smov [#allocation20]   ;;  %s3161_s25 = smov [#allocation23]  }
  0xa7   : > { %s584_s21 = sshll.u32 %s3160_s1, 4  ;;  %s606_s18 = sshll.u32 %s3161_s25, 4  ;;  %s585_s21 = int_to_ptr.vmem [resolvable:$true] %s584_s21  ;;  %s607_s18 = int_to_ptr.vmem [resolvable:$true] %s606_s18 }
  0xa8   : > { %s2679_s22 = scalar_lea.hbm %s3993_s11, 16 }
  0xa9   : > { %p2680_p13 = scmp.ne.s32.totalorder %s3993_s11, %s2679_s22  ;;  %p2686_p3 = scmp.lt.u32.totalorder %s2679_s22, %s3993_s11 }
  0xab   : > { %p2682_p0 = pnand %p2680_p13, %p3334_p8 }
  0xad   : > { %p2683_p1 = pneg %p2682_p0 }
  0xaf   : > { %p2688_p2 = pnand %p2686_p3, %p2683_p1 }
  0xb1   : > { %2691 = shalt.err (!%p2688_p2)
}
  0xb2   : > { %s2692_s0 = scalar_lea.vmem %s585_s21, 16  ;;  %s2699_s27 = scalar_lea.vmem %s585_s21, 32 }
  0xb3   : > { %p2693_p5 = scmp.ne.s32.totalorder %s585_s21, %s2692_s0  ;;  %p2700_p10 = scmp.lt.s32.totalorder %s585_s21, %s585_s21 }
  0xb4   : > { %p2701_p11 = scmp.lt.s32.totalorder %s2699_s27, %s2692_s0 }
  0xb5   : > { %p2695_p7 = pnand %p2693_p5, %p3334_p8 }
  0xb6   : > { %p2702_p12 = por %p2701_p11, %p2700_p10 }
  0xb7   : > { %p2696_p9 = pneg %p2695_p7 }
  0xb9   : > { %p2703_p4 = pnand %p2702_p12, %p2696_p9 }
  0xbb   : > { %2706 = shalt.err (!%p2703_p4)
}
  0xbc   : > { %2379 = dma.hbm_to_vmem [thread:$0]  (!%p3318_p6), %s3993_s11, 16, %s585_s21, [#allocation21]  }
  0xbd   : > { %s2707_s22 = scalar_lea.hbm %s3995_s13, 16 }
  0xbe   : > { %p2708_p13 = scmp.ne.s32.totalorder %s3995_s13, %s2707_s22  ;;  %p2714_p3 = scmp.lt.u32.totalorder %s2707_s22, %s3995_s13 }
  0xc0   : > { %p2710_p0 = pnand %p2708_p13, %p3334_p8 }
  0xc2   : > { %p2711_p1 = pneg %p2710_p0 }
  0xc4   : > { %p2716_p2 = pnand %p2714_p3, %p2711_p1 }
  0xc6   : > { %2719 = shalt.err (!%p2716_p2)
}
  0xc7   : > { %s2720_s0 = scalar_lea.vmem %s607_s18, 16  ;;  %s2727_s21 = scalar_lea.vmem %s607_s18, 32 }
  0xc8   : > { %p2721_p5 = scmp.ne.s32.totalorder %s607_s18, %s2720_s0  ;;  %p2728_p10 = scmp.lt.s32.totalorder %s607_s18, %s607_s18 }
  0xc9   : > { %p2729_p11 = scmp.lt.s32.totalorder %s2727_s21, %s2720_s0 }
  0xca   : > { %p2723_p7 = pnand %p2721_p5, %p3334_p8 }
  0xcb   : > { %p2730_p12 = por %p2729_p11, %p2728_p10 }
  0xcc   : > { %p2724_p9 = pneg %p2723_p7 }
  0xce   : > { %p2731_p4 = pnand %p2730_p12, %p2724_p9 }
  0xd0   : > { %2734 = shalt.err (!%p2731_p4)
}
  0xd1   : > { %2385 = dma.hbm_to_vmem [thread:$0]  (!%p3318_p6), %s3995_s13, 16, %s607_s18, [#allocation24]  }
  0xd2   : > { %s3162_s25 = smov [#allocation26]   ;;  %s3163_s19 = smov [#allocation10]  }
  0xd3   : > { %s630_s28 = sshll.u32 %s3162_s25, 4  ;;  %s498_s22 = sshll.u32 %s3163_s19, 4  ;;  %s631_s28 = int_to_ptr.vmem [resolvable:$true] %s630_s28  ;;  %s499_s22 = int_to_ptr.vmem [resolvable:$true] %s498_s22 }
  0xd4   : > { %s2735_s26 = scalar_lea.hbm %s3997_s15, 16 }
  0xd5   : > { %p2736_p13 = scmp.ne.s32.totalorder %s3997_s15, %s2735_s26  ;;  %p2742_p3 = scmp.lt.u32.totalorder %s2735_s26, %s3997_s15 }
  0xd7   : > { %p2738_p0 = pnand %p2736_p13, %p3334_p8 }
  0xd9   : > { %p2739_p1 = pneg %p2738_p0 }
  0xdb   : > { %p2744_p2 = pnand %p2742_p3, %p2739_p1 }
  0xdd   : > { %2747 = shalt.err (!%p2744_p2)
}
  0xde   : > { %s2748_s18 = scalar_lea.vmem %s631_s28, 16  ;;  %s2755_s1 = scalar_lea.vmem %s631_s28, 32 }
  0xdf   : > { %p2749_p5 = scmp.ne.s32.totalorder %s631_s28, %s2748_s18  ;;  %p2756_p10 = scmp.lt.s32.totalorder %s631_s28, %s631_s28 }
  0xe0   : > { %p2757_p11 = scmp.lt.s32.totalorder %s2755_s1, %s2748_s18 }
  0xe1   : > { %p2751_p7 = pnand %p2749_p5, %p3334_p8 }
  0xe2   : > { %p2758_p12 = por %p2757_p11, %p2756_p10 }
  0xe3   : > { %p2752_p9 = pneg %p2751_p7 }
  0xe5   : > { %p2759_p4 = pnand %p2758_p12, %p2752_p9 }
  0xe7   : > { %2762 = shalt.err (!%p2759_p4)
}
  0xe8   : > { %2391 = dma.hbm_to_vmem [thread:$0]  (!%p3318_p6), %s3997_s15, 16, %s631_s28, [#allocation27]  }
  0xe9   : > { %s4041_s4 = sld [smem:[#allocation54_spill]] }
  0xef   : > { %s2763_s26 = scalar_lea.hbm %s4041_s4, 256 }
  0xf0   : > { %p2764_p13 = scmp.ne.s32.totalorder %s4041_s4, %s2763_s26  ;;  %p2770_p3 = scmp.lt.u32.totalorder %s2763_s26, %s4041_s4 }
  0xf2   : > { %p2766_p0 = pnand %p2764_p13, %p3334_p8 }
  0xf4   : > { %p2767_p1 = pneg %p2766_p0 }
  0xf6   : > { %p2772_p2 = pnand %p2770_p3, %p2767_p1 }
  0xf8   : > { %2775 = shalt.err (!%p2772_p2)
}
  0xf9   : > { %s2776_s18 = scalar_lea.vmem %s499_s22, 256  ;;  %p2784_p10 = scmp.lt.s32.totalorder %s499_s22, %s499_s22 }
  0xfa   : > { %p2777_p5 = scmp.ne.s32.totalorder %s499_s22, %s2776_s18  ;;  %p2785_p11 = scmp.lt.s32.totalorder %s2776_s18, %s2776_s18 }
  0xfc   : > { %p2779_p7 = pnand %p2777_p5, %p3334_p8  ;;  %p2786_p12 = por %p2785_p11, %p2784_p10 }
  0xfe   : > { %p2780_p9 = pneg %p2779_p7 }
 0x100   : > { %p2787_p4 = pnand %p2786_p12, %p2780_p9 }
 0x102   : > { %2790 = shalt.err (!%p2787_p4)
}
 0x103   : > { %s3164_s28 = smov 64   ;;  %s3165_s1 = smov 4  }
 0x104   : > { %2358 = dma.hbm_to_vmem [thread:$0]  (!%p3318_p6), %s4041_s4, 256, %s499_s22, [#allocation9], %s3164_s28, %s3164_s28, %s3165_s1  }
 0x105   : > { %s3166_s29 = smov [#allocation13]   ;;  %s3167_s26 = smov [#allocation16]  }
 0x106   : > { %s522_s23 = sshll.u32 %s3166_s29, 4  ;;  %s546_s30 = sshll.u32 %s3167_s26, 4  ;;  %s523_s23 = int_to_ptr.vmem [resolvable:$true] %s522_s23  ;;  %s547_s30 = int_to_ptr.vmem [resolvable:$true] %s546_s30 }
 0x107   : > { %s4042_s6 = sld [smem:[#allocation56_spill]] }
 0x10d   : > { %s2791_s27 = scalar_lea.hbm %s4042_s6, 256 }
 0x10e   : > { %p2792_p13 = scmp.ne.s32.totalorder %s4042_s6, %s2791_s27  ;;  %p2798_p3 = scmp.lt.u32.totalorder %s2791_s27, %s4042_s6 }
 0x110   : > { %p2794_p0 = pnand %p2792_p13, %p3334_p8 }
 0x112   : > { %p2795_p1 = pneg %p2794_p0 }
 0x114   : > { %p2800_p2 = pnand %p2798_p3, %p2795_p1 }
 0x116   : > { %2803 = shalt.err (!%p2800_p2)
}
 0x117   : > { %s2804_s22 = scalar_lea.vmem %s523_s23, 256  ;;  %p2812_p10 = scmp.lt.s32.totalorder %s523_s23, %s523_s23 }
 0x118   : > { %p2805_p5 = scmp.ne.s32.totalorder %s523_s23, %s2804_s22  ;;  %p2813_p11 = scmp.lt.s32.totalorder %s2804_s22, %s2804_s22 }
 0x11a   : > { %p2807_p7 = pnand %p2805_p5, %p3334_p8  ;;  %p2814_p12 = por %p2813_p11, %p2812_p10 }
 0x11c   : > { %p2808_p9 = pneg %p2807_p7 }
 0x11e   : > { %p2815_p4 = pnand %p2814_p12, %p2808_p9 }
 0x120   : > { %2818 = shalt.err (!%p2815_p4)
}
 0x121   : > { %2364 = dma.hbm_to_vmem [thread:$0]  (!%p3318_p6), %s4042_s6, 256, %s523_s23, [#allocation12], %s3164_s28, %s3164_s28, %s3165_s1  }
 0x122   : > { %s4043_s8 = sld [smem:[#allocation58_spill]] }
 0x128   : > { %s2819_s19 = scalar_lea.hbm %s4043_s8, 256 }
 0x129   : > { %p2820_p13 = scmp.ne.s32.totalorder %s4043_s8, %s2819_s19  ;;  %p2826_p3 = scmp.lt.u32.totalorder %s2819_s19, %s4043_s8 }
 0x12b   : > { %p2822_p0 = pnand %p2820_p13, %p3334_p8 }
 0x12d   : > { %p2823_p1 = pneg %p2822_p0 }
 0x12f   : > { %p2828_p2 = pnand %p2826_p3, %p2823_p1 }
 0x131   : > { %2831 = shalt.err (!%p2828_p2)
}
 0x132   : > { %s2832_s27 = scalar_lea.vmem %s547_s30, 256  ;;  %p2840_p10 = scmp.lt.s32.totalorder %s547_s30, %s547_s30 }
 0x133   : > { %p2833_p5 = scmp.ne.s32.totalorder %s547_s30, %s2832_s27  ;;  %p2841_p11 = scmp.lt.s32.totalorder %s2832_s27, %s2832_s27 }
 0x135   : > { %p2835_p7 = pnand %p2833_p5, %p3334_p8  ;;  %p2842_p12 = por %p2841_p11, %p2840_p10 }
 0x137   : > { %p2836_p9 = pneg %p2835_p7 }
 0x139   : > { %p2843_p4 = pnand %p2842_p12, %p2836_p9 }
 0x13b   : > { %2846 = shalt.err (!%p2843_p4)
}
 0x13c   : > { %2370 = dma.hbm_to_vmem [thread:$0]  (!%p3318_p6), %s4043_s8, 256, %s547_s30, [#allocation15], %s3164_s28, %s3164_s28, %s3165_s1  }
 0x13d   : > { %s3168_s22 = smov [#allocation19]   ;;  %s3169_s5 = smov [#allocation22]  }
 0x13e   : > { %s570_s3 = sshll.u32 %s3168_s22, 4  ;;  %s595_s7 = sshll.u32 %s3169_s5, 4  ;;  %s571_s3 = int_to_ptr.vmem [resolvable:$true] %s570_s3  ;;  %s596_s7 = int_to_ptr.vmem [resolvable:$true] %s595_s7 }
 0x13f   : > { %s2847_s29 = scalar_lea.hbm %s3992_s10, 256 }
 0x140   : > { %p2848_p13 = scmp.ne.s32.totalorder %s3992_s10, %s2847_s29  ;;  %p2854_p3 = scmp.lt.u32.totalorder %s2847_s29, %s3992_s10 }
 0x142   : > { %p2850_p0 = pnand %p2848_p13, %p3334_p8 }
 0x144   : > { %p2851_p1 = pneg %p2850_p0 }
 0x146   : > { %p2856_p2 = pnand %p2854_p3, %p2851_p1 }
 0x148   : > { %2859 = shalt.err (!%p2856_p2)
}
 0x149   : > { %s2860_s30 = scalar_lea.vmem %s571_s3, 256  ;;  %p2868_p10 = scmp.lt.s32.totalorder %s571_s3, %s571_s3 }
 0x14a   : > { %p2861_p5 = scmp.ne.s32.totalorder %s571_s3, %s2860_s30  ;;  %p2869_p11 = scmp.lt.s32.totalorder %s2860_s30, %s2860_s30 }
 0x14c   : > { %p2863_p7 = pnand %p2861_p5, %p3334_p8  ;;  %p2870_p12 = por %p2869_p11, %p2868_p10 }
 0x14e   : > { %p2864_p9 = pneg %p2863_p7 }
 0x150   : > { %p2871_p4 = pnand %p2870_p12, %p2864_p9 }
 0x152   : > { %2874 = shalt.err (!%p2871_p4)
}
 0x153   : > { %2376 = dma.hbm_to_vmem [thread:$0]  (!%p3318_p6), %s3992_s10, 256, %s571_s3, [#allocation18], %s3164_s28, %s3164_s28, %s3165_s1  }
 0x154   : > { %s2875_s25 = scalar_lea.hbm %s3994_s12, 16 }
 0x155   : > { %p2876_p13 = scmp.ne.s32.totalorder %s3994_s12, %s2875_s25  ;;  %p2882_p3 = scmp.lt.u32.totalorder %s2875_s25, %s3994_s12 }
 0x157   : > { %p2878_p0 = pnand %p2876_p13, %p3334_p8 }
 0x159   : > { %p2879_p1 = pneg %p2878_p0 }
 0x15b   : > { %p2884_p2 = pnand %p2882_p3, %p2879_p1 }
 0x15d   : > { %2887 = shalt.err (!%p2884_p2)
}
 0x15e   : > { %s2888_s21 = scalar_lea.vmem %s596_s7, 16  ;;  %s2895_s3 = scalar_lea.vmem %s596_s7, 32 }
 0x15f   : > { %p2889_p5 = scmp.ne.s32.totalorder %s596_s7, %s2888_s21  ;;  %p2896_p10 = scmp.lt.s32.totalorder %s596_s7, %s596_s7 }
 0x160   : > { %p2897_p11 = scmp.lt.s32.totalorder %s2895_s3, %s2888_s21 }
 0x161   : > { %p2891_p7 = pnand %p2889_p5, %p3334_p8 }
 0x162   : > { %p2898_p12 = por %p2897_p11, %p2896_p10 }
 0x163   : > { %p2892_p9 = pneg %p2891_p7 }
 0x165   : > { %p2899_p4 = pnand %p2898_p12, %p2892_p9 }
 0x167   : > { %2902 = shalt.err (!%p2899_p4)
}
 0x168   : > { %2382 = dma.hbm_to_vmem [thread:$0]  (!%p3318_p6), %s3994_s12, 16, %s596_s7, [#allocation21]  }
 0x169   : > { %s3170_s23 = smov [#allocation25]   ;;  %s3171_s22 = smov [#allocation28]  }
 0x16a   : > { %s616_s18 = sshll.u32 %s3170_s23, 4  ;;  %s640_s5 = sshll.u32 %s3171_s22, 4  ;;  %s617_s18 = int_to_ptr.vmem [resolvable:$true] %s616_s18  ;;  %s641_s5 = int_to_ptr.vmem [resolvable:$true] %s640_s5 }
 0x16b   : > { %s2903_s29 = scalar_lea.hbm %s3996_s14, 256 }
 0x16c   : > { %p2904_p13 = scmp.ne.s32.totalorder %s3996_s14, %s2903_s29  ;;  %p2910_p3 = scmp.lt.u32.totalorder %s2903_s29, %s3996_s14 }
 0x16e   : > { %p2906_p0 = pnand %p2904_p13, %p3334_p8 }
 0x170   : > { %p2907_p1 = pneg %p2906_p0 }
 0x172   : > { %p2912_p2 = pnand %p2910_p3, %p2907_p1 }
 0x174   : > { %2915 = shalt.err (!%p2912_p2)
}
 0x175   : > { %s2916_s7 = scalar_lea.vmem %s617_s18, 256  ;;  %p2924_p10 = scmp.lt.s32.totalorder %s617_s18, %s617_s18 }
 0x176   : > { %p2917_p5 = scmp.ne.s32.totalorder %s617_s18, %s2916_s7  ;;  %p2925_p11 = scmp.lt.s32.totalorder %s2916_s7, %s2916_s7 }
 0x178   : > { %p2919_p7 = pnand %p2917_p5, %p3334_p8  ;;  %p2926_p12 = por %p2925_p11, %p2924_p10 }
 0x17a   : > { %p2920_p9 = pneg %p2919_p7 }
 0x17c   : > { %p2927_p4 = pnand %p2926_p12, %p2920_p9 }
 0x17e   : > { %2930 = shalt.err (!%p2927_p4)
}
 0x17f   : > { %2388 = dma.hbm_to_vmem [thread:$0]  (!%p3318_p6), %s3996_s14, 256, %s617_s18, [#allocation24], %s3164_s28, %s3164_s28, %s3165_s1  }
 0x180   : > { %s2931_s25 = scalar_lea.hbm %s3998_s16, 512 }
 0x181   : > { %p2932_p13 = scmp.ne.s32.totalorder %s3998_s16, %s2931_s25  ;;  %p2938_p3 = scmp.lt.u32.totalorder %s2931_s25, %s3998_s16 }
 0x183   : > { %p2934_p0 = pnand %p2932_p13, %p3334_p8 }
 0x185   : > { %p2935_p1 = pneg %p2934_p0 }
 0x187   : > { %p2940_p2 = pnand %p2938_p3, %p2935_p1 }
 0x189   : > { %2943 = shalt.err (!%p2940_p2)
}
 0x18a   : > { %s2944_s21 = scalar_lea.vmem %s641_s5, 512  ;;  %p2952_p10 = scmp.lt.s32.totalorder %s641_s5, %s641_s5 }
 0x18b   : > { %p2945_p5 = scmp.ne.s32.totalorder %s641_s5, %s2944_s21  ;;  %p2953_p11 = scmp.lt.s32.totalorder %s2944_s21, %s2944_s21 }
 0x18d   : > { %p2947_p7 = pnand %p2945_p5, %p3334_p8  ;;  %p2954_p12 = por %p2953_p11, %p2952_p10 }
 0x18f   : > { %p2948_p9 = pneg %p2947_p7 }
 0x191   : > { %p2955_p4 = pnand %p2954_p12, %p2948_p9 }
 0x193   : > { %2958 = shalt.err (!%p2955_p4)
}
 0x194   : > { %2394 = dma.hbm_to_vmem [thread:$0]  (!%p3318_p6), %s3998_s16, 512, %s641_s5, [#allocation27], %s3164_s28, %s3164_s28, %s3165_s1  }
 0x195   : > { %s3172_s7 = smov [#allocation29]   ;;  %s2959_s22 = scalar_lea.hbm %s3999_s17, 16 }
 0x196   : > { %s654_s27 = sshll.u32 %s3172_s7, 4  ;;  %p2960_p13 = scmp.ne.s32.totalorder %s3999_s17, %s2959_s22  ;;  %s655_s27 = int_to_ptr.vmem [resolvable:$true] %s654_s27 }
 0x197   : > { %p2966_p3 = scmp.lt.u32.totalorder %s2959_s22, %s3999_s17 }
 0x198   : > { %p2962_p0 = pnand %p2960_p13, %p3334_p8 }
 0x19a   : > { %p2963_p1 = pneg %p2962_p0 }
 0x19c   : > { %p2968_p2 = pnand %p2966_p3, %p2963_p1 }
 0x19e   : > { %2971 = shalt.err (!%p2968_p2)
}
 0x19f   : > { %s2972_s28 = scalar_lea.vmem %s655_s27, 16  ;;  %s2979_s1 = scalar_lea.vmem %s655_s27, 32 }
 0x1a0   : > { %p2973_p5 = scmp.ne.s32.totalorder %s655_s27, %s2972_s28  ;;  %p2980_p10 = scmp.lt.s32.totalorder %s655_s27, %s655_s27 }
 0x1a1   : > { %p2981_p11 = scmp.lt.s32.totalorder %s2979_s1, %s2972_s28 }
 0x1a2   : > { %p2975_p7 = pnand %p2973_p5, %p3334_p8 }
 0x1a3   : > { %p2982_p12 = por %p2981_p11, %p2980_p10 }
 0x1a4   : > { %p2976_p9 = pneg %p2975_p7 }
 0x1a6   : > { %p2983_p4 = pnand %p2982_p12, %p2976_p9 }
 0x1a8   : > { %2986 = shalt.err (!%p2983_p4)
}
 0x1a9   : > { %s4044_s21 = sld [smem:[#allocation47_spill]]  ;;  %s4045_s18 = sld [smem:[#allocation46_spill]] }
 0x1aa   : > { %s4046_s3 = sld [smem:[#allocation45_spill]]  ;;  %s4047_s2 = sld [smem:[#allocation44_spill]] }
 0x1ab   : > { %s4048_s7 = sld [smem:[#allocation48_spill]] }
 0x1ac   : > { %2397 = dma.hbm_to_vmem [thread:$0]  (!%p3318_p6), %s3999_s17, 16, %s655_s27, [#allocation30]  }
 0x1af   : > { %s2059_s30 = sadd.s32 4294967294, %s4044_s21   ;;  %s3659_s24 = sadd.s32 1, %s4044_s21  }
 0x1b0   : > { %s49_s23 = ssub.s32 %s4044_s21, %s3659_s24  ;;  %s52_s22 = sadd.s32 1, %s4045_s18 }
 0x1b1   : > { %p50_p8 = scmp.eq.s32.totalorder %s49_s23, 0  ;;  %p59_p13 = scmp.ne.s32.totalorder %s4045_s18, %s4046_s3 }
 0x1b2   : > { %p60_p0 = scmp.eq.s32.totalorder %s4044_s21, 0  ;;  %p65_p1 = scmp.ne.s32.totalorder %s4046_s3, %s4047_s2 }
 0x1b3   : > { %s3670_s25 = scalar_select %p50_p8, %s4045_s18, %s52_s22  }
 0x1b4   : > { %p3672_p3 = por %p60_p0, %p59_p13  ;;  %p4050_p2 = scmp.eq.s32.totalorder %s4048_s7, 0 }
 0x1b5   : > { %p451_p5 = scmp.eq.s32.totalorder %s4048_s7, 1  ;;  %p457_p7 = scmp.eq.s32.totalorder %s2059_s30, 1 }
 0x1b6   : > { %p3678_p6 = por %p4050_p2, %p65_p1  ;;  %p2425_p9 = scmp.lt.s32.totalorder %s4044_s21, 2 }
 0x1b7   : > { %s3685_s29 = sand.u32 1, %s4045_s18   ;;  %p3687_p10 = por %p451_p5, %p59_p13 }
 0x1b8   : > { %s4051_s27 = scalar_select %p3678_p6, 1, 0 }
 0x1b9   : > { %s4052_s26 = scalar_select %p3687_p10, 1, 0 }
 0x1ba   : > { %p3691_p11 = por %p457_p7, %p65_p1  ;;  %s2078_s1 = sshll.u32 %s3685_s29, 3 }
 0x1bb   : > { %s2079_s5 = sshll.u32 %s4044_s21, 7  ;;  %s4054_s2 = sld [smem:[#allocation50_spill]] }
 0x1bc   : > { %s4053_s28 = scalar_select %p3691_p11, 1, 0 }
 0x1bd   : > { %s669_s18 = scalar_lea.vmem [#allocation2], %s2078_s1  ;;  %p3706_p12 = pnand %p2425_p9, %p3672_p3 }
 0x1be   : > { %s676_s30 = sshll.u32 %s669_s18, 4  ;;  %s666_s4 = scalar_lea.sflag [#allocation3], %s3685_s29  ;;  %s3702_s30 = int_to_ptr.vmem [resolvable:$true] %s676_s30 }
 0x1bf   : > { %p2989_p8 = pneg %p3706_p12 }
 0x1c1   : > { %s3700_s7 = scalar_lea.hbm %s4054_s2, %s2079_s5  ;;  %s2992_s19 = scalar_lea.hbm %s4054_s2, 256 }
 0x1c2   : > { %s2987_s0 = scalar_lea.hbm %s3700_s7, 128  ;;  %p2993_p1 = scmp.lt.u32.totalorder %s3700_s7, %s4054_s2 }
 0x1c3   : > { %p2988_p4 = scmp.ne.s32.totalorder %s3700_s7, %s2987_s0  ;;  %p2994_p3 = scmp.lt.u32.totalorder %s2992_s19, %s2987_s0 }
 0x1c4   : > { %p2996_p5 = scmp.lt.u32.totalorder %s2987_s0, %s3700_s7 }
 0x1c5   : > { %p2990_p13 = pnand %p2989_p8, %p2988_p4  ;;  %p2995_p2 = por %p2994_p3, %p2993_p1 }
 0x1c7   : > { %p2991_p0 = pneg %p2990_p13  ;;  %p2997_p7 = por %p2996_p5, %p2995_p2 }
 0x1c9   : > { %p2998_p9 = pnand %p2997_p7, %p2991_p0 }
 0x1cb   : > { %3001 = shalt.err (!%p2998_p9)
}
 0x1cc   : > { %s3002_s22 = scalar_lea.vmem %s3702_s30, 128  ;;  %s3173_s1 = smov [#allocation2]  }
 0x1cd   : > { %p3003_p4 = scmp.ne.s32.totalorder %s3702_s30, %s3002_s22  ;;  %s3007_s5 = sshll.u32 %s3173_s1, 4  ;;  %s3008_s5 = int_to_ptr.vmem [resolvable:$false] %s3007_s5 }
 0x1ce   : > { %s3009_s3 = scalar_lea.vmem %s3008_s5, 256  ;;  %p3010_p10 = scmp.lt.s32.totalorder %s3702_s30, %s3008_s5 }
 0x1cf   : > { %p3005_p13 = pnand %p3003_p4, %p2989_p8  ;;  %p3011_p1 = scmp.lt.s32.totalorder %s3009_s3, %s3002_s22 }
 0x1d1   : > { %p3006_p11 = pneg %p3005_p13  ;;  %p3012_p3 = por %p3011_p1, %p3010_p10 }
 0x1d3   : > { %p3013_p2 = pnand %p3012_p3, %p3006_p11 }
 0x1d5   : > { %3016 = shalt.err (!%p3013_p2)
}
 0x1d6   : > { %2401 = dma.hbm_to_vmem [thread:$0]  (!%p3706_p12), %s3700_s7, 128, %s3702_s30, %s666_s4  }
 0x1d7   : > { %s2080_s0 = sshll.u32 %s4044_s21, 4  ;;  %s686_s19 = scalar_lea.vmem [#allocation5], %s3685_s29 }
 0x1d8   : > { %s693_s18 = sshll.u32 %s686_s19, 4  ;;  %s4056_s6 = sld [smem:[#allocation51_spill]]  ;;  %s694_s18 = int_to_ptr.vmem [resolvable:$true] %s693_s18 }
 0x1d9   : > { %s4057_s22 = sand.u32 1, %s4044_s21  }
 0x1da   : > { %s684_s3 = scalar_lea.sflag [#allocation6], %s4057_s22 }
 0x1de   : > { %s3742_s5 = scalar_lea.hbm %s4056_s6, %s2080_s0  ;;  %s3022_s7 = scalar_lea.hbm %s4056_s6, 32 }
 0x1df   : > { %s3017_s8 = scalar_lea.hbm %s3742_s5, 16  ;;  %p3023_p5 = scmp.lt.u32.totalorder %s3742_s5, %s4056_s6 }
 0x1e0   : > { %p3018_p10 = scmp.ne.s32.totalorder %s3742_s5, %s3017_s8  ;;  %p3024_p7 = scmp.lt.u32.totalorder %s3022_s7, %s3017_s8 }
 0x1e1   : > { %p3026_p4 = scmp.lt.u32.totalorder %s3017_s8, %s3742_s5 }
 0x1e2   : > { %p3020_p11 = pnand %p3018_p10, %p2989_p8  ;;  %p3025_p9 = por %p3024_p7, %p3023_p5 }
 0x1e4   : > { %p3021_p0 = pneg %p3020_p11  ;;  %p3027_p13 = por %p3026_p4, %p3025_p9 }
 0x1e6   : > { %p3028_p1 = pnand %p3027_p13, %p3021_p0 }
 0x1e8   : > { %3031 = shalt.err (!%p3028_p1)
}
 0x1e9   : > { %s3032_s21 = scalar_lea.vmem %s694_s18, 16  ;;  %s3174_s0 = smov [#allocation5]  }
 0x1ea   : > { %p3033_p3 = scmp.ne.s32.totalorder %s694_s18, %s3032_s21  ;;  %s3037_s19 = sshll.u32 %s3174_s0, 4  ;;  %s3038_s19 = int_to_ptr.vmem [resolvable:$false] %s3037_s19 }
 0x1eb   : > { %s3039_s1 = scalar_lea.vmem %s3038_s19, 32  ;;  %p3040_p11 = scmp.lt.s32.totalorder %s694_s18, %s3038_s19 }
 0x1ec   : > { %p3035_p2 = pnand %p3033_p3, %p2989_p8  ;;  %p3041_p6 = scmp.lt.s32.totalorder %s3039_s1, %s3032_s21 }
 0x1ee   : > { %p3036_p10 = pneg %p3035_p2  ;;  %p3042_p5 = por %p3041_p6, %p3040_p11 }
 0x1f0   : > { %p3043_p7 = pnand %p3042_p5, %p3036_p10 }
 0x1f2   : > { %3046 = shalt.err (!%p3043_p7)
}
 0x1f3   : > { %2404 = dma.hbm_to_vmem [thread:$0]  (!%p3706_p12), %s3742_s5, 16, %s694_s18, %s684_s3  }
 0x1f4   : > { %s4058_s8 = sld [smem:[#allocation49_spill]] }
 0x1fa   : > { %p4059_p0 = scmp.ne.s32.totalorder %s4058_s8, 0 }
 0x1fb   : > { %s4060_s22 = sld [smem:[#allocation45_spill]] (!%p4059_p0)  ;;  %p4061_p6 = scmp.ne.s32.totalorder (!%p4059_p0), %s4051_s27, 0 }
 0x1fc   : > { %702 = sbr.rel (%p4059_p0) target bundleno = 3129 (0xc39), region = 92 }
 0x201   : > { %s3768_s4 = sand.u32 (!%p4059_p0), 1, %s4060_s22  }
 0x202   : > { %s2082_s29 = sshll.u32 (!%p4059_p0), %s3768_s4, 3  ;;  %s705_s7 = scalar_lea.sflag (!%p4059_p0), [#allocation3], %s3768_s4 }
 0x203   : > { %s708_s2 = scalar_lea.vmem [#allocation2], %s2082_s29 }
 0x204   : > { %3092 = dma.done.wait (%p4061_p6), %s705_s7, 128  }
 0x205   : > { %3094 = vsyncadd (%p4061_p6), %s705_s7, 4294967168  ;;  %s4062_s23 = sld [smem:[#allocation48_spill]]  ;;  %s716_s3 = scalar_lea.vmem [#allocation5], %s3768_s4 }
 0x20b   : > { %s713_s18 = sand.u32 1, %s4062_s23  }
 0x20c   : > { %s714_s5 = scalar_lea.sflag [#allocation6], %s713_s18 }
 0x20d   : > { %3096 = dma.done.wait (%p4061_p6), %s714_s5, 16  }
 0x20e   : > { %3098 = vsyncadd (%p4061_p6), %s714_s5, 4294967280  ;;  %p4063_p12 = scmp.eq.s32.totalorder %s4062_s23, 0 }
 0x210   : > { %3100 = dma.done.wait (%p4063_p12), [#allocation6], 16   ;;  %p4064_p8 = pmov %p4063_p12 }
 0x212   : > { %3102 = vsyncadd (%p4064_p8), [#allocation6], 4294967280  ;;  %p4065_p9 = pmov %p4064_p8 }
 0x213   : > { %p4066_p4 = pmov %p4064_p8 }
 0x214   : > { %3104 = dma.done.wait (%p4065_p9), [#allocation9], 272  }
 0x215   : > { %3106 = vsyncadd (%p4066_p4), [#allocation9], 4294967024  ;;  %p4067_p13 = pmov %p4066_p4 }
 0x216   : > { %p4068_p1 = pmov %p4066_p4 }
 0x217   : > { %3108 = dma.done.wait (%p4067_p13), [#allocation12], 272  }
 0x218   : > { %3110 = vsyncadd (%p4068_p1), [#allocation12], 4294967024  ;;  %p4069_p3 = pmov %p4068_p1 }
 0x219   : > { %p4070_p2 = pmov %p4068_p1 }
 0x21a   : > { %3112 = dma.done.wait (%p4069_p3), [#allocation15], 272  }
 0x21b   : > { %3114 = vsyncadd (%p4070_p2), [#allocation15], 4294967024  ;;  %p4071_p10 = pmov %p4068_p1 }
 0x21c   : > { %p4072_p11 = pmov %p4068_p1 }
 0x21d   : > { %3116 = dma.done.wait (%p4071_p10), [#allocation18], 272  }
 0x21e   : > { %3118 = vsyncadd (%p4072_p11), [#allocation18], 4294967024  ;;  %p4073_p5 = pmov %p4068_p1 }
 0x21f   : > { %p4074_p7 = pmov %p4068_p1 }
 0x220   : > { %3120 = dma.done.wait (%p4073_p5), [#allocation21], 32  }
 0x221   : > { %3122 = vsyncadd (%p4074_p7), [#allocation21], 4294967264  ;;  %p4075_p0 = pmov %p4068_p1 }
 0x223   : > { %3124 = dma.done.wait (%p4075_p0), [#allocation24], 272   ;;  %p4076_p6 = pmov %p4075_p0 }
 0x224   : > { %p4077_p12 = pmov %p4075_p0 }
 0x225   : > { %3126 = vsyncadd (%p4076_p6), [#allocation24], 4294967024 }
 0x226   : > { %3128 = dma.done.wait (%p4077_p12), [#allocation27], 528   ;;  %p4078_p8 = pmov %p4075_p0 }
 0x227   : > { %p4079_p9 = pmov %p4075_p0 }
 0x228   : > { %3130 = vsyncadd (%p4078_p8), [#allocation27], 4294966768 }
 0x229   : > { %3132 = dma.done.wait (%p4079_p9), [#allocation30], 16   ;;  %p4080_p4 = pmov %p4075_p0 }
 0x22a   : > { %vm842_vm0 = vcmask 261120   ;;  %v3820_v0 = vld [vmem:[%s708_s2] sm:$0xff]  ;;  %v2501_v7 = vld [vmem:[#allocation10] sm:$0xff]   ;;  %v3175_v9 = vmov 0.0   ;;  %vm3176_vm1 = vmmov 0   ;;  %vm1096_vm4 = vcmask 64512  }
 0x22b   : > { %3134 = vsyncadd (%p4080_p4), [#allocation30], 4294967280  ;;  %v843_v1 = vsel %vm842_vm0, %v3820_v0, 0.0  ;;  %v2502_v8 = vld [vmem:[#allocation13] sm:$0xff]   ;;  %2179 = vmatprep.subr.bf16.mxu0 %v3175_v9  ;;  %2187 = vmatprep.subr.bf16.mxu1 %v3175_v9  ;;  %v2503_v10 = vld [vmem:[#allocation10 + $0x8] sm:$0xff]   ;;  %s3177_s27 = smov 120  }
 0x22c   : > { %844 = vadd.xlane.f32.xlu0 %v843_v1  ;;  %2180 = vmatpush3.bf16.msra.mxu0 %v2501_v7  ;;  %v2504_v11 = vld [vmem:[#allocation13 + $0x8] sm:$0xff]   ;;  %v2505_v26 = vld [vmem:[#allocation16] sm:$0xff]   ;;  %v2506_v28 = vld [vmem:[#allocation16 + $0x8] sm:$0xff]   ;;  %s3178_s30 = smov 112   ;;  %s3179_s21 = smov 104   ;;  %vm1346_vm5 = vcmask 1043456  }
 0x22d   : > { %2188 = vmatpush3.bf16.msra.mxu1 %v2502_v8  ;;  %2181 = vmatprep.subr.bf16.mxu0 %v3175_v9  ;;  %v2100_v20 = vld [vmem:[#allocation7] ss:$0 sm:$0xff]  ;;  %v2101_v23 = vld [vmem:[#allocation8] ss:$0 sm:$0xff]  ;;  %v2102_v29 = vld [vmem:[#allocation11] ss:$0 sm:$0xff] }
 0x22e   : > { %2189 = vmatprep.subr.bf16.mxu1 %v3175_v9  ;;  %2183 = vmatprep.mubr.msk.bf16.mxu0 %vm3176_vm1, %v3175_v9  ;;  %v2106_v30 = vld [vmem:[#allocation14] ss:$0 sm:$0xff]  ;;  %v2110_v50 = vld [vmem:[#allocation17] ss:$0 sm:$0xff]  ;;  %v2118_v62 = vld [vmem:[%s716_s3] ss:$0 sm:$0xff] }
 0x22f   : > { %2191 = vmatprep.mubr.msk.bf16.mxu1 %vm3176_vm1, %v3175_v9  ;;  %s3180_s0 = smov 8   ;;  %s3181_s19 = smov 16   ;;  %vm1541_vm6 = vcmask 130048   ;;  %vm1543_vm7 = vcmask 195584   ;;  %vm1757_vm10 = vcmask 523264  }
 0x230   : > { %2182 = vmatpush3.bf16.msra.mxu0 %v2503_v10  ;;  %s3182_s1 = smov 24   ;;  %s2140_s8 = sshll.u32 %s4062_s23, 7 }
 0x231   : > { %2190 = vmatpush3.bf16.msra.mxu1 %v2504_v11  ;;  %2195 = vmatprep.subr.bf16.mxu0 %v3175_v9  ;;  %s836_s22 = scalar_lea.vmem [#allocation31], %s2082_s29  ;;  %s4081_s5 = sld [smem:[#allocation59_spill]] }
 0x232   : > { %2203 = vmatprep.subr.bf16.mxu1 %v3175_v9  ;;  %s1817_s7 = sshll.u32 %s836_s22, 4  ;;  %s1804_s29 = scalar_lea.sflag [#allocation4], %s3768_s4  ;;  %s3939_s7 = int_to_ptr.vmem [resolvable:$true] %s1817_s7 }
 0x233   : > { %s3047_s23 = scalar_lea.vmem %s3939_s7, 128  ;;  %p4082_p1 = scmp.ne.s32.totalorder %s4052_s26, 0 }
 0x234   : > { %p3048_p13 = scmp.ne.s32.totalorder %s3939_s7, %s3047_s23 }
 0x236   : > { %p3049_p3 = pnand %p3048_p13, %p4082_p1 }
 0x237   : > { %s3937_s3 = scalar_lea.hbm %s4081_s5, %s2140_s8 }
 0x238   : > { %p3050_p2 = pneg %p3049_p3 }
 0x2b9   : > { %v845_v2 = vpop.xlane.xlu0 %844 }
 0x2ba   : > { %v847_v3 = vmul.f32 0.03125, %v845_v2 }
 0x2bc   : > { %v848_v4 = vsub.f32 %v3820_v0, %v847_v3 }
 0x2be   : > { %v849_v5 = vmul.f32 %v848_v4, %v848_v4  ;;  %v870_v21 = vmul.f32 %v2100_v20, %v848_v4 }
 0x2c0   : > { %v850_v6 = vsel %vm842_vm0, %v849_v5, 0.0 }
 0x2c1   : > { %851 = vadd.xlane.f32.xlu0 %v850_v6 }
 0x34e   : > { %v852_v12 = vpop.xlane.xlu0 %851 }
 0x34f   : > { %v854_v13 = vmul.f32 0.032258064, %v852_v12 }
 0x351   : > { %2515 = vrsqrt.f32 %v854_v13  ;;  %vm857_vm2 = vcmp.eq.f32.partialorder %v854_v13, inf  ;;  %v860_v16 = vand.u32 2147483648, %v854_v13  ;;  %vm859_vm3 = vcmp.eq.f32.partialorder %v854_v13, 0.0 }
 0x35b   : > { %v2516_v14 = vpop.eup %2515 }
 0x35c   : > { %v856_v15 = vmul.f32 %v2516_v14, %v854_v13 }
 0x35e   : > { %v858_v17 = vsel %vm857_vm2, %v854_v13, %v856_v15 }
 0x35f   : > { %v861_v18 = vsel %vm859_vm3, %v860_v16, %v858_v17 }
 0x360   : > { %v862_v19 = vadd.f32 1e-06, %v861_v18 }
 0x362   : > { %2517 = vrcp.f32 %v862_v19 }
 0x36c   : > { %v2518_v22 = vpop.eup %2517 }
 0x36d   : > { %v871_v24 = vmul.f32 %v2518_v22, %v870_v21 }
 0x36f   : > { %v878_v25 = vadd.f32 %v2101_v23, %v871_v24 }
 0x371   : > { %v879_v27 = vpack.c.bf16 %v878_v25, %v878_v25 }
 0x373   : > { %2184 = vmatmul.mubr.msk.bf16.vlgmr.msra.gmra.mrb[0].mxu0 %vm842_vm0, %v879_v27  ;;  %2192 = vmatmul.mubr.msk.bf16.vlgmr.msra.gmra.mrb[0].mxu1 %vm842_vm0, %v879_v27 }
 0x374   : > { %2196 = vmatpush3.bf16.msra.mxu0 %v2505_v26  ;;  %2199 = vmatprep.mubr.msk.bf16.mxu0 %vm3176_vm1, %v3175_v9 }
 0x375   : > { %2197 = vmatprep.subr.bf16.mxu0 %v3175_v9  ;;  %2205 = vmatprep.mubr.msk.bf16.mxu1 %vm3176_vm1, %v3175_v9 }
 0x378   : > { %2198 = vmatpush3.bf16.msra.mxu0 %v2506_v28 }
 0x379   : > { %2209 = vmatprep.subr.bf16.mxu0 %v3175_v9 }
 0x37b   : > { %2200 = vmatmul.mubr.msk.bf16.vlgmr.msra.gmra.mrb[4].mxu0 %vm842_vm0, %v879_v27 }
 0x37c   : > { %2211 = vmatprep.mubr.msk.bf16.mxu0 %vm3176_vm1, %v3175_v9 }
 0x446   : > { %v940_v31 = vpop.f32.mrb[0].mxu0  ;;  %v1004_v32 = vpop.f32.mrb[0].mxu1 }
 0x447   : > { %v941_v33 = vadd.f32 %v2102_v29, %v940_v31  ;;  %v1005_v34 = vadd.f32 %v2106_v30, %v1004_v32  ;;  %v2185_v35 = vpop.f32.mrb[1].mxu0  ;;  %v2193_v36 = vpop.f32.mrb[1].mxu1 }
 0x448   : > { %v943_v37 = vpop.f32.mrb[2].mxu0  ;;  %v1007_v38 = vpop.f32.mrb[2].mxu1 }
 0x449   : > { %v946_v39 = vpack.c.bf16 %v941_v33, %v941_v33  ;;  %v1010_v40 = vpack.c.bf16 %v1005_v34, %v1005_v34  ;;  %v2186_v41 = vpop.f32.mrb[3].mxu0  ;;  %v2194_v42 = vpop.f32.mrb[3].mxu1 }
 0x44b   : > { %1083 = vrot.lane.b32.xlu1 %v1010_v40, %s3177_s27  ;;  %1076 = vrot.lane.b32.xlu0 %v946_v39, %s3177_s27  ;;  %v1101_v43 = vsel %vm1096_vm4, %v1010_v40, 0 }
 0x44c   : > { %2204 = vmatpush3.bf16.xpose.msra.mxu1 %v1101_v43 }
 0x44d   : > { %2215 = vmatprep.subr.bf16.mxu1 %v3175_v9 }
 0x44e   : > { %v1068_v44 = vpop.f32.mrb[4].mxu0 }
 0x44f   : > { %1085 = vrot.lane.b32.xlu1 %v1010_v40, %s3178_s30  ;;  %v2201_v45 = vpop.f32.mrb[5].mxu0  ;;  %v1069_v52 = vadd.f32 %v2110_v50, %v1068_v44 }
 0x450   : > { %v1071_v46 = vpop.f32.mrb[6].mxu0 }
 0x451   : > { %v2202_v47 = vpop.f32.mrb[7].mxu0  ;;  %v3862_v56 = vpack.c.bf16 %v1069_v52, %v1069_v52 }
 0x453   : > { %1087 = vrot.lane.b32.xlu1 %v1010_v40, %s3179_s21  ;;  %2206 = vmatmul.mubr.msk.bf16.vlgmr.msra.gmra.mrb[4].mxu1 %vm1096_vm4, %v946_v39  ;;  %v1348_v59 = vsel %vm1346_vm5, %v3862_v56, 0 }
 0x454   : > { %2217 = vmatprep.mubr.msk.bf16.mxu1 %vm3176_vm1, %v3175_v9 }
 0x457   : > { %1078 = vrot.lane.b32.xlu1 %v946_v39, %s3178_s30 }
 0x45b   : > { %1080 = vrot.lane.b32.xlu1 %v946_v39, %s3179_s21 }
 0x4bd   : > { %v1084_v48 = vpop.permute.xlu1 %1083  ;;  %v1077_v54 = vpop.permute.xlu0 %1076 }
 0x4be   : > { %v1147_v49 = vsel %vm1096_vm4, %v1084_v48, 0 }
 0x4bf   : > { %2210 = vmatpush3.bf16.xpose.msra.mxu0 %v1147_v49 }
 0x4c0   : > { %2221 = vmatprep.subr.bf16.mxu0 %v3175_v9 }
 0x4c1   : > { %v1086_v51 = vpop.permute.xlu1 %1085 }
 0x4c2   : > { %v1193_v53 = vsel %vm1096_vm4, %v1086_v51, 0 }
 0x4c3   : > { %2216 = vmatpush3.bf16.xpose.msra.mxu1 %v1193_v53 }
 0x4c4   : > { %2227 = vmatprep.subr.bf16.mxu1 %v3175_v9 }
 0x4c5   : > { %v1088_v55 = vpop.permute.xlu1 %1087 }
 0x4c6   : > { %v1239_v57 = vsel %vm1096_vm4, %v1088_v55, 0  ;;  %2212 = vmatmul.mubr.msk.bf16.vlgmr.msra.gmra.mrb[8].mxu0 %vm1096_vm4, %v1077_v54 }
 0x4c7   : > { %2222 = vmatpush3.bf16.xpose.msra.mxu0 %v1239_v57  ;;  %2223 = vmatprep.mubr.msk.bf16.mxu0 %vm3176_vm1, %v3175_v9 }
 0x4c8   : > { %2233 = vmatprep.subr.bf16.mxu0 %v3175_v9 }
 0x4c9   : > { %v1079_v58 = vpop.permute.xlu1 %1078 }
 0x4ca   : > { %2218 = vmatmul.mubr.msk.bf16.vlgmr.msra.gmra.mrb[8].mxu1 %vm1096_vm4, %v1079_v58 }
 0x4cb   : > { %2228 = vmatpush3.bf16.msra.mxu1 %v1348_v59  ;;  %2229 = vmatprep.mubr.msk.bf16.mxu1 %vm3176_vm1, %v3175_v9 }
 0x4cc   : > { %2239 = vmatprep.subr.bf16.mxu1 %v3175_v9 }
 0x4cd   : > { %v1081_v60 = vpop.permute.xlu1 %1080 }
 0x4ce   : > { %2224 = vmatmul.mubr.msk.bf16.vlgmr.msra.gmra.mrb[12].mxu0 %vm1096_vm4, %v1081_v60 }
 0x4cf   : > { %2235 = vmatprep.mubr.msk.bf16.mxu0 %vm3176_vm1, %v3175_v9 }
 0x526   : > { %v1137_v61 = vpop.f32.mrb[4].mxu1 }
 0x527   : > { %v1281_v63 = vmul.f32 0.35355338, %v1137_v61  ;;  %v2207_v1 = vpop.f32.mrb[5].mxu1 }
 0x528   : > { %v1140_v2 = vpop.f32.mrb[6].mxu1 }
 0x529   : > { %v2208_v3 = vpop.f32.mrb[7].mxu1  ;;  %v1291_v4 = vadd.f32 %v2118_v62, %v1281_v63 }
 0x52b   : > { %v1295_v5 = vsel %vm1096_vm4, %v1291_v4, -inf }
 0x52c   : > { %1296 = vmax.xlane.f32.xlu1 %v1295_v5 }
 0x599   : > { %v1183_v6 = vpop.f32.mrb[8].mxu0 }
 0x59a   : > { %v1282_v7 = vmul.f32 0.35355338, %v1183_v6  ;;  %v2213_v8 = vpop.f32.mrb[9].mxu0 }
 0x59b   : > { %v1186_v10 = vpop.f32.mrb[10].mxu0 }
 0x59c   : > { %v2214_v11 = vpop.f32.mrb[11].mxu0  ;;  %v1292_v12 = vadd.f32 %v2118_v62, %v1282_v7 }
 0x59d   : > { %v1229_v13 = vpop.f32.mrb[8].mxu1 }
 0x59e   : > { %v1283_v14 = vmul.f32 0.35355338, %v1229_v13  ;;  %v2219_v15 = vpop.f32.mrb[9].mxu1  ;;  %v1298_v16 = vsel %vm1096_vm4, %v1292_v12, -inf }
 0x59f   : > { %v1232_v17 = vpop.f32.mrb[10].mxu1  ;;  %1299 = vmax.xlane.f32.xlu0 %v1298_v16 }
 0x5a0   : > { %v2220_v18 = vpop.f32.mrb[11].mxu1  ;;  %v1293_v19 = vadd.f32 %v2118_v62, %v1283_v14 }
 0x5a1   : > { %v1275_v20 = vpop.f32.mrb[12].mxu0 }
 0x5a2   : > { %v1284_v21 = vmul.f32 0.35355338, %v1275_v20  ;;  %v2225_v22 = vpop.f32.mrb[13].mxu0  ;;  %v1301_v23 = vsel %vm1096_vm4, %v1293_v19, -inf }
 0x5a3   : > { %1302 = vmax.xlane.f32.xlu1 %v1301_v23  ;;  %v1278_v24 = vpop.f32.mrb[14].mxu0 }
 0x5a4   : > { %v2226_v25 = vpop.f32.mrb[15].mxu0  ;;  %v1294_v26 = vadd.f32 %v2118_v62, %v1284_v21  ;;  %v2508_v21 = vld [vmem:[#allocation19 + $0x8] sm:$0xff]  }
 0x5a6   : > { %v1304_v27 = vsel %vm1096_vm4, %v1294_v26, -inf }
 0x5a7   : > { %1305 = vmax.xlane.f32.xlu1 %v1304_v27 }
 0x5b9   : > { %v1297_v28 = vpop.xlane.xlu1 %1296 }
 0x5ba   : > { %v1307_v29 = vsub.f32 %v1291_v4, %v1297_v28 }
 0x5bc   : > { %v1311_v30 = vmul.f32 1.442695, %v1307_v29 }
 0x5be   : > { %2519 = vpow2.f32 %v1311_v30 }
 0x5c8   : > { %v2520_v31 = vpop.eup %2519 }
 0x5c9   : > { %v1319_v32 = vsel %vm1096_vm4, %v2520_v31, 0.0 }
 0x5ca   : > { %1320 = vadd.xlane.f32.xlu0 %v1319_v32 }
 0x62c   : > { %v1300_v33 = vpop.xlane.xlu0 %1299 }
 0x62d   : > { %v1308_v34 = vsub.f32 %v1292_v12, %v1300_v33  ;;  %v2507_v12 = vld [vmem:[#allocation19] sm:$0xff]   ;;  %v2123_v33 = vld [vmem:[#allocation20] ss:$0 sm:$0xff] }
 0x62f   : > { %v1313_v35 = vmul.f32 1.442695, %v1308_v34 }
 0x630   : > { %v1303_v36 = vpop.xlane.xlu1 %1302 }
 0x631   : > { %2521 = vpow2.f32 %v1313_v35  ;;  %v1309_v37 = vsub.f32 %v1293_v19, %v1303_v36 }
 0x633   : > { %v1315_v38 = vmul.f32 1.442695, %v1309_v37 }
 0x634   : > { %v1306_v44 = vpop.xlane.xlu1 %1305 }
 0x635   : > { %2523 = vpow2.f32 %v1315_v38  ;;  %v1310_v45 = vsub.f32 %v1294_v26, %v1306_v44 }
 0x637   : > { %v1317_v46 = vmul.f32 1.442695, %v1310_v45 }
 0x63b   : > { %v2522_v39 = vpop.eup %2521 }
 0x63c   : > { %v1322_v40 = vsel %vm1096_vm4, %v2522_v39, 0.0 }
 0x63d   : > { %1323 = vadd.xlane.f32.xlu1 %v1322_v40 }
 0x63f   : > { %v2524_v41 = vpop.eup %2523 }
 0x640   : > { %v1325_v42 = vsel %vm1096_vm4, %v2524_v41, 0.0 }
 0x641   : > { %1326 = vadd.xlane.f32.xlu0 %v1325_v42 }
 0x64e   : > { %1092 = vrot.lane.b32.xlu1 %v3862_v56, %s3178_s30 }
 0x657   : > { %1090 = vrot.lane.b32.xlu0 %v3862_v56, %s3177_s27  ;;  %v1321_v43 = vpop.xlane.xlu0 %1320  ;;  %s3183_s27 = smov [#allocation31]  }
 0x658   : > { %2525 = vrcp.f32 %v1321_v43  ;;  %s3051_s30 = sshll.u32 %s3183_s27, 4  ;;  %s3052_s30 = int_to_ptr.vmem [resolvable:$false] %s3051_s30 }
 0x659   : > { %2527 = vpow2.f32 %v1317_v46  ;;  %v2509_v46 = vld [vmem:[#allocation25] sm:$0xff]   ;;  %p3054_p10 = scmp.lt.s32.totalorder %s3939_s7, %s3052_s30 }
 0x662   : > { %v2526_v47 = vpop.eup %2525 }
 0x663   : > { %v1335_v48 = vmul.f32 %v2526_v47, %v2520_v31  ;;  %v2528_v50 = vpop.eup %2527  ;;  %v2510_v47 = vld [vmem:[#allocation25 + $0x8] sm:$0xff]  }
 0x664   : > { %v1328_v51 = vsel %vm1096_vm4, %v2528_v50, 0.0 }
 0x665   : > { %v1339_v49 = vpack.c.bf16 %v1335_v48, %v1335_v48  ;;  %v2512_v48 = vld [vmem:[#allocation28 + $0x8] sm:$0xff]  }
 0x667   : > { %2230 = vmatmul.mubr.msk.bf16.vlgmr.msra.gmra.mrb[12].mxu1 %vm1096_vm4, %v1339_v49 }
 0x668   : > { %2241 = vmatprep.mubr.msk.bf16.mxu1 %vm3176_vm1, %v3175_v9 }
 0x672   : > { %1329 = vadd.xlane.f32.xlu1 %v1328_v51 }
 0x683   : > { %1094 = vrot.lane.b32.xlu1 %v3862_v56, %s3179_s21  ;;  %s3053_s21 = scalar_lea.vmem %s3052_s30, 256 }
 0x684   : > { %p3055_p11 = scmp.lt.s32.totalorder %s3053_s21, %s3047_s23 }
 0x686   : > { %p3056_p5 = por %p3055_p11, %p3054_p10 }
 0x688   : > { %p3057_p7 = pnand %p3056_p5, %p3050_p2 }
 0x6ca   : > { %v1324_v52 = vpop.xlane.xlu1 %1323 }
 0x6cb   : > { %2529 = vrcp.f32 %v1324_v52 }
 0x6ce   : > { %v1327_v53 = vpop.xlane.xlu0 %1326  ;;  %v1093_v54 = vpop.permute.xlu1 %1092 }
 0x6cf   : > { %2531 = vrcp.f32 %v1327_v53  ;;  %v1440_v55 = vsel %vm1346_vm5, %v1093_v54, 0 }
 0x6d0   : > { %2240 = vmatpush3.bf16.msra.mxu1 %v1440_v55 }
 0x6d1   : > { %2251 = vmatprep.subr.bf16.mxu1 %v3175_v9 }
 0x6d2   : > { %v1091_v57 = vpop.permute.xlu0 %1090 }
 0x6d3   : > { %v1394_v58 = vsel %vm1346_vm5, %v1091_v57, 0 }
 0x6d4   : > { %2234 = vmatpush3.bf16.msra.mxu0 %v1394_v58  ;;  %v2127_v58 = vld [vmem:[#allocation22] ss:$0 sm:$0xff] }
 0x6d5   : > { %v2530_v59 = vpop.eup %2529  ;;  %2245 = vmatprep.subr.bf16.mxu0 %v3175_v9 }
 0x6d6   : > { %v1336_v60 = vmul.f32 %v2530_v59, %v2522_v39 }
 0x6d8   : > { %v1340_v61 = vpack.c.bf16 %v1336_v60, %v1336_v60 }
 0x6d9   : > { %v2532_v56 = vpop.eup %2531 }
 0x6da   : > { %v1337_v62 = vmul.f32 %v2532_v56, %v2524_v41  ;;  %2236 = vmatmul.mubr.msk.bf16.vlgmr.msra.gmra.mrb[16].mxu0 %vm1096_vm4, %v1340_v61  ;;  %v2128_v61 = vld [vmem:[#allocation23] ss:$0 sm:$0xff] }
 0x6db   : > { %2247 = vmatprep.mubr.msk.bf16.mxu0 %vm3176_vm1, %v3175_v9 }
 0x6dc   : > { %v1341_v63 = vpack.c.bf16 %v1337_v62, %v1337_v62 }
 0x6de   : > { %2242 = vmatmul.mubr.msk.bf16.vlgmr.msra.gmra.mrb[16].mxu1 %vm1096_vm4, %v1341_v63 }
 0x6df   : > { %2255 = vmatprep.mubr.msk.bf16.mxu1 %vm3176_vm1, %v3175_v9  ;;  %2252 = vmatpush3.bf16.msra.mxu1 %v2507_v12  ;;  %v2133_v12 = vld [vmem:[#allocation29] ss:$0 sm:$0xff] }
 0x6e0   : > { %2253 = vmatprep.subr.bf16.mxu1 %v3175_v9 }
 0x6e3   : > { %2254 = vmatpush3.bf16.msra.mxu1 %v2508_v21 }
 0x6e4   : > { %2267 = vmatprep.subr.bf16.mxu1 %v3175_v9 }
 0x6ff   : > { %v1330_v1 = vpop.xlane.xlu1 %1329 }
 0x700   : > { %2533 = vrcp.f32 %v1330_v1  ;;  %v2513_v1 = vld [vmem:[#allocation28 + $0x10] sm:$0xff]  }
 0x703   : > { %v1095_v2 = vpop.permute.xlu1 %1094 }
 0x704   : > { %v1486_v3 = vsel %vm1346_vm5, %v1095_v2, 0  ;;  %v2514_v2 = vld [vmem:[#allocation28 + $0x18] sm:$0xff]  }
 0x705   : > { %2246 = vmatpush3.bf16.msra.mxu0 %v1486_v3  ;;  %v2129_v3 = vld [vmem:[#allocation26] ss:$0 sm:$0xff] }
 0x706   : > { %2259 = vmatprep.subr.bf16.mxu0 %v3175_v9 }
 0x70a   : > { %v2534_v4 = vpop.eup %2533 }
 0x70b   : > { %v1338_v5 = vmul.f32 %v2534_v4, %v2528_v50 }
 0x70d   : > { %v1342_v6 = vpack.c.bf16 %v1338_v5, %v1338_v5 }
 0x70f   : > { %2248 = vmatmul.mubr.msk.bf16.vlgmr.msra.gmra.mrb[20].mxu0 %vm1096_vm4, %v1342_v6 }
 0x710   : > { %2263 = vmatprep.mubr.msk.bf16.mxu0 %vm3176_vm1, %v3175_v9  ;;  %2260 = vmatpush3.bf16.msra.mxu0 %v2509_v46 }
 0x711   : > { %2261 = vmatprep.subr.bf16.mxu0 %v3175_v9 }
 0x714   : > { %2262 = vmatpush3.bf16.msra.mxu0 %v2510_v47 }
 0x73a   : > { %v1384_v7 = vpop.f32.mrb[12].mxu1 }
 0x73b   : > { %v2231_v8 = vpop.f32.mrb[13].mxu1 }
 0x73c   : > { %v1387_v10 = vpop.f32.mrb[14].mxu1 }
 0x73d   : > { %v2232_v11 = vpop.f32.mrb[15].mxu1 }
 0x7ad   : > { %v1430_v13 = vpop.f32.mrb[16].mxu0 }
 0x7ae   : > { %1529 = vrot.lane.b32.xlu0 %v1430_v13, %s3180_s0  ;;  %v2237_v14 = vpop.f32.mrb[17].mxu0 }
 0x7af   : > { %v1433_v15 = vpop.f32.mrb[18].mxu0 }
 0x7b0   : > { %v2238_v16 = vpop.f32.mrb[19].mxu0 }
 0x7b1   : > { %v1476_v17 = vpop.f32.mrb[16].mxu1 }
 0x7b2   : > { %1533 = vrot.lane.b32.xlu1 %v1476_v17, %s3181_s19  ;;  %v2243_v18 = vpop.f32.mrb[17].mxu1 }
 0x7b3   : > { %v1479_v19 = vpop.f32.mrb[18].mxu1 }
 0x7b4   : > { %v2244_v20 = vpop.f32.mrb[19].mxu1 }
 0x7e2   : > { %v1522_v22 = vpop.f32.mrb[20].mxu0 }
 0x7e3   : > { %1537 = vrot.lane.b32.xlu0 %v1522_v22, %s3182_s1  ;;  %v2249_v23 = vpop.f32.mrb[21].mxu0 }
 0x7e4   : > { %v1525_v24 = vpop.f32.mrb[22].mxu0 }
 0x7e5   : > { %v2250_v25 = vpop.f32.mrb[23].mxu0 }
 0x820   : > { %v1530_v26 = vpop.permute.xlu0 %1529 }
 0x821   : > { %v1540_v28 = vsel %vm1096_vm4, %v1384_v7, %v1530_v26 }
 0x824   : > { %v1534_v27 = vpop.permute.xlu1 %1533 }
 0x825   : > { %v1542_v29 = vsel %vm1541_vm6, %v1540_v28, %v1534_v27 }
 0x855   : > { %v1538_v30 = vpop.permute.xlu0 %1537 }
 0x856   : > { %v1544_v31 = vsel %vm1543_vm7, %v1542_v29, %v1538_v30 }
 0x857   : > { %v1545_v32 = vpack.c.bf16 %v1544_v31, %v1544_v31 }
 0x859   : > { %2256 = vmatmul.mubr.msk.bf16.vlgmr.msra.gmra.mrb[20].mxu1 %vm842_vm0, %v1545_v32 }
 0x85a   : > { %2275 = vmatprep.mubr.msk.bf16.mxu1 %vm3176_vm1, %v3175_v9 }
 0x92c   : > { %v1606_v34 = vpop.f32.mrb[20].mxu1 }
 0x92d   : > { %v1607_v35 = vadd.f32 %v2123_v33, %v1606_v34  ;;  %v2257_v36 = vpop.f32.mrb[21].mxu1 }
 0x92e   : > { %v1609_v37 = vpop.f32.mrb[22].mxu1 }
 0x92f   : > { %v3919_v38 = vadd.f32 %v1607_v35, %v3820_v0  ;;  %v2258_v39 = vpop.f32.mrb[23].mxu1  ;;  %v2511_v0 = vld [vmem:[#allocation28] sm:$0xff]  }
 0x930   : > { %2268 = vmatpush3.bf16.msra.mxu1 %v2511_v0 }
 0x931   : > { %v1615_v40 = vsel %vm842_vm0, %v3919_v38, 0.0  ;;  %2269 = vmatprep.subr.bf16.mxu1 %v3175_v9 }
 0x932   : > { %1616 = vadd.xlane.f32.xlu1 %v1615_v40 }
 0x934   : > { %2270 = vmatpush3.bf16.msra.mxu1 %v2512_v48 }
 0x935   : > { %2271 = vmatprep.subr.bf16.mxu1 %v3175_v9 }
 0x938   : > { %2272 = vmatpush3.bf16.msra.mxu1 %v2513_v1 }
 0x939   : > { %2273 = vmatprep.subr.bf16.mxu1 %v3175_v9 }
 0x93c   : > { %2274 = vmatpush3.bf16.msra.mxu1 %v2514_v2 }
 0x9bf   : > { %v1617_v41 = vpop.xlane.xlu1 %1616 }
 0x9c0   : > { %v1618_v42 = vmul.f32 0.03125, %v1617_v41 }
 0x9c2   : > { %v1619_v43 = vsub.f32 %v3919_v38, %v1618_v42 }
 0x9c4   : > { %v1620_v44 = vmul.f32 %v1619_v43, %v1619_v43  ;;  %v1640_v59 = vmul.f32 %v2127_v58, %v1619_v43 }
 0x9c6   : > { %v1621_v45 = vsel %vm842_vm0, %v1620_v44, 0.0 }
 0x9c7   : > { %1622 = vadd.xlane.f32.xlu0 %v1621_v45 }
 0xa54   : > { %v1623_v49 = vpop.xlane.xlu0 %1622 }
 0xa55   : > { %v1624_v50 = vmul.f32 0.032258064, %v1623_v49 }
 0xa57   : > { %2535 = vrsqrt.f32 %v1624_v50  ;;  %vm1627_vm8 = vcmp.eq.f32.partialorder %v1624_v50, inf  ;;  %v1630_v53 = vand.u32 2147483648, %v1624_v50  ;;  %vm1629_vm9 = vcmp.eq.f32.partialorder %v1624_v50, 0.0 }
 0xa61   : > { %v2536_v51 = vpop.eup %2535 }
 0xa62   : > { %v1626_v52 = vmul.f32 %v2536_v51, %v1624_v50 }
 0xa64   : > { %v1628_v54 = vsel %vm1627_vm8, %v1624_v50, %v1626_v52 }
 0xa65   : > { %v1631_v55 = vsel %vm1629_vm9, %v1630_v53, %v1628_v54 }
 0xa66   : > { %v1632_v57 = vadd.f32 1e-06, %v1631_v55 }
 0xa68   : > { %2537 = vrcp.f32 %v1632_v57 }
 0xa72   : > { %v2538_v60 = vpop.eup %2537 }
 0xa73   : > { %v1641_v56 = vmul.f32 %v2538_v60, %v1640_v59 }
 0xa75   : > { %v1648_v62 = vadd.f32 %v2128_v61, %v1641_v56 }
 0xa77   : > { %v1649_v63 = vpack.c.bf16 %v1648_v62, %v1648_v62 }
 0xa79   : > { %2264 = vmatmul.mubr.msk.bf16.vlgmr.msra.gmra.mrb[24].mxu0 %vm842_vm0, %v1649_v63 }
 0xb4c   : > { %v1710_v4 = vpop.f32.mrb[24].mxu0 }
 0xb4d   : > { %v1711_v5 = vadd.f32 %v2129_v3, %v1710_v4  ;;  %v2265_v6 = vpop.f32.mrb[25].mxu0 }
 0xb4e   : > { %v1713_v7 = vpop.f32.mrb[26].mxu0 }
 0xb4f   : > { %v1716_v8 = vmax.f32 %v1711_v5, 0.0  ;;  %v2266_v10 = vpop.f32.mrb[27].mxu0 }
 0xb51   : > { %v1717_v11 = vpack.c.bf16 %v1716_v8, %v1716_v8 }
 0xb53   : > { %2276 = vmatmul.mubr.msk.bf16.vlgmr.msra.gmra.mrb[24].mxu1 %vm1757_vm10, %v1717_v11 }
 0xc26   : > { %v1795_v13 = vpop.f32.mrb[24].mxu1 }
 0xc27   : > { %v1796_v9 = vadd.f32 %v2133_v12, %v1795_v13  ;;  %v2277_v14 = vpop.f32.mrb[25].mxu1 }
 0xc28   : > { %v1798_v15 = vpop.f32.mrb[26].mxu1 }
 0xc29   : > { %v1801_v16 = vadd.f32 %v1796_v9, %v3919_v38  ;;  %v2278_v17 = vpop.f32.mrb[27].mxu1 }
 0xc2b   : > { %1802 = vst.msk [vmem:[%s836_s22] sm:$0xff] %vm842_vm0, %v1801_v16 }
 0xc2c   : > { %3060 = shalt.err (!%p3057_p7)
}
 0xc2d   : > { %s3061_s4 = scalar_lea.hbm %s3937_s3, 128  ;;  %s3065_s1 = scalar_lea.hbm %s4081_s5, 256 }
 0xc2e   : > { %p3062_p0 = scmp.ne.s32.totalorder %s3937_s3, %s3061_s4  ;;  %p3066_p8 = scmp.lt.u32.totalorder %s3937_s3, %s4081_s5 }
 0xc2f   : > { %p3067_p9 = scmp.lt.u32.totalorder %s3065_s1, %s3061_s4  ;;  %p3069_p13 = scmp.lt.u32.totalorder %s3061_s4, %s3937_s3 }
 0xc30   : > { %p3063_p6 = pnand %p3062_p0, %p4082_p1 }
 0xc31   : > { %p3068_p4 = por %p3067_p9, %p3066_p8 }
 0xc32   : > { %p3064_p12 = pneg %p3063_p6 }
 0xc33   : > { %p3070_p3 = por %p3069_p13, %p3068_p4 }
 0xc35   : > { %p3071_p2 = pnand %p3070_p3, %p3064_p12 }
 0xc37   : > { %3074 = shalt.err (!%p3071_p2)
}
 0xc38   : > { %2347 = dma.vmem_to_hbm [thread:$0]  (%p4082_p1), %s3939_s7, 128, %s3937_s3, %s1804_s29  }
 0xc39 PF: > { %s4083_s2 = sld [smem:[#allocation44_spill]]  ;;  %s4084_s18 = sld [smem:[#allocation47_spill]] }
 0xc3a   : > { %p4085_p10 = scmp.ne.s32.totalorder %s4053_s28, 0 }
 0xc3f   : > { %s1829_s23 = sand.u32 1, %s4083_s2   ;;  %p4086_p11 = scmp.ge.s32.totalorder %s4084_s18, 2 }
 0xc40   : > { %s1830_s27 = scalar_lea.sflag [#allocation4], %s1829_s23 }
 0xc41   : > { %p2406_p5 = pnand %p4086_p11, %p4085_p10 }
 0xc43   : > { %3136 = dma.done.wait (!%p2406_p5), %s1830_s27, 128  }
 0xc44   : > { %3138 = vsyncadd (!%p2406_p5), %s1830_s27, 4294967168  ;;  %s4087_s27 = sld [smem:[#allocation45_spill]]  ;;  %s4088_s28 = sld [smem:[#allocation46_spill]] }
 0xc45   : > { %p42_p7 = scmp.ge.s32.totalorder %s3659_s24, 4   ;;  %s4089_s29 = smov %s3670_s25 }
 0xc46   : > { %s4090_s30 = smov %s3659_s24 }
 0xc47   :  { %44 = sbr.rel (!%p42_p7) target bundleno = 26 (0x1a), region = 214 }
 0xc4e   :  { %1835 = vsyncpa [#allocation3], 1 }
 0xc4f   :  { %1837 = vsyncpa [#allocation3 + $0x1], 1 }
 0xc50   :  { %1838 = vsyncpa [#allocation6], 1 }
 0xc51   :  { %1840 = vsyncpa [#allocation6 + $0x1], 1 }
 0xc52   :  { %1841 = vsyncpa [#allocation9], 1 }
 0xc53   :  { %1842 = vsyncpa [#allocation12], 1 }
 0xc54   :  { %1843 = vsyncpa [#allocation15], 1 }
 0xc55   :  { %1844 = vsyncpa [#allocation18], 1 }
 0xc56   :  { %1845 = vsyncpa [#allocation21], 1 }
 0xc57   :  { %1846 = vsyncpa [#allocation24], 1 }
 0xc58   :  { %1847 = vsyncpa [#allocation27], 1 }
 0xc59   :  { %1848 = vsyncpa [#allocation30], 1 }
 0xc5a   :  { %1849 = vsyncpa [#allocation4], 1 }
 0xc5b   :  { %1851 = vsyncpa [#allocation4 + $0x1], 1 }

</bundles_post_ra>
